<compile_context>
chip_gen: v7x
topology: tpu7x:2x2x1
jax: 0.10.0
libtpu: 0.0.40
codegen_flags: <defaults>
</compile_context>

<pallas_src>
import math

import jax
import jax.numpy as jnp
from jax.experimental import pallas as pl
from jax.experimental.pallas import tpu as pltpu

# ---------------- scaled-down roberta-base config ----------------
B, S = 2, 16          # batch, sequence
BS = B * S            # folded rows
H = 128               # hidden size        (roberta-base: 768)
NH, HD = 4, 32        # heads, head dim    (roberta-base: 12, 64)
I = 256               # FFN intermediate   (roberta-base: 3072)
P = 128               # pooling attn dim   (original: 512)
L = 2                 # encoder layers     (roberta-base: 12)
VOCAB = 100
MAX_POS = 64
PAD_ID = 1
EPS = 1e-7            # layer_norm_eps from config.update(...)
OUT_PAD = 128         # lane-dense padded output width

N_LAYER_REFS = 12     # refs per encoder layer in the fused kernel


# ---------------- in-kernel helpers ----------------
def _ln(x, g, b):
    mu = jnp.mean(x, axis=-1, keepdims=True)
    var = jnp.mean(jnp.square(x - mu), axis=-1, keepdims=True)
    return (x - mu) * jax.lax.rsqrt(var + EPS) * g + b


def _gelu(x):
    # TODO(synk): HF RoBERTa uses exact (erf) GELU; tanh approximation used here
    # because erf has no guaranteed Pallas TPU lowering.
    return 0.5 * x * (1.0 + jnp.tanh(0.7978845608028654 * (x + 0.044715 * x * x * x)))


def _softmax_rows(s):
    s = s - jnp.max(s, axis=-1, keepdims=True)
    e = jnp.exp(s)
    return e * pl.reciprocal(jnp.sum(e, axis=-1, keepdims=True), approx=True)


# ---------------- fused forward kernel ----------------
def fused_forward_kernel(*refs):
    """Whole forward pass in one kernel.

    refs layout:
      [0] x      (BS, H)  f32  word+pos+tok embedding sum (pre-LN)
      [1] amask  (BS, BS) f32  additive attention mask (block-diagonal + padding)
      [2] emb_g  (1, H) f32    [3] emb_b (1, H) f32
      then per layer (12 refs):
        wqkv (H,3H) bf16, bqkv (1,3H) f32, wo (H,H) bf16, bo (1,H) f32,
        g1 (1,H), b1 (1,H), wi (H,I) bf16, bi (1,I) f32,
        wo2 (I,H) bf16, bo2 (1,H) f32, g2 (1,H), b2 (1,H)
      then head (5 refs):
        w1 (H,P) bf16, hb1 (1,P) f32, w2 (1,P) f32, wr (1,H) f32, br (1,1) f32
      last: o_ref (B, OUT_PAD) f32
    """
    x_ref, amask_ref, eg_ref, eb_ref = refs[0:4]
    idx = 4
    layer_refs = []
    for _ in range(L):
        layer_refs.append(refs[idx:idx + N_LAYER_REFS])
        idx += N_LAYER_REFS
    w1_ref, hb1_ref, w2_ref, wr_ref, br_ref = refs[idx:idx + 5]
    o_ref = refs[idx + 5]

    amask = amask_ref[...]                                 # (BS, BS) f32
    x = _ln(x_ref[...], eg_ref[...], eb_ref[...])          # (BS, H)  f32
    scale = 1.0 / math.sqrt(HD)

    for (wqkv_ref, bqkv_ref, wo_ref, bo_ref, g1_ref, b1_ref,
         wi_ref, bi_ref, wo2_ref, bo2_ref, g2_ref, b2_ref) in layer_refs:

        # ---- fused QKV projection: one (BS,H)x(H,3H) MXU matmul ----
        qkv = jnp.dot(x.astype(jnp.bfloat16), wqkv_ref[...],
                      preferred_element_type=jnp.float32) + bqkv_ref[...]   # (BS, 3H)

        # ---- multi-head self-attention on the folded (BS, BS) score tile ----
        # block-diagonal additive mask keeps batch elements independent.
        attn = None
        for h in range(NH):                                 # static unroll over heads
            q_h = qkv[:, h * HD:(h + 1) * HD]
            k_h = qkv[:, H + h * HD:H + (h + 1) * HD]
            v_h = qkv[:, 2 * H + h * HD:2 * H + (h + 1) * HD]
            s = jax.lax.dot_general(
                q_h.astype(jnp.bfloat16), k_h.astype(jnp.bfloat16),
                (((1,), (1,)), ((), ())),
                preferred_element_type=jnp.float32) * scale + amask          # (BS, BS)
            p = _softmax_rows(s)
            ctx_h = jnp.dot(p.astype(jnp.bfloat16), v_h.astype(jnp.bfloat16),
                            preferred_element_type=jnp.float32)              # (BS, HD)
            # fold the output-projection slice into the head loop (no concat)
            part = jnp.dot(ctx_h.astype(jnp.bfloat16),
                           wo_ref[h * HD:(h + 1) * HD, :],
                           preferred_element_type=jnp.float32)               # (BS, H)
            attn = part if attn is None else attn + part
        attn = attn + bo_ref[...]

        h1 = _ln(x + attn, g1_ref[...], b1_ref[...])                         # post-LN

        # ---- feed-forward ----
        ff = _gelu(jnp.dot(h1.astype(jnp.bfloat16), wi_ref[...],
                           preferred_element_type=jnp.float32) + bi_ref[...])
        ff = jnp.dot(ff.astype(jnp.bfloat16), wo2_ref[...],
                     preferred_element_type=jnp.float32) + bo2_ref[...]
        x = _ln(h1 + ff, g2_ref[...], b2_ref[...])

    # ---- attention pooling head + regressor ----
    a = jnp.tanh(jnp.dot(x.astype(jnp.bfloat16), w1_ref[...],
                         preferred_element_type=jnp.float32) + hb1_ref[...])  # (BS, P)
    logits = jnp.sum(a * w2_ref[...], axis=-1, keepdims=True)                 # (BS, 1)
    # Note: the Linear(P,1) bias is a constant shift under softmax(dim=1) -> omitted.

    rows = []
    for b in range(B):                                       # static unroll, tiny batch
        hb = x[b * S:(b + 1) * S, :]                         # (S, H)
        lb = logits[b * S:(b + 1) * S, :]                    # (S, 1)
        lb = lb - jnp.max(lb, axis=0, keepdims=True)
        e = jnp.exp(lb)
        wgt = e * pl.reciprocal(jnp.sum(e, axis=0, keepdims=True), approx=True)
        ctx = jnp.sum(wgt * hb, axis=0, keepdims=True)                        # (1, H)
        pred = jnp.sum(ctx * wr_ref[...], axis=-1, keepdims=True) + br_ref[...]  # (1, 1)
        rows.append(jnp.broadcast_to(pred, (1, OUT_PAD)))    # lane-dense store
    o_ref[...] = jnp.concatenate(rows, axis=0)               # (B, OUT_PAD)


# ---------------- plain-JAX glue ----------------
def embed_sum(params, input_ids):
    pad_mask = (input_ids != PAD_ID).astype(jnp.int32)
    pos_ids = jnp.cumsum(pad_mask, axis=1) * pad_mask + PAD_ID     # roberta position ids
    we = jnp.take(params['word_emb'], input_ids, axis=0)           # gather stays in JAX
    pe = jnp.take(params['pos_emb'], pos_ids, axis=0)
    te = jnp.broadcast_to(params['tok_emb'][0], we.shape)          # token_type_ids = 0
    return we + pe + te                                            # (B, S, H), LN in-kernel


def build_attn_mask(attention_mask):
    """(B,S) 0/1 mask -> (BS,BS) additive mask: block-diagonal over batch + key padding."""
    key_ok = attention_mask.astype(jnp.float32).reshape(1, BS)
    batch_id = jnp.repeat(jnp.arange(B, dtype=jnp.int32), S)
    same = (batch_id[:, None] == batch_id[None, :]).astype(jnp.float32)
    allowed = same * key_ok
    return (1.0 - allowed) * -1e9


def roberta_forward(params, input_ids, attention_mask):
    x = embed_sum(params, input_ids).reshape(BS, H)
    amask = build_attn_mask(attention_mask)

    args = [x, amask, params['emb_g'], params['emb_b']]
    for l in range(L):
        p = params['layers'][l]
        args += [p['wqkv'], p['bqkv'], p['wo'], p['bo'], p['g1'], p['b1'],
                 p['wi'], p['bi'], p['wo2'], p['bo2'], p['g2'], p['b2']]
    hp = params['head']
    args += [hp['w1'], hp['b1'], hp['w2'], hp['wr'], hp['br']]

    out = pl.pallas_call(
        fused_forward_kernel,
        out_shape=jax.ShapeDtypeStruct((B, OUT_PAD), jnp.float32),
        compiler_params=pltpu.CompilerParams(vmem_limit_bytes=32 * 1024 * 1024),
    )(*args)
    return out[:, :1]                                              # (B, 1)


# ---------------- deterministic parameter init ----------------
def init_params(key):
    def nrm(k, shape, dtype=jnp.float32):
        return (jax.random.normal(k, shape, jnp.float32) * 0.02).astype(dtype)

    keys = iter(jax.random.split(key, 256))
    params = {
        'word_emb': nrm(next(keys), (VOCAB, H)),
        'pos_emb': nrm(next(keys), (MAX_POS, H)),
        'tok_emb': nrm(next(keys), (1, H)),
        'emb_g': jnp.ones((1, H), jnp.float32),
        'emb_b': jnp.zeros((1, H), jnp.float32),
        'layers': [],
    }
    for _ in range(L):
        wq = nrm(next(keys), (H, H))
        wk = nrm(next(keys), (H, H))
        wv = nrm(next(keys), (H, H))
        params['layers'].append({
            'wqkv': jnp.concatenate([wq, wk, wv], axis=1).astype(jnp.bfloat16),  # (H, 3H)
            'bqkv': jnp.zeros((1, 3 * H), jnp.float32),
            'wo': nrm(next(keys), (H, H), jnp.bfloat16), 'bo': jnp.zeros((1, H), jnp.float32),
            'g1': jnp.ones((1, H), jnp.float32), 'b1': jnp.zeros((1, H), jnp.float32),
            'wi': nrm(next(keys), (H, I), jnp.bfloat16), 'bi': jnp.zeros((1, I), jnp.float32),
            'wo2': nrm(next(keys), (I, H), jnp.bfloat16), 'bo2': jnp.zeros((1, H), jnp.float32),
            'g2': jnp.ones((1, H), jnp.float32), 'b2': jnp.zeros((1, H), jnp.float32),
        })
    params['head'] = {
        'w1': nrm(next(keys), (H, P), jnp.bfloat16), 'b1': jnp.zeros((1, P), jnp.float32),
        'w2': nrm(next(keys), (1, P)),                         # Linear(P,1) weight, pre-T
        'wr': nrm(next(keys), (1, H)),                         # Linear(H,1) weight, pre-T
        'br': jnp.zeros((1, 1), jnp.float32),
    }
    return params


if __name__ == "__main__":
    key = jax.random.PRNGKey(0)
    pkey, ikey = jax.random.split(key)
    params = init_params(pkey)

    input_ids = jax.random.randint(ikey, (B, S), 2, VOCAB, dtype=jnp.int32)
    attention_mask = jnp.ones((B, S), jnp.int32)

    forward = jax.jit(roberta_forward)
    out = forward(params, input_ids, attention_mask)
    out = jax.block_until_ready(out)
    assert out.shape == (B, 1) and out.dtype == jnp.float32
    print("KERNEL_OK")
</pallas_src>

<mosaic_0001>
module attributes {stable_mosaic.version = 11 : i64} {
  func.func @fused_forward_kernel(%arg0: memref<32x128xf32, #tpu.memory_space<vmem>>, %arg1: memref<32x32xf32, #tpu.memory_space<vmem>>, %arg2: memref<1x128xf32, #tpu.memory_space<vmem>>, %arg3: memref<1x128xf32, #tpu.memory_space<vmem>>, %arg4: memref<128x384xbf16, #tpu.memory_space<vmem>>, %arg5: memref<1x384xf32, #tpu.memory_space<vmem>>, %arg6: memref<128x128xbf16, #tpu.memory_space<vmem>>, %arg7: memref<1x128xf32, #tpu.memory_space<vmem>>, %arg8: memref<1x128xf32, #tpu.memory_space<vmem>>, %arg9: memref<1x128xf32, #tpu.memory_space<vmem>>, %arg10: memref<128x256xbf16, #tpu.memory_space<vmem>>, %arg11: memref<1x256xf32, #tpu.memory_space<vmem>>, %arg12: memref<256x128xbf16, #tpu.memory_space<vmem>>, %arg13: memref<1x128xf32, #tpu.memory_space<vmem>>, %arg14: memref<1x128xf32, #tpu.memory_space<vmem>>, %arg15: memref<1x128xf32, #tpu.memory_space<vmem>>, %arg16: memref<128x384xbf16, #tpu.memory_space<vmem>>, %arg17: memref<1x384xf32, #tpu.memory_space<vmem>>, %arg18: memref<128x128xbf16, #tpu.memory_space<vmem>>, %arg19: memref<1x128xf32, #tpu.memory_space<vmem>>, %arg20: memref<1x128xf32, #tpu.memory_space<vmem>>, %arg21: memref<1x128xf32, #tpu.memory_space<vmem>>, %arg22: memref<128x256xbf16, #tpu.memory_space<vmem>>, %arg23: memref<1x256xf32, #tpu.memory_space<vmem>>, %arg24: memref<256x128xbf16, #tpu.memory_space<vmem>>, %arg25: memref<1x128xf32, #tpu.memory_space<vmem>>, %arg26: memref<1x128xf32, #tpu.memory_space<vmem>>, %arg27: memref<1x128xf32, #tpu.memory_space<vmem>>, %arg28: memref<128x128xbf16, #tpu.memory_space<vmem>>, %arg29: memref<1x128xf32, #tpu.memory_space<vmem>>, %arg30: memref<1x128xf32, #tpu.memory_space<vmem>>, %arg31: memref<1x128xf32, #tpu.memory_space<vmem>>, %arg32: memref<1x1xf32, #tpu.memory_space<vmem>>, %arg33: memref<2x128xf32, #tpu.memory_space<vmem>>) attributes {dimension_semantics = [], scalar_prefetch = 0 : i64, scratch_operands = 0 : i64, tpu.core_type = #tpu.core_type<tc>} {
    %c0 = arith.constant 0 : index
    %c0_0 = arith.constant 0 : index
    %0 = vector.load %arg1[%c0, %c0_0] : memref<32x32xf32, #tpu.memory_space<vmem>>, vector<32x32xf32>
    %c0_1 = arith.constant 0 : index
    %c0_2 = arith.constant 0 : index
    %1 = vector.load %arg0[%c0_1, %c0_2] : memref<32x128xf32, #tpu.memory_space<vmem>>, vector<32x128xf32>
    %c0_3 = arith.constant 0 : index
    %c0_4 = arith.constant 0 : index
    %2 = vector.load %arg2[%c0_3, %c0_4] : memref<1x128xf32, #tpu.memory_space<vmem>>, vector<1x128xf32>
    %c0_5 = arith.constant 0 : index
    %c0_6 = arith.constant 0 : index
    %3 = vector.load %arg3[%c0_5, %c0_6] : memref<1x128xf32, #tpu.memory_space<vmem>>, vector<1x128xf32>
    %cst = arith.constant dense<0.000000e+00> : vector<32xf32>
    %4 = vector.multi_reduction <add>, %1, %cst [1] : vector<32x128xf32> to vector<32xf32>
    %5 = vector.shape_cast %4 : vector<32xf32> to vector<32x1xf32>
    %cst_7 = arith.constant 1.280000e+02 : f32
    %6 = vector.broadcast %cst_7 : f32 to vector<32x1xf32>
    %7 = arith.divf %5, %6 : vector<32x1xf32>
    %8 = vector.broadcast %7 : vector<32x1xf32> to vector<32x128xf32>
    %9 = arith.subf %1, %8 : vector<32x128xf32>
    %10 = arith.mulf %9, %9 : vector<32x128xf32>
    %cst_8 = arith.constant dense<0.000000e+00> : vector<32xf32>
    %11 = vector.multi_reduction <add>, %10, %cst_8 [1] : vector<32x128xf32> to vector<32xf32>
    %12 = vector.shape_cast %11 : vector<32xf32> to vector<32x1xf32>
    %cst_9 = arith.constant 1.280000e+02 : f32
    %13 = vector.broadcast %cst_9 : f32 to vector<32x1xf32>
    %14 = arith.divf %12, %13 : vector<32x1xf32>
    %15 = vector.broadcast %7 : vector<32x1xf32> to vector<32x128xf32>
    %16 = arith.subf %1, %15 : vector<32x128xf32>
    %cst_10 = arith.constant 1.000000e-07 : f32
    %17 = vector.broadcast %cst_10 : f32 to vector<32x1xf32>
    %18 = arith.addf %14, %17 : vector<32x1xf32>
    %19 = math.rsqrt %18 : vector<32x1xf32>
    %20 = vector.broadcast %19 : vector<32x1xf32> to vector<32x128xf32>
    %21 = arith.mulf %16, %20 : vector<32x128xf32>
    %22 = vector.broadcast %2 : vector<1x128xf32> to vector<32x128xf32>
    %23 = arith.mulf %21, %22 : vector<32x128xf32>
    %24 = vector.broadcast %3 : vector<1x128xf32> to vector<32x128xf32>
    %25 = arith.addf %23, %24 : vector<32x128xf32>
    %26 = arith.truncf %25 : vector<32x128xf32> to vector<32x128xbf16>
    %c0_11 = arith.constant 0 : index
    %c0_12 = arith.constant 0 : index
    %27 = vector.load %arg4[%c0_11, %c0_12] : memref<128x384xbf16, #tpu.memory_space<vmem>>, vector<128x384xbf16>
    %cst_13 = arith.constant dense<0.000000e+00> : vector<32x384xf32>
    %28 = tpu.matmul %26, %27, %cst_13 {dimension_numbers = #tpu.dot_dimension_numbers<[1], [0], [0], [1], [0, 0, 1, 1], [], []>} : vector<32x128xbf16>, vector<128x384xbf16>, vector<32x384xf32> -> vector<32x384xf32>
    %c0_14 = arith.constant 0 : index
    %c0_15 = arith.constant 0 : index
    %29 = vector.load %arg5[%c0_14, %c0_15] : memref<1x384xf32, #tpu.memory_space<vmem>>, vector<1x384xf32>
    %30 = vector.broadcast %29 : vector<1x384xf32> to vector<32x384xf32>
    %31 = arith.addf %28, %30 : vector<32x384xf32>
    %32 = vector.extract_strided_slice %31 {offsets = [0, 0], sizes = [32, 32], strides = [1, 1]} : vector<32x384xf32> to vector<32x32xf32>
    %33 = vector.extract_strided_slice %31 {offsets = [0, 128], sizes = [32, 32], strides = [1, 1]} : vector<32x384xf32> to vector<32x32xf32>
    %34 = vector.extract_strided_slice %31 {offsets = [0, 256], sizes = [32, 32], strides = [1, 1]} : vector<32x384xf32> to vector<32x32xf32>
    %35 = arith.truncf %32 : vector<32x32xf32> to vector<32x32xbf16>
    %36 = arith.truncf %33 : vector<32x32xf32> to vector<32x32xbf16>
    %cst_16 = arith.constant dense<0.000000e+00> : vector<32x32xf32>
    %37 = tpu.matmul %35, %36, %cst_16 {dimension_numbers = #tpu.dot_dimension_numbers<[1], [1], [0], [0], [0, 0, 1, 0], [], []>} : vector<32x32xbf16>, vector<32x32xbf16>, vector<32x32xf32> -> vector<32x32xf32>
    %cst_17 = arith.constant 0.176776692 : f32
    %38 = vector.broadcast %cst_17 : f32 to vector<32x32xf32>
    %39 = arith.mulf %37, %38 : vector<32x32xf32>
    %40 = arith.addf %39, %0 : vector<32x32xf32>
    %cst_18 = arith.constant dense<0xFF800000> : vector<32xf32>
    %41 = vector.multi_reduction <maximumf>, %40, %cst_18 [1] : vector<32x32xf32> to vector<32xf32>
    %42 = vector.shape_cast %41 : vector<32xf32> to vector<32x1xf32>
    %43 = vector.broadcast %42 : vector<32x1xf32> to vector<32x32xf32>
    %44 = arith.subf %40, %43 : vector<32x32xf32>
    %45 = math.exp %44 : vector<32x32xf32>
    %cst_19 = arith.constant dense<0.000000e+00> : vector<32xf32>
    %46 = vector.multi_reduction <add>, %45, %cst_19 [1] : vector<32x32xf32> to vector<32xf32>
    %47 = vector.shape_cast %46 : vector<32xf32> to vector<32x1xf32>
    %48 = tpu.reciprocal %47 {approx = true} : vector<32x1xf32> -> vector<32x1xf32>
    %49 = vector.broadcast %48 : vector<32x1xf32> to vector<32x32xf32>
    %50 = arith.mulf %45, %49 : vector<32x32xf32>
    %51 = arith.truncf %50 : vector<32x32xf32> to vector<32x32xbf16>
    %52 = arith.truncf %34 : vector<32x32xf32> to vector<32x32xbf16>
    %cst_20 = arith.constant dense<0.000000e+00> : vector<32x32xf32>
    %53 = tpu.matmul %51, %52, %cst_20 {dimension_numbers = #tpu.dot_dimension_numbers<[1], [0], [0], [1], [0, 0, 1, 1], [], []>} : vector<32x32xbf16>, vector<32x32xbf16>, vector<32x32xf32> -> vector<32x32xf32>
    %54 = arith.truncf %53 : vector<32x32xf32> to vector<32x32xbf16>
    %c0_21 = arith.constant 0 : index
    %c0_22 = arith.constant 0 : index
    %55 = vector.load %arg6[%c0_21, %c0_22] : memref<128x128xbf16, #tpu.memory_space<vmem>>, vector<32x128xbf16>
    %cst_23 = arith.constant dense<0.000000e+00> : vector<32x128xf32>
    %56 = tpu.matmul %54, %55, %cst_23 {dimension_numbers = #tpu.dot_dimension_numbers<[1], [0], [0], [1], [0, 0, 1, 1], [], []>} : vector<32x32xbf16>, vector<32x128xbf16>, vector<32x128xf32> -> vector<32x128xf32>
    %57 = vector.extract_strided_slice %31 {offsets = [0, 32], sizes = [32, 32], strides = [1, 1]} : vector<32x384xf32> to vector<32x32xf32>
    %58 = vector.extract_strided_slice %31 {offsets = [0, 160], sizes = [32, 32], strides = [1, 1]} : vector<32x384xf32> to vector<32x32xf32>
    %59 = vector.extract_strided_slice %31 {offsets = [0, 288], sizes = [32, 32], strides = [1, 1]} : vector<32x384xf32> to vector<32x32xf32>
    %60 = arith.truncf %57 : vector<32x32xf32> to vector<32x32xbf16>
    %61 = arith.truncf %58 : vector<32x32xf32> to vector<32x32xbf16>
    %cst_24 = arith.constant dense<0.000000e+00> : vector<32x32xf32>
    %62 = tpu.matmul %60, %61, %cst_24 {dimension_numbers = #tpu.dot_dimension_numbers<[1], [1], [0], [0], [0, 0, 1, 0], [], []>} : vector<32x32xbf16>, vector<32x32xbf16>, vector<32x32xf32> -> vector<32x32xf32>
    %cst_25 = arith.constant 0.176776692 : f32
    %63 = vector.broadcast %cst_25 : f32 to vector<32x32xf32>
    %64 = arith.mulf %62, %63 : vector<32x32xf32>
    %65 = arith.addf %64, %0 : vector<32x32xf32>
    %cst_26 = arith.constant dense<0xFF800000> : vector<32xf32>
    %66 = vector.multi_reduction <maximumf>, %65, %cst_26 [1] : vector<32x32xf32> to vector<32xf32>
    %67 = vector.shape_cast %66 : vector<32xf32> to vector<32x1xf32>
    %68 = vector.broadcast %67 : vector<32x1xf32> to vector<32x32xf32>
    %69 = arith.subf %65, %68 : vector<32x32xf32>
    %70 = math.exp %69 : vector<32x32xf32>
    %cst_27 = arith.constant dense<0.000000e+00> : vector<32xf32>
    %71 = vector.multi_reduction <add>, %70, %cst_27 [1] : vector<32x32xf32> to vector<32xf32>
    %72 = vector.shape_cast %71 : vector<32xf32> to vector<32x1xf32>
    %73 = tpu.reciprocal %72 {approx = true} : vector<32x1xf32> -> vector<32x1xf32>
    %74 = vector.broadcast %73 : vector<32x1xf32> to vector<32x32xf32>
    %75 = arith.mulf %70, %74 : vector<32x32xf32>
    %76 = arith.truncf %75 : vector<32x32xf32> to vector<32x32xbf16>
    %77 = arith.truncf %59 : vector<32x32xf32> to vector<32x32xbf16>
    %cst_28 = arith.constant dense<0.000000e+00> : vector<32x32xf32>
    %78 = tpu.matmul %76, %77, %cst_28 {dimension_numbers = #tpu.dot_dimension_numbers<[1], [0], [0], [1], [0, 0, 1, 1], [], []>} : vector<32x32xbf16>, vector<32x32xbf16>, vector<32x32xf32> -> vector<32x32xf32>
    %79 = arith.truncf %78 : vector<32x32xf32> to vector<32x32xbf16>
    %c32 = arith.constant 32 : index
    %c0_29 = arith.constant 0 : index
    %80 = vector.load %arg6[%c32, %c0_29] : memref<128x128xbf16, #tpu.memory_space<vmem>>, vector<32x128xbf16>
    %cst_30 = arith.constant dense<0.000000e+00> : vector<32x128xf32>
    %81 = tpu.matmul %79, %80, %cst_30 {dimension_numbers = #tpu.dot_dimension_numbers<[1], [0], [0], [1], [0, 0, 1, 1], [], []>} : vector<32x32xbf16>, vector<32x128xbf16>, vector<32x128xf32> -> vector<32x128xf32>
    %82 = arith.addf %56, %81 : vector<32x128xf32>
    %83 = vector.extract_strided_slice %31 {offsets = [0, 64], sizes = [32, 32], strides = [1, 1]} : vector<32x384xf32> to vector<32x32xf32>
    %84 = vector.extract_strided_slice %31 {offsets = [0, 192], sizes = [32, 32], strides = [1, 1]} : vector<32x384xf32> to vector<32x32xf32>
    %85 = vector.extract_strided_slice %31 {offsets = [0, 320], sizes = [32, 32], strides = [1, 1]} : vector<32x384xf32> to vector<32x32xf32>
    %86 = arith.truncf %83 : vector<32x32xf32> to vector<32x32xbf16>
    %87 = arith.truncf %84 : vector<32x32xf32> to vector<32x32xbf16>
    %cst_31 = arith.constant dense<0.000000e+00> : vector<32x32xf32>
    %88 = tpu.matmul %86, %87, %cst_31 {dimension_numbers = #tpu.dot_dimension_numbers<[1], [1], [0], [0], [0, 0, 1, 0], [], []>} : vector<32x32xbf16>, vector<32x32xbf16>, vector<32x32xf32> -> vector<32x32xf32>
    %cst_32 = arith.constant 0.176776692 : f32
    %89 = vector.broadcast %cst_32 : f32 to vector<32x32xf32>
    %90 = arith.mulf %88, %89 : vector<32x32xf32>
    %91 = arith.addf %90, %0 : vector<32x32xf32>
    %cst_33 = arith.constant dense<0xFF800000> : vector<32xf32>
    %92 = vector.multi_reduction <maximumf>, %91, %cst_33 [1] : vector<32x32xf32> to vector<32xf32>
    %93 = vector.shape_cast %92 : vector<32xf32> to vector<32x1xf32>
    %94 = vector.broadcast %93 : vector<32x1xf32> to vector<32x32xf32>
    %95 = arith.subf %91, %94 : vector<32x32xf32>
    %96 = math.exp %95 : vector<32x32xf32>
    %cst_34 = arith.constant dense<0.000000e+00> : vector<32xf32>
    %97 = vector.multi_reduction <add>, %96, %cst_34 [1] : vector<32x32xf32> to vector<32xf32>
    %98 = vector.shape_cast %97 : vector<32xf32> to vector<32x1xf32>
    %99 = tpu.reciprocal %98 {approx = true} : vector<32x1xf32> -> vector<32x1xf32>
    %100 = vector.broadcast %99 : vector<32x1xf32> to vector<32x32xf32>
    %101 = arith.mulf %96, %100 : vector<32x32xf32>
    %102 = arith.truncf %101 : vector<32x32xf32> to vector<32x32xbf16>
    %103 = arith.truncf %85 : vector<32x32xf32> to vector<32x32xbf16>
    %cst_35 = arith.constant dense<0.000000e+00> : vector<32x32xf32>
    %104 = tpu.matmul %102, %103, %cst_35 {dimension_numbers = #tpu.dot_dimension_numbers<[1], [0], [0], [1], [0, 0, 1, 1], [], []>} : vector<32x32xbf16>, vector<32x32xbf16>, vector<32x32xf32> -> vector<32x32xf32>
    %105 = arith.truncf %104 : vector<32x32xf32> to vector<32x32xbf16>
    %c64 = arith.constant 64 : index
    %c0_36 = arith.constant 0 : index
    %106 = vector.load %arg6[%c64, %c0_36] : memref<128x128xbf16, #tpu.memory_space<vmem>>, vector<32x128xbf16>
    %cst_37 = arith.constant dense<0.000000e+00> : vector<32x128xf32>
    %107 = tpu.matmul %105, %106, %cst_37 {dimension_numbers = #tpu.dot_dimension_numbers<[1], [0], [0], [1], [0, 0, 1, 1], [], []>} : vector<32x32xbf16>, vector<32x128xbf16>, vector<32x128xf32> -> vector<32x128xf32>
    %108 = arith.addf %82, %107 : vector<32x128xf32>
    %109 = vector.extract_strided_slice %31 {offsets = [0, 96], sizes = [32, 32], strides = [1, 1]} : vector<32x384xf32> to vector<32x32xf32>
    %110 = vector.extract_strided_slice %31 {offsets = [0, 224], sizes = [32, 32], strides = [1, 1]} : vector<32x384xf32> to vector<32x32xf32>
    %111 = vector.extract_strided_slice %31 {offsets = [0, 352], sizes = [32, 32], strides = [1, 1]} : vector<32x384xf32> to vector<32x32xf32>
    %112 = arith.truncf %109 : vector<32x32xf32> to vector<32x32xbf16>
    %113 = arith.truncf %110 : vector<32x32xf32> to vector<32x32xbf16>
    %cst_38 = arith.constant dense<0.000000e+00> : vector<32x32xf32>
    %114 = tpu.matmul %112, %113, %cst_38 {dimension_numbers = #tpu.dot_dimension_numbers<[1], [1], [0], [0], [0, 0, 1, 0], [], []>} : vector<32x32xbf16>, vector<32x32xbf16>, vector<32x32xf32> -> vector<32x32xf32>
    %cst_39 = arith.constant 0.176776692 : f32
    %115 = vector.broadcast %cst_39 : f32 to vector<32x32xf32>
    %116 = arith.mulf %114, %115 : vector<32x32xf32>
    %117 = arith.addf %116, %0 : vector<32x32xf32>
    %cst_40 = arith.constant dense<0xFF800000> : vector<32xf32>
    %118 = vector.multi_reduction <maximumf>, %117, %cst_40 [1] : vector<32x32xf32> to vector<32xf32>
    %119 = vector.shape_cast %118 : vector<32xf32> to vector<32x1xf32>
    %120 = vector.broadcast %119 : vector<32x1xf32> to vector<32x32xf32>
    %121 = arith.subf %117, %120 : vector<32x32xf32>
    %122 = math.exp %121 : vector<32x32xf32>
    %cst_41 = arith.constant dense<0.000000e+00> : vector<32xf32>
    %123 = vector.multi_reduction <add>, %122, %cst_41 [1] : vector<32x32xf32> to vector<32xf32>
    %124 = vector.shape_cast %123 : vector<32xf32> to vector<32x1xf32>
    %125 = tpu.reciprocal %124 {approx = true} : vector<32x1xf32> -> vector<32x1xf32>
    %126 = vector.broadcast %125 : vector<32x1xf32> to vector<32x32xf32>
    %127 = arith.mulf %122, %126 : vector<32x32xf32>
    %128 = arith.truncf %127 : vector<32x32xf32> to vector<32x32xbf16>
    %129 = arith.truncf %111 : vector<32x32xf32> to vector<32x32xbf16>
    %cst_42 = arith.constant dense<0.000000e+00> : vector<32x32xf32>
    %130 = tpu.matmul %128, %129, %cst_42 {dimension_numbers = #tpu.dot_dimension_numbers<[1], [0], [0], [1], [0, 0, 1, 1], [], []>} : vector<32x32xbf16>, vector<32x32xbf16>, vector<32x32xf32> -> vector<32x32xf32>
    %131 = arith.truncf %130 : vector<32x32xf32> to vector<32x32xbf16>
    %c96 = arith.constant 96 : index
    %c0_43 = arith.constant 0 : index
    %132 = vector.load %arg6[%c96, %c0_43] : memref<128x128xbf16, #tpu.memory_space<vmem>>, vector<32x128xbf16>
    %cst_44 = arith.constant dense<0.000000e+00> : vector<32x128xf32>
    %133 = tpu.matmul %131, %132, %cst_44 {dimension_numbers = #tpu.dot_dimension_numbers<[1], [0], [0], [1], [0, 0, 1, 1], [], []>} : vector<32x32xbf16>, vector<32x128xbf16>, vector<32x128xf32> -> vector<32x128xf32>
    %134 = arith.addf %108, %133 : vector<32x128xf32>
    %c0_45 = arith.constant 0 : index
    %c0_46 = arith.constant 0 : index
    %135 = vector.load %arg7[%c0_45, %c0_46] : memref<1x128xf32, #tpu.memory_space<vmem>>, vector<1x128xf32>
    %136 = vector.broadcast %135 : vector<1x128xf32> to vector<32x128xf32>
    %137 = arith.addf %134, %136 : vector<32x128xf32>
    %138 = arith.addf %25, %137 : vector<32x128xf32>
    %c0_47 = arith.constant 0 : index
    %c0_48 = arith.constant 0 : index
    %139 = vector.load %arg8[%c0_47, %c0_48] : memref<1x128xf32, #tpu.memory_space<vmem>>, vector<1x128xf32>
    %c0_49 = arith.constant 0 : index
    %c0_50 = arith.constant 0 : index
    %140 = vector.load %arg9[%c0_49, %c0_50] : memref<1x128xf32, #tpu.memory_space<vmem>>, vector<1x128xf32>
    %cst_51 = arith.constant dense<0.000000e+00> : vector<32xf32>
    %141 = vector.multi_reduction <add>, %138, %cst_51 [1] : vector<32x128xf32> to vector<32xf32>
    %142 = vector.shape_cast %141 : vector<32xf32> to vector<32x1xf32>
    %cst_52 = arith.constant 1.280000e+02 : f32
    %143 = vector.broadcast %cst_52 : f32 to vector<32x1xf32>
    %144 = arith.divf %142, %143 : vector<32x1xf32>
    %145 = vector.broadcast %144 : vector<32x1xf32> to vector<32x128xf32>
    %146 = arith.subf %138, %145 : vector<32x128xf32>
    %147 = arith.mulf %146, %146 : vector<32x128xf32>
    %cst_53 = arith.constant dense<0.000000e+00> : vector<32xf32>
    %148 = vector.multi_reduction <add>, %147, %cst_53 [1] : vector<32x128xf32> to vector<32xf32>
    %149 = vector.shape_cast %148 : vector<32xf32> to vector<32x1xf32>
    %cst_54 = arith.constant 1.280000e+02 : f32
    %150 = vector.broadcast %cst_54 : f32 to vector<32x1xf32>
    %151 = arith.divf %149, %150 : vector<32x1xf32>
    %152 = vector.broadcast %144 : vector<32x1xf32> to vector<32x128xf32>
    %153 = arith.subf %138, %152 : vector<32x128xf32>
    %cst_55 = arith.constant 1.000000e-07 : f32
    %154 = vector.broadcast %cst_55 : f32 to vector<32x1xf32>
    %155 = arith.addf %151, %154 : vector<32x1xf32>
    %156 = math.rsqrt %155 : vector<32x1xf32>
    %157 = vector.broadcast %156 : vector<32x1xf32> to vector<32x128xf32>
    %158 = arith.mulf %153, %157 : vector<32x128xf32>
    %159 = vector.broadcast %139 : vector<1x128xf32> to vector<32x128xf32>
    %160 = arith.mulf %158, %159 : vector<32x128xf32>
    %161 = vector.broadcast %140 : vector<1x128xf32> to vector<32x128xf32>
    %162 = arith.addf %160, %161 : vector<32x128xf32>
    %163 = arith.truncf %162 : vector<32x128xf32> to vector<32x128xbf16>
    %c0_56 = arith.constant 0 : index
    %c0_57 = arith.constant 0 : index
    %164 = vector.load %arg10[%c0_56, %c0_57] : memref<128x256xbf16, #tpu.memory_space<vmem>>, vector<128x256xbf16>
    %cst_58 = arith.constant dense<0.000000e+00> : vector<32x256xf32>
    %165 = tpu.matmul %163, %164, %cst_58 {dimension_numbers = #tpu.dot_dimension_numbers<[1], [0], [0], [1], [0, 0, 1, 1], [], []>} : vector<32x128xbf16>, vector<128x256xbf16>, vector<32x256xf32> -> vector<32x256xf32>
    %c0_59 = arith.constant 0 : index
    %c0_60 = arith.constant 0 : index
    %166 = vector.load %arg11[%c0_59, %c0_60] : memref<1x256xf32, #tpu.memory_space<vmem>>, vector<1x256xf32>
    %167 = vector.broadcast %166 : vector<1x256xf32> to vector<32x256xf32>
    %168 = arith.addf %165, %167 : vector<32x256xf32>
    %cst_61 = arith.constant 5.000000e-01 : f32
    %169 = vector.broadcast %cst_61 : f32 to vector<32x256xf32>
    %170 = arith.mulf %169, %168 : vector<32x256xf32>
    %cst_62 = arith.constant 4.471500e-02 : f32
    %171 = vector.broadcast %cst_62 : f32 to vector<32x256xf32>
    %172 = arith.mulf %171, %168 : vector<32x256xf32>
    %173 = arith.mulf %172, %168 : vector<32x256xf32>
    %174 = arith.mulf %173, %168 : vector<32x256xf32>
    %175 = arith.addf %168, %174 : vector<32x256xf32>
    %cst_63 = arith.constant 0.797884583 : f32
    %176 = vector.broadcast %cst_63 : f32 to vector<32x256xf32>
    %177 = arith.mulf %176, %175 : vector<32x256xf32>
    %178 = math.tanh %177 : vector<32x256xf32>
    %cst_64 = arith.constant 1.000000e+00 : f32
    %179 = vector.broadcast %cst_64 : f32 to vector<32x256xf32>
    %180 = arith.addf %179, %178 : vector<32x256xf32>
    %181 = arith.mulf %170, %180 : vector<32x256xf32>
    %182 = arith.truncf %181 : vector<32x256xf32> to vector<32x256xbf16>
    %c0_65 = arith.constant 0 : index
    %c0_66 = arith.constant 0 : index
    %183 = vector.load %arg12[%c0_65, %c0_66] : memref<256x128xbf16, #tpu.memory_space<vmem>>, vector<256x128xbf16>
    %cst_67 = arith.constant dense<0.000000e+00> : vector<32x128xf32>
    %184 = tpu.matmul %182, %183, %cst_67 {dimension_numbers = #tpu.dot_dimension_numbers<[1], [0], [0], [1], [0, 0, 1, 1], [], []>} : vector<32x256xbf16>, vector<256x128xbf16>, vector<32x128xf32> -> vector<32x128xf32>
    %c0_68 = arith.constant 0 : index
    %c0_69 = arith.constant 0 : index
    %185 = vector.load %arg13[%c0_68, %c0_69] : memref<1x128xf32, #tpu.memory_space<vmem>>, vector<1x128xf32>
    %186 = vector.broadcast %185 : vector<1x128xf32> to vector<32x128xf32>
    %187 = arith.addf %184, %186 : vector<32x128xf32>
    %188 = arith.addf %162, %187 : vector<32x128xf32>
    %c0_70 = arith.constant 0 : index
    %c0_71 = arith.constant 0 : index
    %189 = vector.load %arg14[%c0_70, %c0_71] : memref<1x128xf32, #tpu.memory_space<vmem>>, vector<1x128xf32>
    %c0_72 = arith.constant 0 : index
    %c0_73 = arith.constant 0 : index
    %190 = vector.load %arg15[%c0_72, %c0_73] : memref<1x128xf32, #tpu.memory_space<vmem>>, vector<1x128xf32>
    %cst_74 = arith.constant dense<0.000000e+00> : vector<32xf32>
    %191 = vector.multi_reduction <add>, %188, %cst_74 [1] : vector<32x128xf32> to vector<32xf32>
    %192 = vector.shape_cast %191 : vector<32xf32> to vector<32x1xf32>
    %cst_75 = arith.constant 1.280000e+02 : f32
    %193 = vector.broadcast %cst_75 : f32 to vector<32x1xf32>
    %194 = arith.divf %192, %193 : vector<32x1xf32>
    %195 = vector.broadcast %194 : vector<32x1xf32> to vector<32x128xf32>
    %196 = arith.subf %188, %195 : vector<32x128xf32>
    %197 = arith.mulf %196, %196 : vector<32x128xf32>
    %cst_76 = arith.constant dense<0.000000e+00> : vector<32xf32>
    %198 = vector.multi_reduction <add>, %197, %cst_76 [1] : vector<32x128xf32> to vector<32xf32>
    %199 = vector.shape_cast %198 : vector<32xf32> to vector<32x1xf32>
    %cst_77 = arith.constant 1.280000e+02 : f32
    %200 = vector.broadcast %cst_77 : f32 to vector<32x1xf32>
    %201 = arith.divf %199, %200 : vector<32x1xf32>
    %202 = vector.broadcast %194 : vector<32x1xf32> to vector<32x128xf32>
    %203 = arith.subf %188, %202 : vector<32x128xf32>
    %cst_78 = arith.constant 1.000000e-07 : f32
    %204 = vector.broadcast %cst_78 : f32 to vector<32x1xf32>
    %205 = arith.addf %201, %204 : vector<32x1xf32>
    %206 = math.rsqrt %205 : vector<32x1xf32>
    %207 = vector.broadcast %206 : vector<32x1xf32> to vector<32x128xf32>
    %208 = arith.mulf %203, %207 : vector<32x128xf32>
    %209 = vector.broadcast %189 : vector<1x128xf32> to vector<32x128xf32>
    %210 = arith.mulf %208, %209 : vector<32x128xf32>
    %211 = vector.broadcast %190 : vector<1x128xf32> to vector<32x128xf32>
    %212 = arith.addf %210, %211 : vector<32x128xf32>
    %213 = arith.truncf %212 : vector<32x128xf32> to vector<32x128xbf16>
    %c0_79 = arith.constant 0 : index
    %c0_80 = arith.constant 0 : index
    %214 = vector.load %arg16[%c0_79, %c0_80] : memref<128x384xbf16, #tpu.memory_space<vmem>>, vector<128x384xbf16>
    %cst_81 = arith.constant dense<0.000000e+00> : vector<32x384xf32>
    %215 = tpu.matmul %213, %214, %cst_81 {dimension_numbers = #tpu.dot_dimension_numbers<[1], [0], [0], [1], [0, 0, 1, 1], [], []>} : vector<32x128xbf16>, vector<128x384xbf16>, vector<32x384xf32> -> vector<32x384xf32>
    %c0_82 = arith.constant 0 : index
    %c0_83 = arith.constant 0 : index
    %216 = vector.load %arg17[%c0_82, %c0_83] : memref<1x384xf32, #tpu.memory_space<vmem>>, vector<1x384xf32>
    %217 = vector.broadcast %216 : vector<1x384xf32> to vector<32x384xf32>
    %218 = arith.addf %215, %217 : vector<32x384xf32>
    %219 = vector.extract_strided_slice %218 {offsets = [0, 0], sizes = [32, 32], strides = [1, 1]} : vector<32x384xf32> to vector<32x32xf32>
    %220 = vector.extract_strided_slice %218 {offsets = [0, 128], sizes = [32, 32], strides = [1, 1]} : vector<32x384xf32> to vector<32x32xf32>
    %221 = vector.extract_strided_slice %218 {offsets = [0, 256], sizes = [32, 32], strides = [1, 1]} : vector<32x384xf32> to vector<32x32xf32>
    %222 = arith.truncf %219 : vector<32x32xf32> to vector<32x32xbf16>
    %223 = arith.truncf %220 : vector<32x32xf32> to vector<32x32xbf16>
    %cst_84 = arith.constant dense<0.000000e+00> : vector<32x32xf32>
    %224 = tpu.matmul %222, %223, %cst_84 {dimension_numbers = #tpu.dot_dimension_numbers<[1], [1], [0], [0], [0, 0, 1, 0], [], []>} : vector<32x32xbf16>, vector<32x32xbf16>, vector<32x32xf32> -> vector<32x32xf32>
    %cst_85 = arith.constant 0.176776692 : f32
    %225 = vector.broadcast %cst_85 : f32 to vector<32x32xf32>
    %226 = arith.mulf %224, %225 : vector<32x32xf32>
    %227 = arith.addf %226, %0 : vector<32x32xf32>
    %cst_86 = arith.constant dense<0xFF800000> : vector<32xf32>
    %228 = vector.multi_reduction <maximumf>, %227, %cst_86 [1] : vector<32x32xf32> to vector<32xf32>
    %229 = vector.shape_cast %228 : vector<32xf32> to vector<32x1xf32>
    %230 = vector.broadcast %229 : vector<32x1xf32> to vector<32x32xf32>
    %231 = arith.subf %227, %230 : vector<32x32xf32>
    %232 = math.exp %231 : vector<32x32xf32>
    %cst_87 = arith.constant dense<0.000000e+00> : vector<32xf32>
    %233 = vector.multi_reduction <add>, %232, %cst_87 [1] : vector<32x32xf32> to vector<32xf32>
    %234 = vector.shape_cast %233 : vector<32xf32> to vector<32x1xf32>
    %235 = tpu.reciprocal %234 {approx = true} : vector<32x1xf32> -> vector<32x1xf32>
    %236 = vector.broadcast %235 : vector<32x1xf32> to vector<32x32xf32>
    %237 = arith.mulf %232, %236 : vector<32x32xf32>
    %238 = arith.truncf %237 : vector<32x32xf32> to vector<32x32xbf16>
    %239 = arith.truncf %221 : vector<32x32xf32> to vector<32x32xbf16>
    %cst_88 = arith.constant dense<0.000000e+00> : vector<32x32xf32>
    %240 = tpu.matmul %238, %239, %cst_88 {dimension_numbers = #tpu.dot_dimension_numbers<[1], [0], [0], [1], [0, 0, 1, 1], [], []>} : vector<32x32xbf16>, vector<32x32xbf16>, vector<32x32xf32> -> vector<32x32xf32>
    %241 = arith.truncf %240 : vector<32x32xf32> to vector<32x32xbf16>
    %c0_89 = arith.constant 0 : index
    %c0_90 = arith.constant 0 : index
    %242 = vector.load %arg18[%c0_89, %c0_90] : memref<128x128xbf16, #tpu.memory_space<vmem>>, vector<32x128xbf16>
    %cst_91 = arith.constant dense<0.000000e+00> : vector<32x128xf32>
    %243 = tpu.matmul %241, %242, %cst_91 {dimension_numbers = #tpu.dot_dimension_numbers<[1], [0], [0], [1], [0, 0, 1, 1], [], []>} : vector<32x32xbf16>, vector<32x128xbf16>, vector<32x128xf32> -> vector<32x128xf32>
    %244 = vector.extract_strided_slice %218 {offsets = [0, 32], sizes = [32, 32], strides = [1, 1]} : vector<32x384xf32> to vector<32x32xf32>
    %245 = vector.extract_strided_slice %218 {offsets = [0, 160], sizes = [32, 32], strides = [1, 1]} : vector<32x384xf32> to vector<32x32xf32>
    %246 = vector.extract_strided_slice %218 {offsets = [0, 288], sizes = [32, 32], strides = [1, 1]} : vector<32x384xf32> to vector<32x32xf32>
    %247 = arith.truncf %244 : vector<32x32xf32> to vector<32x32xbf16>
    %248 = arith.truncf %245 : vector<32x32xf32> to vector<32x32xbf16>
    %cst_92 = arith.constant dense<0.000000e+00> : vector<32x32xf32>
    %249 = tpu.matmul %247, %248, %cst_92 {dimension_numbers = #tpu.dot_dimension_numbers<[1], [1], [0], [0], [0, 0, 1, 0], [], []>} : vector<32x32xbf16>, vector<32x32xbf16>, vector<32x32xf32> -> vector<32x32xf32>
    %cst_93 = arith.constant 0.176776692 : f32
    %250 = vector.broadcast %cst_93 : f32 to vector<32x32xf32>
    %251 = arith.mulf %249, %250 : vector<32x32xf32>
    %252 = arith.addf %251, %0 : vector<32x32xf32>
    %cst_94 = arith.constant dense<0xFF800000> : vector<32xf32>
    %253 = vector.multi_reduction <maximumf>, %252, %cst_94 [1] : vector<32x32xf32> to vector<32xf32>
    %254 = vector.shape_cast %253 : vector<32xf32> to vector<32x1xf32>
    %255 = vector.broadcast %254 : vector<32x1xf32> to vector<32x32xf32>
    %256 = arith.subf %252, %255 : vector<32x32xf32>
    %257 = math.exp %256 : vector<32x32xf32>
    %cst_95 = arith.constant dense<0.000000e+00> : vector<32xf32>
    %258 = vector.multi_reduction <add>, %257, %cst_95 [1] : vector<32x32xf32> to vector<32xf32>
    %259 = vector.shape_cast %258 : vector<32xf32> to vector<32x1xf32>
    %260 = tpu.reciprocal %259 {approx = true} : vector<32x1xf32> -> vector<32x1xf32>
    %261 = vector.broadcast %260 : vector<32x1xf32> to vector<32x32xf32>
    %262 = arith.mulf %257, %261 : vector<32x32xf32>
    %263 = arith.truncf %262 : vector<32x32xf32> to vector<32x32xbf16>
    %264 = arith.truncf %246 : vector<32x32xf32> to vector<32x32xbf16>
    %cst_96 = arith.constant dense<0.000000e+00> : vector<32x32xf32>
    %265 = tpu.matmul %263, %264, %cst_96 {dimension_numbers = #tpu.dot_dimension_numbers<[1], [0], [0], [1], [0, 0, 1, 1], [], []>} : vector<32x32xbf16>, vector<32x32xbf16>, vector<32x32xf32> -> vector<32x32xf32>
    %266 = arith.truncf %265 : vector<32x32xf32> to vector<32x32xbf16>
    %c32_97 = arith.constant 32 : index
    %c0_98 = arith.constant 0 : index
    %267 = vector.load %arg18[%c32_97, %c0_98] : memref<128x128xbf16, #tpu.memory_space<vmem>>, vector<32x128xbf16>
    %cst_99 = arith.constant dense<0.000000e+00> : vector<32x128xf32>
    %268 = tpu.matmul %266, %267, %cst_99 {dimension_numbers = #tpu.dot_dimension_numbers<[1], [0], [0], [1], [0, 0, 1, 1], [], []>} : vector<32x32xbf16>, vector<32x128xbf16>, vector<32x128xf32> -> vector<32x128xf32>
    %269 = arith.addf %243, %268 : vector<32x128xf32>
    %270 = vector.extract_strided_slice %218 {offsets = [0, 64], sizes = [32, 32], strides = [1, 1]} : vector<32x384xf32> to vector<32x32xf32>
    %271 = vector.extract_strided_slice %218 {offsets = [0, 192], sizes = [32, 32], strides = [1, 1]} : vector<32x384xf32> to vector<32x32xf32>
    %272 = vector.extract_strided_slice %218 {offsets = [0, 320], sizes = [32, 32], strides = [1, 1]} : vector<32x384xf32> to vector<32x32xf32>
    %273 = arith.truncf %270 : vector<32x32xf32> to vector<32x32xbf16>
    %274 = arith.truncf %271 : vector<32x32xf32> to vector<32x32xbf16>
    %cst_100 = arith.constant dense<0.000000e+00> : vector<32x32xf32>
    %275 = tpu.matmul %273, %274, %cst_100 {dimension_numbers = #tpu.dot_dimension_numbers<[1], [1], [0], [0], [0, 0, 1, 0], [], []>} : vector<32x32xbf16>, vector<32x32xbf16>, vector<32x32xf32> -> vector<32x32xf32>
    %cst_101 = arith.constant 0.176776692 : f32
    %276 = vector.broadcast %cst_101 : f32 to vector<32x32xf32>
    %277 = arith.mulf %275, %276 : vector<32x32xf32>
    %278 = arith.addf %277, %0 : vector<32x32xf32>
    %cst_102 = arith.constant dense<0xFF800000> : vector<32xf32>
    %279 = vector.multi_reduction <maximumf>, %278, %cst_102 [1] : vector<32x32xf32> to vector<32xf32>
    %280 = vector.shape_cast %279 : vector<32xf32> to vector<32x1xf32>
    %281 = vector.broadcast %280 : vector<32x1xf32> to vector<32x32xf32>
    %282 = arith.subf %278, %281 : vector<32x32xf32>
    %283 = math.exp %282 : vector<32x32xf32>
    %cst_103 = arith.constant dense<0.000000e+00> : vector<32xf32>
    %284 = vector.multi_reduction <add>, %283, %cst_103 [1] : vector<32x32xf32> to vector<32xf32>
    %285 = vector.shape_cast %284 : vector<32xf32> to vector<32x1xf32>
    %286 = tpu.reciprocal %285 {approx = true} : vector<32x1xf32> -> vector<32x1xf32>
    %287 = vector.broadcast %286 : vector<32x1xf32> to vector<32x32xf32>
    %288 = arith.mulf %283, %287 : vector<32x32xf32>
    %289 = arith.truncf %288 : vector<32x32xf32> to vector<32x32xbf16>
    %290 = arith.truncf %272 : vector<32x32xf32> to vector<32x32xbf16>
    %cst_104 = arith.constant dense<0.000000e+00> : vector<32x32xf32>
    %291 = tpu.matmul %289, %290, %cst_104 {dimension_numbers = #tpu.dot_dimension_numbers<[1], [0], [0], [1], [0, 0, 1, 1], [], []>} : vector<32x32xbf16>, vector<32x32xbf16>, vector<32x32xf32> -> vector<32x32xf32>
    %292 = arith.truncf %291 : vector<32x32xf32> to vector<32x32xbf16>
    %c64_105 = arith.constant 64 : index
    %c0_106 = arith.constant 0 : index
    %293 = vector.load %arg18[%c64_105, %c0_106] : memref<128x128xbf16, #tpu.memory_space<vmem>>, vector<32x128xbf16>
    %cst_107 = arith.constant dense<0.000000e+00> : vector<32x128xf32>
    %294 = tpu.matmul %292, %293, %cst_107 {dimension_numbers = #tpu.dot_dimension_numbers<[1], [0], [0], [1], [0, 0, 1, 1], [], []>} : vector<32x32xbf16>, vector<32x128xbf16>, vector<32x128xf32> -> vector<32x128xf32>
    %295 = arith.addf %269, %294 : vector<32x128xf32>
    %296 = vector.extract_strided_slice %218 {offsets = [0, 96], sizes = [32, 32], strides = [1, 1]} : vector<32x384xf32> to vector<32x32xf32>
    %297 = vector.extract_strided_slice %218 {offsets = [0, 224], sizes = [32, 32], strides = [1, 1]} : vector<32x384xf32> to vector<32x32xf32>
    %298 = vector.extract_strided_slice %218 {offsets = [0, 352], sizes = [32, 32], strides = [1, 1]} : vector<32x384xf32> to vector<32x32xf32>
    %299 = arith.truncf %296 : vector<32x32xf32> to vector<32x32xbf16>
    %300 = arith.truncf %297 : vector<32x32xf32> to vector<32x32xbf16>
    %cst_108 = arith.constant dense<0.000000e+00> : vector<32x32xf32>
    %301 = tpu.matmul %299, %300, %cst_108 {dimension_numbers = #tpu.dot_dimension_numbers<[1], [1], [0], [0], [0, 0, 1, 0], [], []>} : vector<32x32xbf16>, vector<32x32xbf16>, vector<32x32xf32> -> vector<32x32xf32>
    %cst_109 = arith.constant 0.176776692 : f32
    %302 = vector.broadcast %cst_109 : f32 to vector<32x32xf32>
    %303 = arith.mulf %301, %302 : vector<32x32xf32>
    %304 = arith.addf %303, %0 : vector<32x32xf32>
    %cst_110 = arith.constant dense<0xFF800000> : vector<32xf32>
    %305 = vector.multi_reduction <maximumf>, %304, %cst_110 [1] : vector<32x32xf32> to vector<32xf32>
    %306 = vector.shape_cast %305 : vector<32xf32> to vector<32x1xf32>
    %307 = vector.broadcast %306 : vector<32x1xf32> to vector<32x32xf32>
    %308 = arith.subf %304, %307 : vector<32x32xf32>
    %309 = math.exp %308 : vector<32x32xf32>
    %cst_111 = arith.constant dense<0.000000e+00> : vector<32xf32>
    %310 = vector.multi_reduction <add>, %309, %cst_111 [1] : vector<32x32xf32> to vector<32xf32>
    %311 = vector.shape_cast %310 : vector<32xf32> to vector<32x1xf32>
    %312 = tpu.reciprocal %311 {approx = true} : vector<32x1xf32> -> vector<32x1xf32>
    %313 = vector.broadcast %312 : vector<32x1xf32> to vector<32x32xf32>
    %314 = arith.mulf %309, %313 : vector<32x32xf32>
    %315 = arith.truncf %314 : vector<32x32xf32> to vector<32x32xbf16>
    %316 = arith.truncf %298 : vector<32x32xf32> to vector<32x32xbf16>
    %cst_112 = arith.constant dense<0.000000e+00> : vector<32x32xf32>
    %317 = tpu.matmul %315, %316, %cst_112 {dimension_numbers = #tpu.dot_dimension_numbers<[1], [0], [0], [1], [0, 0, 1, 1], [], []>} : vector<32x32xbf16>, vector<32x32xbf16>, vector<32x32xf32> -> vector<32x32xf32>
    %318 = arith.truncf %317 : vector<32x32xf32> to vector<32x32xbf16>
    %c96_113 = arith.constant 96 : index
    %c0_114 = arith.constant 0 : index
    %319 = vector.load %arg18[%c96_113, %c0_114] : memref<128x128xbf16, #tpu.memory_space<vmem>>, vector<32x128xbf16>
    %cst_115 = arith.constant dense<0.000000e+00> : vector<32x128xf32>
    %320 = tpu.matmul %318, %319, %cst_115 {dimension_numbers = #tpu.dot_dimension_numbers<[1], [0], [0], [1], [0, 0, 1, 1], [], []>} : vector<32x32xbf16>, vector<32x128xbf16>, vector<32x128xf32> -> vector<32x128xf32>
    %321 = arith.addf %295, %320 : vector<32x128xf32>
    %c0_116 = arith.constant 0 : index
    %c0_117 = arith.constant 0 : index
    %322 = vector.load %arg19[%c0_116, %c0_117] : memref<1x128xf32, #tpu.memory_space<vmem>>, vector<1x128xf32>
    %323 = vector.broadcast %322 : vector<1x128xf32> to vector<32x128xf32>
    %324 = arith.addf %321, %323 : vector<32x128xf32>
    %325 = arith.addf %212, %324 : vector<32x128xf32>
    %c0_118 = arith.constant 0 : index
    %c0_119 = arith.constant 0 : index
    %326 = vector.load %arg20[%c0_118, %c0_119] : memref<1x128xf32, #tpu.memory_space<vmem>>, vector<1x128xf32>
    %c0_120 = arith.constant 0 : index
    %c0_121 = arith.constant 0 : index
    %327 = vector.load %arg21[%c0_120, %c0_121] : memref<1x128xf32, #tpu.memory_space<vmem>>, vector<1x128xf32>
    %cst_122 = arith.constant dense<0.000000e+00> : vector<32xf32>
    %328 = vector.multi_reduction <add>, %325, %cst_122 [1] : vector<32x128xf32> to vector<32xf32>
    %329 = vector.shape_cast %328 : vector<32xf32> to vector<32x1xf32>
    %cst_123 = arith.constant 1.280000e+02 : f32
    %330 = vector.broadcast %cst_123 : f32 to vector<32x1xf32>
    %331 = arith.divf %329, %330 : vector<32x1xf32>
    %332 = vector.broadcast %331 : vector<32x1xf32> to vector<32x128xf32>
    %333 = arith.subf %325, %332 : vector<32x128xf32>
    %334 = arith.mulf %333, %333 : vector<32x128xf32>
    %cst_124 = arith.constant dense<0.000000e+00> : vector<32xf32>
    %335 = vector.multi_reduction <add>, %334, %cst_124 [1] : vector<32x128xf32> to vector<32xf32>
    %336 = vector.shape_cast %335 : vector<32xf32> to vector<32x1xf32>
    %cst_125 = arith.constant 1.280000e+02 : f32
    %337 = vector.broadcast %cst_125 : f32 to vector<32x1xf32>
    %338 = arith.divf %336, %337 : vector<32x1xf32>
    %339 = vector.broadcast %331 : vector<32x1xf32> to vector<32x128xf32>
    %340 = arith.subf %325, %339 : vector<32x128xf32>
    %cst_126 = arith.constant 1.000000e-07 : f32
    %341 = vector.broadcast %cst_126 : f32 to vector<32x1xf32>
    %342 = arith.addf %338, %341 : vector<32x1xf32>
    %343 = math.rsqrt %342 : vector<32x1xf32>
    %344 = vector.broadcast %343 : vector<32x1xf32> to vector<32x128xf32>
    %345 = arith.mulf %340, %344 : vector<32x128xf32>
    %346 = vector.broadcast %326 : vector<1x128xf32> to vector<32x128xf32>
    %347 = arith.mulf %345, %346 : vector<32x128xf32>
    %348 = vector.broadcast %327 : vector<1x128xf32> to vector<32x128xf32>
    %349 = arith.addf %347, %348 : vector<32x128xf32>
    %350 = arith.truncf %349 : vector<32x128xf32> to vector<32x128xbf16>
    %c0_127 = arith.constant 0 : index
    %c0_128 = arith.constant 0 : index
    %351 = vector.load %arg22[%c0_127, %c0_128] : memref<128x256xbf16, #tpu.memory_space<vmem>>, vector<128x256xbf16>
    %cst_129 = arith.constant dense<0.000000e+00> : vector<32x256xf32>
    %352 = tpu.matmul %350, %351, %cst_129 {dimension_numbers = #tpu.dot_dimension_numbers<[1], [0], [0], [1], [0, 0, 1, 1], [], []>} : vector<32x128xbf16>, vector<128x256xbf16>, vector<32x256xf32> -> vector<32x256xf32>
    %c0_130 = arith.constant 0 : index
    %c0_131 = arith.constant 0 : index
    %353 = vector.load %arg23[%c0_130, %c0_131] : memref<1x256xf32, #tpu.memory_space<vmem>>, vector<1x256xf32>
    %354 = vector.broadcast %353 : vector<1x256xf32> to vector<32x256xf32>
    %355 = arith.addf %352, %354 : vector<32x256xf32>
    %cst_132 = arith.constant 5.000000e-01 : f32
    %356 = vector.broadcast %cst_132 : f32 to vector<32x256xf32>
    %357 = arith.mulf %356, %355 : vector<32x256xf32>
    %cst_133 = arith.constant 4.471500e-02 : f32
    %358 = vector.broadcast %cst_133 : f32 to vector<32x256xf32>
    %359 = arith.mulf %358, %355 : vector<32x256xf32>
    %360 = arith.mulf %359, %355 : vector<32x256xf32>
    %361 = arith.mulf %360, %355 : vector<32x256xf32>
    %362 = arith.addf %355, %361 : vector<32x256xf32>
    %cst_134 = arith.constant 0.797884583 : f32
    %363 = vector.broadcast %cst_134 : f32 to vector<32x256xf32>
    %364 = arith.mulf %363, %362 : vector<32x256xf32>
    %365 = math.tanh %364 : vector<32x256xf32>
    %cst_135 = arith.constant 1.000000e+00 : f32
    %366 = vector.broadcast %cst_135 : f32 to vector<32x256xf32>
    %367 = arith.addf %366, %365 : vector<32x256xf32>
    %368 = arith.mulf %357, %367 : vector<32x256xf32>
    %369 = arith.truncf %368 : vector<32x256xf32> to vector<32x256xbf16>
    %c0_136 = arith.constant 0 : index
    %c0_137 = arith.constant 0 : index
    %370 = vector.load %arg24[%c0_136, %c0_137] : memref<256x128xbf16, #tpu.memory_space<vmem>>, vector<256x128xbf16>
    %cst_138 = arith.constant dense<0.000000e+00> : vector<32x128xf32>
    %371 = tpu.matmul %369, %370, %cst_138 {dimension_numbers = #tpu.dot_dimension_numbers<[1], [0], [0], [1], [0, 0, 1, 1], [], []>} : vector<32x256xbf16>, vector<256x128xbf16>, vector<32x128xf32> -> vector<32x128xf32>
    %c0_139 = arith.constant 0 : index
    %c0_140 = arith.constant 0 : index
    %372 = vector.load %arg25[%c0_139, %c0_140] : memref<1x128xf32, #tpu.memory_space<vmem>>, vector<1x128xf32>
    %373 = vector.broadcast %372 : vector<1x128xf32> to vector<32x128xf32>
    %374 = arith.addf %371, %373 : vector<32x128xf32>
    %375 = arith.addf %349, %374 : vector<32x128xf32>
    %c0_141 = arith.constant 0 : index
    %c0_142 = arith.constant 0 : index
    %376 = vector.load %arg26[%c0_141, %c0_142] : memref<1x128xf32, #tpu.memory_space<vmem>>, vector<1x128xf32>
    %c0_143 = arith.constant 0 : index
    %c0_144 = arith.constant 0 : index
    %377 = vector.load %arg27[%c0_143, %c0_144] : memref<1x128xf32, #tpu.memory_space<vmem>>, vector<1x128xf32>
    %cst_145 = arith.constant dense<0.000000e+00> : vector<32xf32>
    %378 = vector.multi_reduction <add>, %375, %cst_145 [1] : vector<32x128xf32> to vector<32xf32>
    %379 = vector.shape_cast %378 : vector<32xf32> to vector<32x1xf32>
    %cst_146 = arith.constant 1.280000e+02 : f32
    %380 = vector.broadcast %cst_146 : f32 to vector<32x1xf32>
    %381 = arith.divf %379, %380 : vector<32x1xf32>
    %382 = vector.broadcast %381 : vector<32x1xf32> to vector<32x128xf32>
    %383 = arith.subf %375, %382 : vector<32x128xf32>
    %384 = arith.mulf %383, %383 : vector<32x128xf32>
    %cst_147 = arith.constant dense<0.000000e+00> : vector<32xf32>
    %385 = vector.multi_reduction <add>, %384, %cst_147 [1] : vector<32x128xf32> to vector<32xf32>
    %386 = vector.shape_cast %385 : vector<32xf32> to vector<32x1xf32>
    %cst_148 = arith.constant 1.280000e+02 : f32
    %387 = vector.broadcast %cst_148 : f32 to vector<32x1xf32>
    %388 = arith.divf %386, %387 : vector<32x1xf32>
    %389 = vector.broadcast %381 : vector<32x1xf32> to vector<32x128xf32>
    %390 = arith.subf %375, %389 : vector<32x128xf32>
    %cst_149 = arith.constant 1.000000e-07 : f32
    %391 = vector.broadcast %cst_149 : f32 to vector<32x1xf32>
    %392 = arith.addf %388, %391 : vector<32x1xf32>
    %393 = math.rsqrt %392 : vector<32x1xf32>
    %394 = vector.broadcast %393 : vector<32x1xf32> to vector<32x128xf32>
    %395 = arith.mulf %390, %394 : vector<32x128xf32>
    %396 = vector.broadcast %376 : vector<1x128xf32> to vector<32x128xf32>
    %397 = arith.mulf %395, %396 : vector<32x128xf32>
    %398 = vector.broadcast %377 : vector<1x128xf32> to vector<32x128xf32>
    %399 = arith.addf %397, %398 : vector<32x128xf32>
    %400 = arith.truncf %399 : vector<32x128xf32> to vector<32x128xbf16>
    %c0_150 = arith.constant 0 : index
    %c0_151 = arith.constant 0 : index
    %401 = vector.load %arg28[%c0_150, %c0_151] : memref<128x128xbf16, #tpu.memory_space<vmem>>, vector<128x128xbf16>
    %cst_152 = arith.constant dense<0.000000e+00> : vector<32x128xf32>
    %402 = tpu.matmul %400, %401, %cst_152 {dimension_numbers = #tpu.dot_dimension_numbers<[1], [0], [0], [1], [0, 0, 1, 1], [], []>} : vector<32x128xbf16>, vector<128x128xbf16>, vector<32x128xf32> -> vector<32x128xf32>
    %c0_153 = arith.constant 0 : index
    %c0_154 = arith.constant 0 : index
    %403 = vector.load %arg29[%c0_153, %c0_154] : memref<1x128xf32, #tpu.memory_space<vmem>>, vector<1x128xf32>
    %404 = vector.broadcast %403 : vector<1x128xf32> to vector<32x128xf32>
    %405 = arith.addf %402, %404 : vector<32x128xf32>
    %406 = math.tanh %405 : vector<32x128xf32>
    %c0_155 = arith.constant 0 : index
    %c0_156 = arith.constant 0 : index
    %407 = vector.load %arg30[%c0_155, %c0_156] : memref<1x128xf32, #tpu.memory_space<vmem>>, vector<1x128xf32>
    %408 = vector.broadcast %407 : vector<1x128xf32> to vector<32x128xf32>
    %409 = arith.mulf %406, %408 : vector<32x128xf32>
    %cst_157 = arith.constant dense<0.000000e+00> : vector<32xf32>
    %410 = vector.multi_reduction <add>, %409, %cst_157 [1] : vector<32x128xf32> to vector<32xf32>
    %411 = vector.shape_cast %410 : vector<32xf32> to vector<32x1xf32>
    %412 = vector.extract_strided_slice %399 {offsets = [0, 0], sizes = [16, 128], strides = [1, 1]} : vector<32x128xf32> to vector<16x128xf32>
    %413 = vector.extract_strided_slice %411 {offsets = [0, 0], sizes = [16, 1], strides = [1, 1]} : vector<32x1xf32> to vector<16x1xf32>
    %cst_158 = arith.constant dense<0xFF800000> : vector<1xf32>
    %414 = vector.multi_reduction <maximumf>, %413, %cst_158 [0] : vector<16x1xf32> to vector<1xf32>
    %415 = vector.shape_cast %414 : vector<1xf32> to vector<1x1xf32>
    %416 = vector.broadcast %415 : vector<1x1xf32> to vector<16x1xf32>
    %417 = arith.subf %413, %416 : vector<16x1xf32>
    %418 = math.exp %417 : vector<16x1xf32>
    %cst_159 = arith.constant dense<0.000000e+00> : vector<1xf32>
    %419 = vector.multi_reduction <add>, %418, %cst_159 [0] : vector<16x1xf32> to vector<1xf32>
    %420 = vector.shape_cast %419 : vector<1xf32> to vector<1x1xf32>
    %421 = tpu.reciprocal %420 {approx = true} : vector<1x1xf32> -> vector<1x1xf32>
    %422 = vector.broadcast %421 : vector<1x1xf32> to vector<16x1xf32>
    %423 = arith.mulf %418, %422 : vector<16x1xf32>
    %424 = vector.broadcast %423 : vector<16x1xf32> to vector<16x128xf32>
    %425 = arith.mulf %424, %412 : vector<16x128xf32>
    %cst_160 = arith.constant dense<0.000000e+00> : vector<128xf32>
    %426 = vector.multi_reduction <add>, %425, %cst_160 [0] : vector<16x128xf32> to vector<128xf32>
    %427 = vector.shape_cast %426 : vector<128xf32> to vector<1x128xf32>
    %c0_161 = arith.constant 0 : index
    %c0_162 = arith.constant 0 : index
    %428 = vector.load %arg31[%c0_161, %c0_162] : memref<1x128xf32, #tpu.memory_space<vmem>>, vector<1x128xf32>
    %429 = arith.mulf %427, %428 : vector<1x128xf32>
    %cst_163 = arith.constant dense<0.000000e+00> : vector<1xf32>
    %430 = vector.multi_reduction <add>, %429, %cst_163 [1] : vector<1x128xf32> to vector<1xf32>
    %431 = vector.shape_cast %430 : vector<1xf32> to vector<1x1xf32>
    %c0_164 = arith.constant 0 : index
    %c0_165 = arith.constant 0 : index
    %432 = vector.load %arg32[%c0_164, %c0_165] : memref<1x1xf32, #tpu.memory_space<vmem>>, vector<1x1xf32>
    %433 = arith.addf %431, %432 : vector<1x1xf32>
    %434 = vector.shape_cast %433 : vector<1x1xf32> to vector<1x1xf32>
    %435 = vector.broadcast %434 : vector<1x1xf32> to vector<1x128xf32>
    %436 = vector.extract_strided_slice %399 {offsets = [16, 0], sizes = [16, 128], strides = [1, 1]} : vector<32x128xf32> to vector<16x128xf32>
    %437 = vector.extract_strided_slice %411 {offsets = [16, 0], sizes = [16, 1], strides = [1, 1]} : vector<32x1xf32> to vector<16x1xf32>
    %cst_166 = arith.constant dense<0xFF800000> : vector<1xf32>
    %438 = vector.multi_reduction <maximumf>, %437, %cst_166 [0] : vector<16x1xf32> to vector<1xf32>
    %439 = vector.shape_cast %438 : vector<1xf32> to vector<1x1xf32>
    %440 = vector.broadcast %439 : vector<1x1xf32> to vector<16x1xf32>
    %441 = arith.subf %437, %440 : vector<16x1xf32>
    %442 = math.exp %441 : vector<16x1xf32>
    %cst_167 = arith.constant dense<0.000000e+00> : vector<1xf32>
    %443 = vector.multi_reduction <add>, %442, %cst_167 [0] : vector<16x1xf32> to vector<1xf32>
    %444 = vector.shape_cast %443 : vector<1xf32> to vector<1x1xf32>
    %445 = tpu.reciprocal %444 {approx = true} : vector<1x1xf32> -> vector<1x1xf32>
    %446 = vector.broadcast %445 : vector<1x1xf32> to vector<16x1xf32>
    %447 = arith.mulf %442, %446 : vector<16x1xf32>
    %448 = vector.broadcast %447 : vector<16x1xf32> to vector<16x128xf32>
    %449 = arith.mulf %448, %436 : vector<16x128xf32>
    %cst_168 = arith.constant dense<0.000000e+00> : vector<128xf32>
    %450 = vector.multi_reduction <add>, %449, %cst_168 [0] : vector<16x128xf32> to vector<128xf32>
    %451 = vector.shape_cast %450 : vector<128xf32> to vector<1x128xf32>
    %c0_169 = arith.constant 0 : index
    %c0_170 = arith.constant 0 : index
    %452 = vector.load %arg31[%c0_169, %c0_170] : memref<1x128xf32, #tpu.memory_space<vmem>>, vector<1x128xf32>
    %453 = arith.mulf %451, %452 : vector<1x128xf32>
    %cst_171 = arith.constant dense<0.000000e+00> : vector<1xf32>
    %454 = vector.multi_reduction <add>, %453, %cst_171 [1] : vector<1x128xf32> to vector<1xf32>
    %455 = vector.shape_cast %454 : vector<1xf32> to vector<1x1xf32>
    %c0_172 = arith.constant 0 : index
    %c0_173 = arith.constant 0 : index
    %456 = vector.load %arg32[%c0_172, %c0_173] : memref<1x1xf32, #tpu.memory_space<vmem>>, vector<1x1xf32>
    %457 = arith.addf %455, %456 : vector<1x1xf32>
    %458 = vector.shape_cast %457 : vector<1x1xf32> to vector<1x1xf32>
    %459 = vector.broadcast %458 : vector<1x1xf32> to vector<1x128xf32>
    %460 = tpu.concatenate %435, %459 in 0 : vector<1x128xf32>, vector<1x128xf32> -> vector<2x128xf32>
    %c0_174 = arith.constant 0 : index
    %c0_175 = arith.constant 0 : index
    %461 = vector.load %arg33[%c0_174, %c0_175] : memref<2x128xf32, #tpu.memory_space<vmem>>, vector<2x128xf32>
    tpu.vector_store %arg33[%c0_174, %c0_175], %460 {strides = array<i32>} : memref<2x128xf32, #tpu.memory_space<vmem>>, vector<2x128xf32>,
    return
  }
}

</mosaic_0001>

<bundles_post_ra>
// kernel: mul.10
= control target key start
LH: loop header
LB: loop body
LE: loop exit
PB: predicated region body
PF: predicated region fallthrough
CT: control target
= control target key end

     0   :  { %vm7_vm0 = vcmask 130048   ;;  %vm13_vm1 = vcmask 261248   ;;  %s39_s0 = inlined_call_operand.vmem [shape: f32[2,16], index: 0, kind: input, shape index: {}]   ;;  %s40_s1 = inlined_call_operand.vmem [shape: f32[32], index: 1, kind: output, shape index: {}]  }
   0x1   :  { %v4_v0 = vld [vmem:[%s39_s0] sm:$0x3]  ;;  %s22_s0 = smov 16  }
   0x2   :  { %5 = vst [vmem:[#allocation1] sm:$0x3] %v4_v0 }
   0x9   :  { %v10_v1 = vld [vmem:[#allocation1 + $0x1] sm:$0x1]   ;;  %v6_v2 = vld [vmem:[#allocation1] sm:$0x1]  }
   0xa   :  { %11 = vrot.lane.b32.xlu0 %v10_v1, %s22_s0  ;;  %8 = vst.msk [vmem:[#allocation0] sm:$0x1] %vm7_vm0, %v6_v2  }
  0x7c   :  { %v12_v3 = vpop.permute.xlu0 %11  }
  0x7d   :  { %14 = vst.msk [vmem:[#allocation0] sm:$0x1] %vm13_vm1, %v12_v3  }
  0x84   :  { %v18_v4 = vld [vmem:[#allocation0] sm:$0x1] }
  0x85   :  { %20 = vst [vmem:[%s40_s1] sm:$0x1] %v18_v4 }

// kernel: roberta_forward.1
= control target key start
LH: loop header
LB: loop body
LE: loop exit
PB: predicated region body
PF: predicated region fallthrough
CT: control target
= control target key end

     0   :  { %s6175_s6 = smov 1   ;;  %s6176_s10 = smov 2   ;;  %s7240_s0 = inlined_call_operand.smem [shape: u32[34], index: -1, kind: input, shape index: {}] }
   0x1   :  { %s6243_s5 = sld [smem:[%s7240_s0]]   ;;  %s6177_s14 = smov 3  }
   0x2   :  { %s6248_s9 = sld [smem:[%s7240_s0 + %s6175_s6]]   ;;  %s6178_s18 = smov 4  }
   0x3   :  { %s6253_s13 = sld [smem:[%s7240_s0 + %s6176_s10]]   ;;  %s6179_s22 = smov 5  }
   0x4   :  { %s6258_s17 = sld [smem:[%s7240_s0 + %s6177_s14]]   ;;  %s6180_s26 = smov 6  }
   0x5   :  { %s6263_s21 = sld [smem:[%s7240_s0 + %s6178_s18]]   ;;  %s6181_s30 = smov 7  }
   0x6   :  { %s6268_s25 = sld [smem:[%s7240_s0 + %s6179_s22]]   ;;  %s6182_s4 = smov 8  }
   0x7   :  { %7255 = sst [smem:[#allocation49_spill]] %s6243_s5  ;;  %s6183_s10 = smov 9  }
   0x8   :  { %7256 = sst [smem:[#allocation50_spill]] %s6248_s9  ;;  %s6184_s15 = smov 10  }
   0x9   :  { %7257 = sst [smem:[#allocation51_spill]] %s6253_s13  ;;  %s6185_s20 = smov 11  }
   0xa   :  { %7258 = sst [smem:[#allocation52_spill]] %s6258_s17  ;;  %s6187_s1 = smov 13  }
   0xb   :  { %7259 = sst [smem:[#allocation53_spill]] %s6263_s21  ;;  %s6188_s7 = smov 14  }
   0xc   :  { %s6273_s29 = sld [smem:[%s7240_s0 + %s6180_s26]]   ;;  %s6186_s26 = smov 12  }
   0xd   :  { %s6278_s3 = sld [smem:[%s7240_s0 + %s6181_s30]]   ;;  %s6190_s22 = smov 16  }
   0xe   :  { %s6283_s8 = sld [smem:[%s7240_s0 + %s6182_s4]]   ;;  %s6191_s28 = smov 17  }
   0xf   :  { %s6288_s14 = sld [smem:[%s7240_s0 + %s6183_s10]]  }
  0x10   :  { %s6293_s19 = sld [smem:[%s7240_s0 + %s6184_s15]]   ;;  %s6189_s15 = smov 15  }
  0x11   :  { %s6298_s24 = sld [smem:[%s7240_s0 + %s6185_s20]]  }
  0x12   :  { %7260 = sst [smem:[#allocation54_spill]] %s6273_s29 }
  0x13   :  { %s6303_s30 = sld [smem:[%s7240_s0 + %s6186_s26]]  }
  0x14   :  { %s6308_s6 = sld [smem:[%s7240_s0 + %s6187_s1]]   ;;  %s6207_s1 = smov 33  }
  0x15   :  { %s6313_s12 = sld [smem:[%s7240_s0 + %s6188_s7]]   ;;  %s6192_s7 = smov 18  }
  0x16   :  { %7261 = sst [smem:[#allocation55_spill]] %s6293_s19 }
  0x17   :  { %s6318_s20 = sld [smem:[%s7240_s0 + %s6189_s15]]   ;;  %s6193_s15 = smov 19  }
  0x18   :  { %s6323_s27 = sld [smem:[%s7240_s0 + %s6190_s22]]   ;;  %s6194_s22 = smov 20  }
  0x19   :  { %7262 = sst [smem:[#allocation56_spill]] %s6303_s30 }
  0x1a   :  { %s6328_s4 = sld [smem:[%s7240_s0 + %s6191_s28]]   ;;  %s6195_s28 = smov 21  }
  0x1b   :  { %s6333_s30 = sld [smem:[%s7240_s0 + %s6192_s7]]   ;;  %s6196_s7 = smov 22  }
  0x1c   :  { %s6338_s19 = sld [smem:[%s7240_s0 + %s6193_s15]]   ;;  %s6197_s15 = smov 23  }
  0x1d   :  { %s6348_s29 = sld [smem:[%s7240_s0 + %s6195_s28]]   ;;  %s6199_s28 = smov 25  }
  0x1e   :  { %7263 = sst [smem:[#allocation57_spill]] %s6323_s27 }
  0x1f   :  { %s6343_s27 = sld [smem:[%s7240_s0 + %s6194_s22]]   ;;  %s6198_s22 = smov 24  }
  0x20   :  { %7264 = sst [smem:[#allocation58_spill]] %s6328_s4 }
  0x21   :  { %s6353_s9 = sld [smem:[%s7240_s0 + %s6196_s7]]   ;;  %s6200_s7 = smov 26  }
  0x22   :  { %7265 = sst [smem:[#allocation59_spill]] %s6338_s19 }
  0x23   :  { %7266 = sst [smem:[#allocation60_spill]] %s6348_s29 }
  0x24   :  { %s6358_s17 = sld [smem:[%s7240_s0 + %s6197_s15]]   ;;  %s6201_s15 = smov 27  }
  0x25   :  { %s6363_s13 = sld [smem:[%s7240_s0 + %s6198_s22]]   ;;  %s6202_s22 = smov 28  }
  0x26   :  { %s6368_s21 = sld [smem:[%s7240_s0 + %s6199_s28]]   ;;  %s6203_s28 = smov 29  }
  0x27   :  { %7267 = sst [smem:[#allocation61_spill]] %s6353_s9 }
  0x28   :  { %s6373_s9 = sld [smem:[%s7240_s0 + %s6200_s7]]   ;;  %s6204_s7 = smov 30  }
  0x29   :  { %s6378_s5 = sld [smem:[%s7240_s0 + %s6201_s15]]   ;;  %s6205_s15 = smov 31  }
  0x2a   :  { %s6388_s29 = sld [smem:[%s7240_s0 + %s6203_s28]]  }
  0x2b   :  { %7268 = sst [smem:[#allocation62_spill]] %s6363_s13 }
  0x2c   :  { %s6383_s13 = sld [smem:[%s7240_s0 + %s6202_s22]]   ;;  %s6206_s22 = smov 32  }
  0x2d   :  { %s6398_s19 = sld [smem:[%s7240_s0 + %s6205_s15]]  }
  0x2e   :  { %7269 = sst [smem:[#allocation63_spill]] %s6373_s9 }
  0x2f   :  { %s6393_s9 = sld [smem:[%s7240_s0 + %s6204_s7]]  }
  0x30   :  { %s6406_s4 = sld [smem:[%s7240_s0 + %s6207_s1]]  }
  0x32   :  { %7270 = sst [smem:[#allocation64_spill]] %s6383_s13 }
  0x33   :  { %s4537_s13 = sld [smem:[%s7240_s0 + %s6206_s22]]  }
  0x39   :  { %v72_v0 = vstv %s4537_s13 }
  0x3a   :  { %73 = vst [vmem:[#allocation2] sm:$0x1] %v72_v0 }
  0x3b   :  { %74 = vsyncpa [#allocation4], 0 }
  0x3c   :  { %75 = vsyncpa [#allocation6], 0 }
  0x3d   :  { %76 = vsyncpa [#allocation9], 0 }
  0x3e   :  { %77 = vsyncpa [#allocation12], 0 }
  0x3f   :  { %78 = vsyncpa [#allocation15], 0 }
  0x40   :  { %79 = vsyncpa [#allocation18], 0 }
  0x41   :  { %80 = vsyncpa [#allocation21], 0 }
  0x42   :  { %81 = vsyncpa [#allocation24], 0 }
  0x43   :  { %82 = vsyncpa [#allocation27], 0 }
  0x44   :  { %83 = vsyncpa [#allocation30], 0 }
  0x45   :  { %84 = vsyncpa [#allocation33], 0 }
  0x46   :  { %85 = vsyncpa [#allocation36], 0  ;;  %s6208_s7 = smov [#allocation5]   ;;  %s6209_s10 = smov [#allocation8]  }
  0x47   :  { %s114_s0 = sshll.u32 %s6208_s7, 4  ;;  %s134_s13 = sshll.u32 %s6209_s10, 4  ;;  %s115_s0 = int_to_ptr.vmem [resolvable:$true] %s114_s0  ;;  %s135_s13 = int_to_ptr.vmem [resolvable:$true] %s134_s13 }
  0x48   :  { %s5667_s11 = scalar_lea.hbm %s6278_s3, 16 }
  0x49   :  { %p5668_p0 = scmp.ne.s32.totalorder %s6278_s3, %s5667_s11  ;;  %p5671_p1 = scmp.lt.u32.totalorder %s5667_s11, %s6278_s3 }
  0x4b   :  { %p5673_p2 = pnand %p5671_p1, %p5668_p0 }
  0x4d   :  { %5676 = shalt.err (!%p5673_p2)
}
  0x4e   :  { %s5677_s15 = scalar_lea.vmem %s115_s0, 16  ;;  %s5681_s16 = scalar_lea.vmem %s115_s0, 32 }
  0x4f   :  { %p5678_p3 = scmp.ne.s32.totalorder %s115_s0, %s5677_s15  ;;  %p5682_p4 = scmp.lt.s32.totalorder %s115_s0, %s115_s0 }
  0x50   :  { %p5683_p5 = scmp.lt.s32.totalorder %s5681_s16, %s5677_s15 }
  0x52   :  { %p5684_p6 = por %p5683_p5, %p5682_p4 }
  0x54   :  { %p5685_p7 = pnand %p5684_p6, %p5678_p3 }
  0x56   :  { %5688 = shalt.err (!%p5685_p7)
}
  0x57   :  { %117 = dma.hbm_to_vmem [thread:$0]  %s6278_s3, 16, %s115_s0, [#allocation6]  }
  0x58   :  { %s5689_s18 = scalar_lea.hbm %s6288_s14, 16 }
  0x59   :  { %p5690_p8 = scmp.ne.s32.totalorder %s6288_s14, %s5689_s18  ;;  %p5693_p9 = scmp.lt.u32.totalorder %s5689_s18, %s6288_s14 }
  0x5b   :  { %p5695_p10 = pnand %p5693_p9, %p5690_p8 }
  0x5d   :  { %5698 = shalt.err (!%p5695_p10)
}
  0x5e   :  { %s5699_s22 = scalar_lea.vmem %s135_s13, 16  ;;  %s5703_s23 = scalar_lea.vmem %s135_s13, 32 }
  0x5f   :  { %p5700_p11 = scmp.ne.s32.totalorder %s135_s13, %s5699_s22  ;;  %p5704_p12 = scmp.lt.s32.totalorder %s135_s13, %s135_s13 }
  0x60   :  { %p5705_p13 = scmp.lt.s32.totalorder %s5703_s23, %s5699_s22 }
  0x62   :  { %p5706_p0 = por %p5705_p13, %p5704_p12 }
  0x64   :  { %p5707_p1 = pnand %p5706_p0, %p5700_p11 }
  0x66   :  { %5710 = shalt.err (!%p5707_p1)
}
  0x67   :  { %137 = dma.hbm_to_vmem [thread:$0]  %s6288_s14, 16, %s135_s13, [#allocation9]  }
  0x68   :  { %s6210_s26 = smov [#allocation11]   ;;  %s6211_s1 = smov [#allocation14]  }
  0x69   :  { %s158_s3 = sshll.u32 %s6210_s26, 4  ;;  %s178_s28 = sshll.u32 %s6211_s1, 4  ;;  %s159_s3 = int_to_ptr.vmem [resolvable:$true] %s158_s3  ;;  %s179_s28 = int_to_ptr.vmem [resolvable:$true] %s178_s28 }
  0x6a   :  { %s5711_s2 = scalar_lea.hbm %s6308_s6, 16 }
  0x6b   :  { %p5712_p2 = scmp.ne.s32.totalorder %s6308_s6, %s5711_s2  ;;  %p5715_p3 = scmp.lt.u32.totalorder %s5711_s2, %s6308_s6 }
  0x6d   :  { %p5717_p4 = pnand %p5715_p3, %p5712_p2 }
  0x6f   :  { %5720 = shalt.err (!%p5717_p4)
}
  0x70   :  { %s5721_s7 = scalar_lea.vmem %s159_s3, 16  ;;  %s5725_s0 = scalar_lea.vmem %s159_s3, 32 }
  0x71   :  { %p5722_p5 = scmp.ne.s32.totalorder %s159_s3, %s5721_s7  ;;  %p5726_p6 = scmp.lt.s32.totalorder %s159_s3, %s159_s3 }
  0x72   :  { %p5727_p7 = scmp.lt.s32.totalorder %s5725_s0, %s5721_s7 }
  0x74   :  { %p5728_p8 = por %p5727_p7, %p5726_p6 }
  0x76   :  { %p5729_p9 = pnand %p5728_p8, %p5722_p5 }
  0x78   :  { %5732 = shalt.err (!%p5729_p9)
}
  0x79   :  { %161 = dma.hbm_to_vmem [thread:$0]  %s6308_s6, 16, %s159_s3, [#allocation12]  }
  0x7a   :  { %s5733_s14 = scalar_lea.hbm %s6318_s20, 16 }
  0x7b   :  { %p5734_p10 = scmp.ne.s32.totalorder %s6318_s20, %s5733_s14  ;;  %p5737_p11 = scmp.lt.u32.totalorder %s5733_s14, %s6318_s20 }
  0x7d   :  { %p5739_p12 = pnand %p5737_p11, %p5734_p10 }
  0x7f   :  { %5742 = shalt.err (!%p5739_p12)
}
  0x80   :  { %s5743_s10 = scalar_lea.vmem %s179_s28, 16  ;;  %s5747_s13 = scalar_lea.vmem %s179_s28, 32 }
  0x81   :  { %p5744_p13 = scmp.ne.s32.totalorder %s179_s28, %s5743_s10  ;;  %p5748_p0 = scmp.lt.s32.totalorder %s179_s28, %s179_s28 }
  0x82   :  { %p5749_p1 = scmp.lt.s32.totalorder %s5747_s13, %s5743_s10 }
  0x84   :  { %p5750_p2 = por %p5749_p1, %p5748_p0 }
  0x86   :  { %p5751_p3 = pnand %p5750_p2, %p5744_p13 }
  0x88   :  { %5754 = shalt.err (!%p5751_p3)
}
  0x89   :  { %181 = dma.hbm_to_vmem [thread:$0]  %s6318_s20, 16, %s179_s28, [#allocation15]  }
  0x8a   :  { %s6212_s11 = smov [#allocation17]   ;;  %s5755_s15 = scalar_lea.hbm %s6333_s30, 1024 }
  0x8b   :  { %s199_s6 = sshll.u32 %s6212_s11, 4  ;;  %p5756_p4 = scmp.ne.s32.totalorder %s6333_s30, %s5755_s15  ;;  %s200_s6 = int_to_ptr.vmem [resolvable:$true] %s199_s6 }
  0x8c   :  { %p5759_p5 = scmp.lt.u32.totalorder %s5755_s15, %s6333_s30 }
  0x8e   :  { %p5761_p6 = pnand %p5759_p5, %p5756_p4 }
  0x90   :  { %5764 = shalt.err (!%p5761_p6)
}
  0x91   :  { %s5765_s16 = scalar_lea.vmem %s200_s6, 1024  ;;  %p5770_p8 = scmp.lt.s32.totalorder %s200_s6, %s200_s6 }
  0x92   :  { %p5766_p7 = scmp.ne.s32.totalorder %s200_s6, %s5765_s16  ;;  %p5771_p9 = scmp.lt.s32.totalorder %s5765_s16, %s5765_s16 }
  0x94   :  { %p5772_p10 = por %p5771_p9, %p5770_p8 }
  0x96   :  { %p5773_p11 = pnand %p5772_p10, %p5766_p7 }
  0x98   :  { %5776 = shalt.err (!%p5773_p11)
}
  0x99   :  { %s6213_s18 = smov 64   ;;  %s6214_s20 = smov 4  }
  0x9a   :  { %205 = dma.hbm_to_vmem [thread:$0]  %s6333_s30, 1024, %s200_s6, [#allocation18], %s6213_s18, %s6213_s18, %s6214_s20  }
  0x9b   :  { %s6215_s22 = smov [#allocation20]   ;;  %s6216_s26 = smov [#allocation23]  }
  0x9c   :  { %s222_s23 = sshll.u32 %s6215_s22, 4  ;;  %s244_s3 = sshll.u32 %s6216_s26, 4  ;;  %s223_s23 = int_to_ptr.vmem [resolvable:$true] %s222_s23  ;;  %s245_s3 = int_to_ptr.vmem [resolvable:$true] %s244_s3 }
  0x9d   :  { %s5777_s1 = scalar_lea.hbm %s6343_s27, 16 }
  0x9e   :  { %p5778_p12 = scmp.ne.s32.totalorder %s6343_s27, %s5777_s1  ;;  %p5781_p13 = scmp.lt.u32.totalorder %s5777_s1, %s6343_s27 }
  0xa0   :  { %p5783_p0 = pnand %p5781_p13, %p5778_p12 }
  0xa2   :  { %5786 = shalt.err (!%p5783_p0)
}
  0xa3   :  { %s5787_s28 = scalar_lea.vmem %s223_s23, 16  ;;  %s5791_s2 = scalar_lea.vmem %s223_s23, 32 }
  0xa4   :  { %p5788_p1 = scmp.ne.s32.totalorder %s223_s23, %s5787_s28  ;;  %p5792_p2 = scmp.lt.s32.totalorder %s223_s23, %s223_s23 }
  0xa5   :  { %p5793_p3 = scmp.lt.s32.totalorder %s5791_s2, %s5787_s28 }
  0xa7   :  { %p5794_p4 = por %p5793_p3, %p5792_p2 }
  0xa9   :  { %p5795_p5 = pnand %p5794_p4, %p5788_p1 }
  0xab   :  { %5798 = shalt.err (!%p5795_p5)
}
  0xac   :  { %225 = dma.hbm_to_vmem [thread:$0]  %s6343_s27, 16, %s223_s23, [#allocation21]  }
  0xad   :  { %s5799_s30 = scalar_lea.hbm %s6358_s17, 32 }
  0xae   :  { %p5800_p6 = scmp.ne.s32.totalorder %s6358_s17, %s5799_s30  ;;  %p5803_p7 = scmp.lt.u32.totalorder %s5799_s30, %s6358_s17 }
  0xb0   :  { %p5805_p8 = pnand %p5803_p7, %p5800_p6 }
  0xb2   :  { %5808 = shalt.err (!%p5805_p8)
}
  0xb3   :  { %s5809_s7 = scalar_lea.vmem %s245_s3, 32  ;;  %p5814_p10 = scmp.lt.s32.totalorder %s245_s3, %s245_s3 }
  0xb4   :  { %p5810_p9 = scmp.ne.s32.totalorder %s245_s3, %s5809_s7  ;;  %p5815_p11 = scmp.lt.s32.totalorder %s5809_s7, %s5809_s7 }
  0xb6   :  { %p5816_p12 = por %p5815_p11, %p5814_p10 }
  0xb8   :  { %p5817_p13 = pnand %p5816_p12, %p5810_p9 }
  0xba   :  { %5820 = shalt.err (!%p5817_p13)
}
  0xbb   :  { %247 = dma.hbm_to_vmem [thread:$0]  %s6358_s17, 32, %s245_s3, [#allocation24]  }
  0xbc   :  { %s6217_s0 = smov [#allocation26]   ;;  %s6218_s14 = smov [#allocation29]  }
  0xbd   :  { %s266_s27 = sshll.u32 %s6217_s0, 4  ;;  %s286_s10 = sshll.u32 %s6218_s14, 4  ;;  %s267_s27 = int_to_ptr.vmem [resolvable:$true] %s266_s27  ;;  %s287_s10 = int_to_ptr.vmem [resolvable:$true] %s286_s10 }
  0xbe   :  { %s5821_s13 = scalar_lea.hbm %s6368_s21, 16 }
  0xbf   :  { %p5822_p0 = scmp.ne.s32.totalorder %s6368_s21, %s5821_s13  ;;  %p5825_p1 = scmp.lt.u32.totalorder %s5821_s13, %s6368_s21 }
  0xc1   :  { %p5827_p2 = pnand %p5825_p1, %p5822_p0 }
  0xc3   :  { %5830 = shalt.err (!%p5827_p2)
}
  0xc4   :  { %s5831_s11 = scalar_lea.vmem %s267_s27, 16  ;;  %s5835_s6 = scalar_lea.vmem %s267_s27, 32 }
  0xc5   :  { %p5832_p3 = scmp.ne.s32.totalorder %s267_s27, %s5831_s11  ;;  %p5836_p4 = scmp.lt.s32.totalorder %s267_s27, %s267_s27 }
  0xc6   :  { %p5837_p5 = scmp.lt.s32.totalorder %s5835_s6, %s5831_s11 }
  0xc8   :  { %p5838_p6 = por %p5837_p5, %p5836_p4 }
  0xca   :  { %p5839_p7 = pnand %p5838_p6, %p5832_p3 }
  0xcc   :  { %5842 = shalt.err (!%p5839_p7)
}
  0xcd   :  { %269 = dma.hbm_to_vmem [thread:$0]  %s6368_s21, 16, %s267_s27, [#allocation27]  }
  0xce   :  { %s5843_s17 = scalar_lea.hbm %s6378_s5, 16 }
  0xcf   :  { %p5844_p8 = scmp.ne.s32.totalorder %s6378_s5, %s5843_s17  ;;  %p5847_p9 = scmp.lt.u32.totalorder %s5843_s17, %s6378_s5 }
  0xd1   :  { %p5849_p10 = pnand %p5847_p9, %p5844_p8 }
  0xd3   :  { %5852 = shalt.err (!%p5849_p10)
}
  0xd4   :  { %s5853_s15 = scalar_lea.vmem %s287_s10, 16  ;;  %s5857_s16 = scalar_lea.vmem %s287_s10, 32 }
  0xd5   :  { %p5854_p11 = scmp.ne.s32.totalorder %s287_s10, %s5853_s15  ;;  %p5858_p12 = scmp.lt.s32.totalorder %s287_s10, %s287_s10 }
  0xd6   :  { %p5859_p13 = scmp.lt.s32.totalorder %s5857_s16, %s5853_s15 }
  0xd8   :  { %p5860_p0 = por %p5859_p13, %p5858_p12 }
  0xda   :  { %p5861_p1 = pnand %p5860_p0, %p5854_p11 }
  0xdc   :  { %5864 = shalt.err (!%p5861_p1)
}
  0xdd   :  { %289 = dma.hbm_to_vmem [thread:$0]  %s6378_s5, 16, %s287_s10, [#allocation30]  }
  0xde   :  { %s6219_s21 = smov [#allocation32]   ;;  %s6220_s23 = smov [#allocation3]  }
  0xdf   :  { %s308_s22 = sshll.u32 %s6219_s21, 4  ;;  %s102_s26 = sshll.u32 %s6220_s23, 4  ;;  %s309_s22 = int_to_ptr.vmem [resolvable:$true] %s308_s22  ;;  %s103_s26 = int_to_ptr.vmem [resolvable:$true] %s102_s26 }
  0xe0   :  { %s5865_s3 = scalar_lea.hbm %s6388_s29, 16 }
  0xe1   :  { %p5866_p2 = scmp.ne.s32.totalorder %s6388_s29, %s5865_s3  ;;  %p5869_p3 = scmp.lt.u32.totalorder %s5865_s3, %s6388_s29 }
  0xe3   :  { %p5871_p4 = pnand %p5869_p3, %p5866_p2 }
  0xe5   :  { %5874 = shalt.err (!%p5871_p4)
}
  0xe6   :  { %s5875_s1 = scalar_lea.vmem %s309_s22, 16  ;;  %s5879_s28 = scalar_lea.vmem %s309_s22, 32 }
  0xe7   :  { %p5876_p5 = scmp.ne.s32.totalorder %s309_s22, %s5875_s1  ;;  %p5880_p6 = scmp.lt.s32.totalorder %s309_s22, %s309_s22 }
  0xe8   :  { %p5881_p7 = scmp.lt.s32.totalorder %s5879_s28, %s5875_s1 }
  0xea   :  { %p5882_p8 = por %p5881_p7, %p5880_p6 }
  0xec   :  { %p5883_p9 = pnand %p5882_p8, %p5876_p5 }
  0xee   :  { %5886 = shalt.err (!%p5883_p9)
}
  0xef   :  { %311 = dma.hbm_to_vmem [thread:$0]  %s6388_s29, 16, %s309_s22, [#allocation33]  }
  0xf0   :  { %s5887_s5 = scalar_lea.hbm %s6268_s25, 48 }
  0xf1   :  { %p5888_p10 = scmp.ne.s32.totalorder %s6268_s25, %s5887_s5  ;;  %p5891_p11 = scmp.lt.u32.totalorder %s5887_s5, %s6268_s25 }
  0xf3   :  { %p5893_p12 = pnand %p5891_p11, %p5888_p10 }
  0xf5   :  { %5896 = shalt.err (!%p5893_p12)
}
  0xf6   :  { %s5897_s2 = scalar_lea.vmem %s103_s26, 48  ;;  %s5901_s30 = scalar_lea.vmem %s103_s26, 64 }
  0xf7   :  { %p5898_p13 = scmp.ne.s32.totalorder %s103_s26, %s5897_s2  ;;  %p5902_p0 = scmp.lt.s32.totalorder %s103_s26, %s103_s26 }
  0xf8   :  { %p5903_p1 = scmp.lt.s32.totalorder %s5901_s30, %s5897_s2 }
  0xfa   :  { %p5904_p2 = por %p5903_p1, %p5902_p0 }
  0xfc   :  { %p5905_p3 = pnand %p5904_p2, %p5898_p13 }
  0xfe   :  { %5908 = shalt.err (!%p5905_p3)
}
  0xff   :  { %105 = dma.hbm_to_vmem [thread:$0]  %s6268_s25, 48, %s103_s26, [#allocation4]  }
 0x100   :  { %s6221_s29 = smov [#allocation7]   ;;  %s6222_s0 = smov [#allocation10]  }
 0x101   :  { %s124_s7 = sshll.u32 %s6221_s29, 4  ;;  %s146_s27 = sshll.u32 %s6222_s0, 4  ;;  %s125_s7 = int_to_ptr.vmem [resolvable:$true] %s124_s7  ;;  %s147_s27 = int_to_ptr.vmem [resolvable:$true] %s146_s27 }
 0x102   :  { %s5909_s14 = scalar_lea.hbm %s6283_s8, 16 }
 0x103   :  { %p5910_p4 = scmp.ne.s32.totalorder %s6283_s8, %s5909_s14  ;;  %p5913_p5 = scmp.lt.u32.totalorder %s5909_s14, %s6283_s8 }
 0x105   :  { %p5915_p6 = pnand %p5913_p5, %p5910_p4 }
 0x107   :  { %5918 = shalt.err (!%p5915_p6)
}
 0x108   :  { %s5919_s10 = scalar_lea.vmem %s125_s7, 16  ;;  %s5923_s13 = scalar_lea.vmem %s125_s7, 32 }
 0x109   :  { %p5920_p7 = scmp.ne.s32.totalorder %s125_s7, %s5919_s10  ;;  %p5924_p8 = scmp.lt.s32.totalorder %s125_s7, %s125_s7 }
 0x10a   :  { %p5925_p9 = scmp.lt.s32.totalorder %s5923_s13, %s5919_s10 }
 0x10c   :  { %p5926_p10 = por %p5925_p9, %p5924_p8 }
 0x10e   :  { %p5927_p11 = pnand %p5926_p10, %p5920_p7 }
 0x110   :  { %5930 = shalt.err (!%p5927_p11)
}
 0x111   :  { %127 = dma.hbm_to_vmem [thread:$0]  %s6283_s8, 16, %s125_s7, [#allocation6]  }
 0x112   :  { %s5931_s25 = scalar_lea.hbm %s6298_s24, 32 }
 0x113   :  { %p5932_p12 = scmp.ne.s32.totalorder %s6298_s24, %s5931_s25  ;;  %p5935_p13 = scmp.lt.u32.totalorder %s5931_s25, %s6298_s24 }
 0x115   :  { %p5937_p0 = pnand %p5935_p13, %p5932_p12 }
 0x117   :  { %5940 = shalt.err (!%p5937_p0)
}
 0x118   :  { %s5941_s11 = scalar_lea.vmem %s147_s27, 32  ;;  %p5946_p2 = scmp.lt.s32.totalorder %s147_s27, %s147_s27 }
 0x119   :  { %p5942_p1 = scmp.ne.s32.totalorder %s147_s27, %s5941_s11  ;;  %p5947_p3 = scmp.lt.s32.totalorder %s5941_s11, %s5941_s11 }
 0x11b   :  { %p5948_p4 = por %p5947_p3, %p5946_p2 }
 0x11d   :  { %p5949_p5 = pnand %p5948_p4, %p5942_p1 }
 0x11f   :  { %5952 = shalt.err (!%p5949_p5)
}
 0x120   :  { %149 = dma.hbm_to_vmem [thread:$0]  %s6298_s24, 32, %s147_s27, [#allocation9]  }
 0x121   :  { %s6223_s6 = smov [#allocation13]   ;;  %s6224_s17 = smov [#allocation16]  }
 0x122   :  { %s168_s8 = sshll.u32 %s6223_s6, 4  ;;  %s190_s15 = sshll.u32 %s6224_s17, 4  ;;  %s169_s8 = int_to_ptr.vmem [resolvable:$true] %s168_s8  ;;  %s191_s15 = int_to_ptr.vmem [resolvable:$true] %s190_s15 }
 0x123   :  { %s5953_s16 = scalar_lea.hbm %s6313_s12, 16 }
 0x124   :  { %p5954_p6 = scmp.ne.s32.totalorder %s6313_s12, %s5953_s16  ;;  %p5957_p7 = scmp.lt.u32.totalorder %s5953_s16, %s6313_s12 }
 0x126   :  { %p5959_p8 = pnand %p5957_p7, %p5954_p6 }
 0x128   :  { %5962 = shalt.err (!%p5959_p8)
}
 0x129   :  { %s5963_s21 = scalar_lea.vmem %s169_s8, 16  ;;  %s5967_s22 = scalar_lea.vmem %s169_s8, 32 }
 0x12a   :  { %p5964_p9 = scmp.ne.s32.totalorder %s169_s8, %s5963_s21  ;;  %p5968_p10 = scmp.lt.s32.totalorder %s169_s8, %s169_s8 }
 0x12b   :  { %p5969_p11 = scmp.lt.s32.totalorder %s5967_s22, %s5963_s21 }
 0x12d   :  { %p5970_p12 = por %p5969_p11, %p5968_p10 }
 0x12f   :  { %p5971_p13 = pnand %p5970_p12, %p5964_p9 }
 0x131   :  { %5974 = shalt.err (!%p5971_p13)
}
 0x132   :  { %s7271_s24 = sld [smem:[#allocation58_spill]] }
 0x133   :  { %171 = dma.hbm_to_vmem [thread:$0]  %s6313_s12, 16, %s169_s8, [#allocation12]  }
 0x138   :  { %s5975_s23 = scalar_lea.hbm %s7271_s24, 48 }
 0x139   :  { %p5976_p0 = scmp.ne.s32.totalorder %s7271_s24, %s5975_s23  ;;  %p5979_p1 = scmp.lt.u32.totalorder %s5975_s23, %s7271_s24 }
 0x13b   :  { %p5981_p2 = pnand %p5979_p1, %p5976_p0 }
 0x13d   :  { %5984 = shalt.err (!%p5981_p2)
}
 0x13e   :  { %s5985_s26 = scalar_lea.vmem %s191_s15, 48  ;;  %s5989_s3 = scalar_lea.vmem %s191_s15, 64 }
 0x13f   :  { %p5986_p3 = scmp.ne.s32.totalorder %s191_s15, %s5985_s26  ;;  %p5990_p4 = scmp.lt.s32.totalorder %s191_s15, %s191_s15 }
 0x140   :  { %p5991_p5 = scmp.lt.s32.totalorder %s5989_s3, %s5985_s26 }
 0x142   :  { %p5992_p6 = por %p5991_p5, %p5990_p4 }
 0x144   :  { %p5993_p7 = pnand %p5992_p6, %p5986_p3 }
 0x146   :  { %5996 = shalt.err (!%p5993_p7)
}
 0x147   :  { %s7272_s1 = sld [smem:[#allocation59_spill]]  ;;  %s6225_s12 = smov [#allocation19]  }
 0x148   :  { %193 = dma.hbm_to_vmem [thread:$0]  %s7271_s24, 48, %s191_s15, [#allocation15]  }
 0x149   :  { %s212_s28 = sshll.u32 %s6225_s12, 4  ;;  %s6226_s5 = smov [#allocation22]   ;;  %s213_s28 = int_to_ptr.vmem [resolvable:$true] %s212_s28 }
 0x14a   :  { %s232_s2 = sshll.u32 %s6226_s5, 4  ;;  %s233_s2 = int_to_ptr.vmem [resolvable:$true] %s232_s2 }
 0x14d   :  { %s5997_s30 = scalar_lea.hbm %s7272_s1, 16 }
 0x14e   :  { %p5998_p8 = scmp.ne.s32.totalorder %s7272_s1, %s5997_s30  ;;  %p6001_p9 = scmp.lt.u32.totalorder %s5997_s30, %s7272_s1 }
 0x150   :  { %p6003_p10 = pnand %p6001_p9, %p5998_p8 }
 0x152   :  { %6006 = shalt.err (!%p6003_p10)
}
 0x153   :  { %s6007_s29 = scalar_lea.vmem %s213_s28, 16  ;;  %s6011_s7 = scalar_lea.vmem %s213_s28, 32 }
 0x154   :  { %p6008_p11 = scmp.ne.s32.totalorder %s213_s28, %s6007_s29  ;;  %p6012_p12 = scmp.lt.s32.totalorder %s213_s28, %s213_s28 }
 0x155   :  { %p6013_p13 = scmp.lt.s32.totalorder %s6011_s7, %s6007_s29 }
 0x157   :  { %p6014_p0 = por %p6013_p13, %p6012_p12 }
 0x159   :  { %p6015_p1 = pnand %p6014_p0, %p6008_p11 }
 0x15b   :  { %6018 = shalt.err (!%p6015_p1)
}
 0x15c   :  { %s7273_s0 = sld [smem:[#allocation60_spill]] }
 0x15d   :  { %215 = dma.hbm_to_vmem [thread:$0]  %s7272_s1, 16, %s213_s28, [#allocation18]  }
 0x162   :  { %s6019_s27 = scalar_lea.hbm %s7273_s0, 16 }
 0x163   :  { %p6020_p2 = scmp.ne.s32.totalorder %s7273_s0, %s6019_s27  ;;  %p6023_p3 = scmp.lt.u32.totalorder %s6019_s27, %s7273_s0 }
 0x165   :  { %p6025_p4 = pnand %p6023_p3, %p6020_p2 }
 0x167   :  { %6028 = shalt.err (!%p6025_p4)
}
 0x168   :  { %s6029_s14 = scalar_lea.vmem %s233_s2, 16  ;;  %s6033_s10 = scalar_lea.vmem %s233_s2, 32 }
 0x169   :  { %p6030_p5 = scmp.ne.s32.totalorder %s233_s2, %s6029_s14  ;;  %p6034_p6 = scmp.lt.s32.totalorder %s233_s2, %s233_s2 }
 0x16a   :  { %p6035_p7 = scmp.lt.s32.totalorder %s6033_s10, %s6029_s14 }
 0x16c   :  { %p6036_p8 = por %p6035_p7, %p6034_p6 }
 0x16e   :  { %p6037_p9 = pnand %p6036_p8, %p6030_p5 }
 0x170   :  { %6040 = shalt.err (!%p6037_p9)
}
 0x171   :  { %s7274_s13 = sld [smem:[#allocation62_spill]]  ;;  %s6227_s25 = smov [#allocation25]  }
 0x172   :  { %235 = dma.hbm_to_vmem [thread:$0]  %s7273_s0, 16, %s233_s2, [#allocation21]  }
 0x173   :  { %s253_s11 = sshll.u32 %s6227_s25, 4  ;;  %s6228_s6 = smov [#allocation28]   ;;  %s254_s11 = int_to_ptr.vmem [resolvable:$true] %s253_s11 }
 0x174   :  { %s276_s8 = sshll.u32 %s6228_s6, 4  ;;  %s277_s8 = int_to_ptr.vmem [resolvable:$true] %s276_s8 }
 0x177   :  { %s6041_s17 = scalar_lea.hbm %s7274_s13, 2048 }
 0x178   :  { %p6042_p10 = scmp.ne.s32.totalorder %s7274_s13, %s6041_s17  ;;  %p6045_p11 = scmp.lt.u32.totalorder %s6041_s17, %s7274_s13 }
 0x17a   :  { %p6047_p12 = pnand %p6045_p11, %p6042_p10 }
 0x17c   :  { %6050 = shalt.err (!%p6047_p12)
}
 0x17d   :  { %s6051_s15 = scalar_lea.vmem %s254_s11, 2048  ;;  %p6056_p0 = scmp.lt.s32.totalorder %s254_s11, %s254_s11 }
 0x17e   :  { %p6052_p13 = scmp.ne.s32.totalorder %s254_s11, %s6051_s15  ;;  %p6057_p1 = scmp.lt.s32.totalorder %s6051_s15, %s6051_s15 }
 0x180   :  { %p6058_p2 = por %p6057_p1, %p6056_p0 }
 0x182   :  { %p6059_p3 = pnand %p6058_p2, %p6052_p13 }
 0x184   :  { %6062 = shalt.err (!%p6059_p3)
}
 0x185   :  { %s7275_s16 = sld [smem:[#allocation63_spill]] }
 0x186   :  { %259 = dma.hbm_to_vmem [thread:$0]  %s7274_s13, 2048, %s254_s11, [#allocation24], %s6213_s18, %s6213_s18, %s6214_s20  }
 0x18b   :  { %s6063_s21 = scalar_lea.hbm %s7275_s16, 16 }
 0x18c   :  { %p6064_p4 = scmp.ne.s32.totalorder %s7275_s16, %s6063_s21  ;;  %p6067_p5 = scmp.lt.u32.totalorder %s6063_s21, %s7275_s16 }
 0x18e   :  { %p6069_p6 = pnand %p6067_p5, %p6064_p4 }
 0x190   :  { %6072 = shalt.err (!%p6069_p6)
}
 0x191   :  { %s6073_s22 = scalar_lea.vmem %s277_s8, 16  ;;  %s6077_s24 = scalar_lea.vmem %s277_s8, 32 }
 0x192   :  { %p6074_p7 = scmp.ne.s32.totalorder %s277_s8, %s6073_s22  ;;  %p6078_p8 = scmp.lt.s32.totalorder %s277_s8, %s277_s8 }
 0x193   :  { %p6079_p9 = scmp.lt.s32.totalorder %s6077_s24, %s6073_s22 }
 0x195   :  { %p6080_p10 = por %p6079_p9, %p6078_p8 }
 0x197   :  { %p6081_p11 = pnand %p6080_p10, %p6074_p7 }
 0x199   :  { %6084 = shalt.err (!%p6081_p11)
}
 0x19a   :  { %s7276_s23 = sld [smem:[#allocation64_spill]]  ;;  %s6229_s26 = smov [#allocation31]  }
 0x19b   :  { %279 = dma.hbm_to_vmem [thread:$0]  %s7275_s16, 16, %s277_s8, [#allocation27]  }
 0x19c   :  { %s295_s3 = sshll.u32 %s6229_s26, 4  ;;  %s6230_s1 = smov [#allocation34]   ;;  %s296_s3 = int_to_ptr.vmem [resolvable:$true] %s295_s3 }
 0x19d   :  { %s318_s12 = sshll.u32 %s6230_s1, 4  ;;  %s319_s12 = int_to_ptr.vmem [resolvable:$true] %s318_s12 }
 0x1a0   :  { %s6085_s28 = scalar_lea.hbm %s7276_s23, 1024 }
 0x1a1   :  { %p6086_p12 = scmp.ne.s32.totalorder %s7276_s23, %s6085_s28  ;;  %p6089_p13 = scmp.lt.u32.totalorder %s6085_s28, %s7276_s23 }
 0x1a3   :  { %p6091_p0 = pnand %p6089_p13, %p6086_p12 }
 0x1a5   :  { %6094 = shalt.err (!%p6091_p0)
}
 0x1a6   :  { %s6095_s5 = scalar_lea.vmem %s296_s3, 1024  ;;  %p6100_p2 = scmp.lt.s32.totalorder %s296_s3, %s296_s3 }
 0x1a7   :  { %p6096_p1 = scmp.ne.s32.totalorder %s296_s3, %s6095_s5  ;;  %p6101_p3 = scmp.lt.s32.totalorder %s6095_s5, %s6095_s5 }
 0x1a9   :  { %p6102_p4 = por %p6101_p3, %p6100_p2 }
 0x1ab   :  { %p6103_p5 = pnand %p6102_p4, %p6096_p1 }
 0x1ad   :  { %6106 = shalt.err (!%p6103_p5)
}
 0x1ae   :  { %301 = dma.hbm_to_vmem [thread:$0]  %s7276_s23, 1024, %s296_s3, [#allocation30], %s6213_s18, %s6213_s18, %s6214_s20  }
 0x1af   :  { %s6107_s2 = scalar_lea.hbm %s6393_s9, 16 }
 0x1b0   :  { %p6108_p6 = scmp.ne.s32.totalorder %s6393_s9, %s6107_s2  ;;  %p6111_p7 = scmp.lt.u32.totalorder %s6107_s2, %s6393_s9 }
 0x1b2   :  { %p6113_p8 = pnand %p6111_p7, %p6108_p6 }
 0x1b4   :  { %6116 = shalt.err (!%p6113_p8)
}
 0x1b5   :  { %s6117_s30 = scalar_lea.vmem %s319_s12, 16  ;;  %s6121_s29 = scalar_lea.vmem %s319_s12, 32 }
 0x1b6   :  { %p6118_p9 = scmp.ne.s32.totalorder %s319_s12, %s6117_s30  ;;  %p6122_p10 = scmp.lt.s32.totalorder %s319_s12, %s319_s12 }
 0x1b7   :  { %p6123_p11 = scmp.lt.s32.totalorder %s6121_s29, %s6117_s30 }
 0x1b9   :  { %p6124_p12 = por %p6123_p11, %p6122_p10 }
 0x1bb   :  { %p6125_p13 = pnand %p6124_p12, %p6118_p9 }
 0x1bd   :  { %6128 = shalt.err (!%p6125_p13)
}
 0x1be   :  { %321 = dma.hbm_to_vmem [thread:$0]  %s6393_s9, 16, %s319_s12, [#allocation33]  }
 0x1bf   :  { %s6231_s20 = smov [#allocation35]   ;;  %s6129_s0 = scalar_lea.hbm %s6398_s19, 16 }
 0x1c0   :  { %s328_s7 = sshll.u32 %s6231_s20, 4  ;;  %p6130_p0 = scmp.ne.s32.totalorder %s6398_s19, %s6129_s0  ;;  %s329_s7 = int_to_ptr.vmem [resolvable:$true] %s328_s7 }
 0x1c1   :  { %p6133_p1 = scmp.lt.u32.totalorder %s6129_s0, %s6398_s19 }
 0x1c3   :  { %p6135_p2 = pnand %p6133_p1, %p6130_p0 }
 0x1c5   :  { %6138 = shalt.err (!%p6135_p2)
}
 0x1c6   :  { %s6139_s27 = scalar_lea.vmem %s329_s7, 16  ;;  %s6143_s14 = scalar_lea.vmem %s329_s7, 32 }
 0x1c7   :  { %p6140_p3 = scmp.ne.s32.totalorder %s329_s7, %s6139_s27  ;;  %p6144_p4 = scmp.lt.s32.totalorder %s329_s7, %s329_s7 }
 0x1c8   :  { %p6145_p5 = scmp.lt.s32.totalorder %s6143_s14, %s6139_s27 }
 0x1ca   :  { %p6146_p6 = por %p6145_p5, %p6144_p4 }
 0x1cc   :  { %p6147_p7 = pnand %p6146_p6, %p6140_p3 }
 0x1ce   :  { %6150 = shalt.err (!%p6147_p7)
}
 0x1cf   :  { %331 = dma.hbm_to_vmem [thread:$0]  %s6398_s19, 16, %s329_s7, [#allocation36]  }
 0x1d0   :  { %6151 = dma.done.wait [#allocation4], 48  }
 0x1d1   :  { %6152 = vsyncadd [#allocation4], 4294967248 }
 0x1d2   :  { %6153 = dma.done.wait [#allocation6], 32  }
 0x1d3   :  { %6154 = vsyncadd [#allocation6], 4294967264 }
 0x1d4   :  { %6155 = dma.done.wait [#allocation9], 48  }
 0x1d5   :  { %6156 = vsyncadd [#allocation9], 4294967248 }
 0x1d6   :  { %6157 = dma.done.wait [#allocation12], 32  }
 0x1d7   :  { %6158 = vsyncadd [#allocation12], 4294967264 }
 0x1d8   :  { %6159 = dma.done.wait [#allocation15], 64  }
 0x1d9   :  { %6160 = vsyncadd [#allocation15], 4294967232 }
 0x1da   :  { %6161 = dma.done.wait [#allocation18], 1040  }
 0x1db   :  { %6162 = vsyncadd [#allocation18], 4294966256 }
 0x1dc   :  { %6163 = dma.done.wait [#allocation21], 32  }
 0x1dd   :  { %6164 = vsyncadd [#allocation21], 4294967264 }
 0x1de   :  { %6165 = dma.done.wait [#allocation24], 2080  }
 0x1df   :  { %6166 = vsyncadd [#allocation24], 4294965216 }
 0x1e0   :  { %6167 = dma.done.wait [#allocation27], 32  }
 0x1e1   :  { %6168 = vsyncadd [#allocation27], 4294967264 }
 0x1e2   :  { %6169 = dma.done.wait [#allocation30], 1040  }
 0x1e3   :  { %6170 = vsyncadd [#allocation30], 4294966256 }
 0x1e4   :  { %6171 = dma.done.wait [#allocation33], 32  }
 0x1e5   :  { %6172 = vsyncadd [#allocation33], 4294967264 }
 0x1e6   :  { %6173 = dma.done.wait [#allocation36], 16  }
 0x1e7   :  { %6174 = vsyncadd [#allocation36], 4294967280  ;;  %s7277_s9 = sld [smem:[#allocation49_spill]]  ;;  %s7278_s19 = sld [smem:[#allocation53_spill]]  ;;  %v6232_v40 = vmov 0   ;;  %vm761_vm0 = vcmask 261120  }
 0x1e8   :  { %687 = vmatprep.mubr.bf16.mxu0 %v6232_v40  ;;  %5273 = vset.pattern.permute.xlu0 %v6232_v40  ;;  %s7279_s10 = sld [smem:[#allocation51_spill]]  ;;  %s7280_s13 = sld [smem:[#allocation52_spill]]  ;;  %vm4434_vm1 = vcmask 1040384  }
 0x1e9   :  { %5274 = vset.pattern.permute.xlu1 %v6232_v40  ;;  %s7281_s25 = sld [smem:[#allocation50_spill]]  ;;  %s6233_s11 = smov 96  }
 0x1ea   :  { %s6234_s6 = smov 32   ;;  %s7282_s8 = sld [smem:[#allocation54_spill]] }
 0x1eb   :  { %s7283_s17 = sld [smem:[#allocation55_spill]]  ;;  %s7284_s15 = sld [smem:[#allocation56_spill]] }
 0x1ec   :  { %s7285_s16 = sld [smem:[#allocation57_spill]] }
 0x1ed   :  { %v405_v1 = vld [vmem:[%s7277_s9] sm:$0xff]  ;;  %v407_v2 = vld [vmem:[%s7277_s9 + $0x10] sm:$0xff]  ;;  %v406_v3 = vld [vmem:[%s7277_s9 + $0x8] sm:$0xff] }
 0x1ee   :  { %411 = vadd.xlane.f32.xlu0 %v405_v1  ;;  %415 = vadd.xlane.f32.xlu1 %v407_v2  ;;  %v408_v4 = vld [vmem:[%s7277_s9 + $0x18] sm:$0xff]  ;;  %v5275_v5 = vld [vmem:[%s7278_s19 + $0x4] ss:$12 sps:$4 sm:$0xff]   ;;  %v5277_v6 = vld [vmem:[%s7278_s19] ss:$12 sps:$4 sm:$0xff]  }
 0x1ef   :  { %v5278_v7 = vld [vmem:[%s7278_s19 + $0x1c] ss:$12 sps:$4 sm:$0xff]   ;;  %655 = vmatprep.subr.bf16.mxu0 %v5275_v5  ;;  %v5281_v25 = vld [vmem:[%s7278_s19 + $0x18] ss:$12 sps:$4 sm:$0xff]   ;;  %v5282_v26 = vld [vmem:[%s7278_s19 + $0x34] ss:$12 sps:$4 sm:$0xff]  }
 0x1f0   :  { %v5280_v8 = vld [vmem:[%s7278_s19 + $0x8] ss:$12 sps:$4 sm:$0xff]   ;;  %656 = vmatpush1.bf16.msra.mxu0 %v5277_v6  ;;  %v5284_v27 = vld [vmem:[%s7278_s19 + $0x20] ss:$12 sps:$4 sm:$0xff]   ;;  %v5285_v28 = vld [vmem:[%s7278_s19 + $0x30] ss:$12 sps:$4 sm:$0xff]  }
 0x1f1   :  { %4921 = vmatprep.subr.bf16.mxu1 %v5280_v8  ;;  %657 = vmatprep.subr.bf16.mxu0 %v5278_v7  ;;  %v5286_v29 = vld [vmem:[%s7278_s19 + $0x4c] ss:$12 sps:$4 sm:$0xff]   ;;  %v5289_v31 = vld [vmem:[%s7278_s19 + $0x48] ss:$12 sps:$4 sm:$0xff]   ;;  %v5290_v32 = vld [vmem:[%s7278_s19 + $0x64] ss:$12 sps:$4 sm:$0xff]  }
 0x1f2   :  { %413 = vadd.xlane.f32.xlu0 %v406_v3  ;;  %417 = vadd.xlane.f32.xlu1 %v408_v4  ;;  %v5288_v30 = vld [vmem:[%s7278_s19 + $0x38] ss:$12 sps:$4 sm:$0xff]   ;;  %v5292_v33 = vld [vmem:[%s7278_s19 + $0x50] ss:$12 sps:$4 sm:$0xff]   ;;  %v5293_v34 = vld [vmem:[%s7278_s19 + $0x60] ss:$12 sps:$4 sm:$0xff]  }
 0x1f3   :  { %4922 = vmatpush3.bf16.msra.mxu1 %v5280_v8  ;;  %v5294_v35 = vld [vmem:[%s7278_s19 + $0x7c] ss:$12 sps:$4 sm:$0xff]   ;;  %v5297_v37 = vld [vmem:[%s7278_s19 + $0x78] ss:$12 sps:$4 sm:$0xff]   ;;  %v5298_v38 = vld [vmem:[%s7278_s19 + $0x94] ss:$12 sps:$4 sm:$0xff]  }
 0x1f4   :  { %658 = vmatpush1.bf16.msra.mxu0 %v5281_v25  ;;  %4923 = vmatprep.subr.bf16.mxu1 %v5284_v27  ;;  %v5296_v36 = vld [vmem:[%s7278_s19 + $0x68] ss:$12 sps:$4 sm:$0xff]   ;;  %v5300_v39 = vld [vmem:[%s7278_s19 + $0x80] ss:$12 sps:$4 sm:$0xff]   ;;  %v5301_v41 = vld [vmem:[%s7278_s19 + $0x90] ss:$12 sps:$4 sm:$0xff]  }
 0x1f5   :  { %659 = vmatprep.subr.bf16.mxu0 %v5282_v26  ;;  %v5302_v42 = vld [vmem:[%s7278_s19 + $0xac] ss:$12 sps:$4 sm:$0xff]   ;;  %v5305_v44 = vld [vmem:[%s7278_s19 + $0xa8] ss:$12 sps:$4 sm:$0xff]   ;;  %v5306_v45 = vld [vmem:[%s7278_s19 + $0xb0] ss:$12 sps:$4 sm:$0xff]  }
 0x1f6   :  { %v5304_v43 = vld [vmem:[%s7278_s19 + $0x98] ss:$12 sps:$4 sm:$0xff]   ;;  %v4539_v60 = vld [vmem:[%s7279_s10] ss:$0 sm:$0xff] }
 0x1f7   :  { %4924 = vmatpush3.bf16.msra.mxu1 %v5284_v27 }
 0x1f8   :  { %660 = vmatpush1.bf16.msra.mxu0 %v5285_v28  ;;  %4925 = vmatprep.subr.bf16.mxu1 %v5288_v30 }
 0x1f9   :  { %661 = vmatprep.subr.bf16.mxu0 %v5286_v29 }
 0x1fb   :  { %4926 = vmatpush3.bf16.msra.mxu1 %v5288_v30 }
 0x1fc   :  { %662 = vmatpush1.bf16.msra.mxu0 %v5289_v31  ;;  %4927 = vmatprep.subr.bf16.mxu1 %v5292_v33 }
 0x1fd   :  { %663 = vmatprep.subr.bf16.mxu0 %v5290_v32 }
 0x1ff   :  { %4928 = vmatpush3.bf16.msra.mxu1 %v5292_v33 }
 0x200   :  { %664 = vmatpush1.bf16.msra.mxu0 %v5293_v34  ;;  %4929 = vmatprep.subr.bf16.mxu1 %v5296_v36 }
 0x201   :  { %665 = vmatprep.subr.bf16.mxu0 %v5294_v35 }
 0x203   :  { %4930 = vmatpush3.bf16.msra.mxu1 %v5296_v36 }
 0x204   :  { %666 = vmatpush1.bf16.msra.mxu0 %v5297_v37  ;;  %4931 = vmatprep.subr.bf16.mxu1 %v5300_v39 }
 0x205   :  { %667 = vmatprep.subr.bf16.mxu0 %v5298_v38 }
 0x207   :  { %4932 = vmatpush3.bf16.msra.mxu1 %v5300_v39 }
 0x208   :  { %668 = vmatpush1.bf16.msra.mxu0 %v5301_v41  ;;  %4933 = vmatprep.subr.bf16.mxu1 %v5304_v43 }
 0x209   :  { %669 = vmatprep.subr.bf16.mxu0 %v5302_v42 }
 0x20b   :  { %4934 = vmatpush3.bf16.msra.mxu1 %v5304_v43 }
 0x20c   :  { %670 = vmatpush1.bf16.msra.mxu0 %v5305_v44  ;;  %4935 = vmatprep.subr.bf16.mxu1 %v5306_v45 }
 0x20f   :  { %4936 = vmatpush3.bf16.msra.mxu1 %v5306_v45 }
 0x27b   :  { %v412_v9 = vpop.xlane.xlu0 %411  ;;  %v416_v10 = vpop.xlane.xlu1 %415 }
 0x27c   :  { %v420_v11 = vmul.f32 0.0078125, %v412_v9  ;;  %v422_v12 = vmul.f32 0.0078125, %v416_v10 }
 0x27e   :  { %v6513_v13 = vsub.f32 %v405_v1, %v420_v11  ;;  %v6515_v14 = vsub.f32 %v407_v2, %v422_v12  ;;  %v4540_v1 = vld [vmem:[%s7280_s13] ss:$0 sm:$0xff] }
 0x27f   :  { %v414_v15 = vpop.xlane.xlu0 %413  ;;  %v418_v16 = vpop.xlane.xlu1 %417 }
 0x280   :  { %v421_v17 = vmul.f32 0.0078125, %v414_v15  ;;  %v428_v18 = vmul.f32 %v6513_v13, %v6513_v13  ;;  %v423_v19 = vmul.f32 0.0078125, %v418_v16  ;;  %v430_v20 = vmul.f32 %v6515_v14, %v6515_v14 }
 0x282   :  { %432 = vadd.xlane.f32.xlu0 %v428_v18  ;;  %v6521_v21 = vsub.f32 %v406_v3, %v421_v17  ;;  %v6523_v22 = vsub.f32 %v408_v4, %v423_v19  ;;  %v510_v17 = vld [vmem:[#allocation3] sm:$0x7] }
 0x284   :  { %v429_v23 = vmul.f32 %v6521_v21, %v6521_v21  ;;  %v431_v24 = vmul.f32 %v6523_v22, %v6523_v22 }
 0x286   :  { %436 = vadd.xlane.f32.xlu0 %v430_v20  ;;  %434 = vadd.xlane.f32.xlu1 %v429_v23 }
 0x28a   :  { %438 = vadd.xlane.f32.xlu1 %v431_v24 }
 0x30f   :  { %v433_v46 = vpop.xlane.xlu0 %432 }
 0x310   :  { %v440_v47 = vmul.f32 0.0078125, %v433_v46 }
 0x312   :  { %v444_v48 = vadd.f32 1e-07, %v440_v47 }
 0x313   :  { %v435_v49 = vpop.xlane.xlu1 %434  ;;  %v437_v50 = vpop.xlane.xlu0 %436 }
 0x314   :  { %5443 = vrsqrt.f32 %v444_v48  ;;  %v441_v51 = vmul.f32 0.0078125, %v435_v49  ;;  %v442_v52 = vmul.f32 0.0078125, %v437_v50 }
 0x316   :  { %v445_v53 = vadd.f32 1e-07, %v441_v51  ;;  %v446_v54 = vadd.f32 1e-07, %v442_v52 }
 0x317   :  { %v439_v55 = vpop.xlane.xlu1 %438 }
 0x318   :  { %5445 = vrsqrt.f32 %v445_v53  ;;  %v443_v56 = vmul.f32 0.0078125, %v439_v55 }
 0x319   :  { %5447 = vrsqrt.f32 %v446_v54 }
 0x31a   :  { %v447_v57 = vadd.f32 1e-07, %v443_v56 }
 0x31c   :  { %5449 = vrsqrt.f32 %v447_v57 }
 0x31e   :  { %v5444_v58 = vpop.eup %5443 }
 0x31f   :  { %v452_v59 = vmul.f32 %v5444_v58, %v6513_v13  ;;  %v6613_v58 = vld [vmem:[%s7281_s25] sm:$0xff] }
 0x321   :  { %v462_v0 = vmul.f32 %v4539_v60, %v452_v59 }
 0x322   :  { %v5446_v61 = vpop.eup %5445 }
 0x323   :  { %v5448_v62 = vpop.eup %5447  ;;  %v453_v63 = vmul.f32 %v5446_v61, %v6521_v21  ;;  %v6557_v5 = vadd.f32 %v4540_v1, %v462_v0  ;;  %v6619_v0 = vld [vmem:[%s7281_s25 + $0x10] sm:$0xff] }
 0x324   :  { %v454_v2 = vmul.f32 %v5448_v62, %v6515_v14  ;;  %v512_v14 = vlaneseq }
 0x325   :  { %v463_v3 = vmul.f32 %v4539_v60, %v453_v63  ;;  %v6616_v63 = vld [vmem:[%s7281_s25 + $0x8] sm:$0xff] }
 0x326   :  { %v5450_v4 = vpop.eup %5449  ;;  %v464_v8 = vmul.f32 %v4539_v60, %v454_v2  ;;  %v6571_v15 = vshrl.u32 %v512_v14, 7 }
 0x327   :  { %v6559_v6 = vadd.f32 %v4540_v1, %v463_v3  ;;  %v455_v7 = vmul.f32 %v5450_v4, %v6523_v22  ;;  %v6623_v4 = vld [vmem:[%s7281_s25 + $0x18] sm:$0xff] }
 0x328   :  { %v6564_v11 = vadd.f32 %v4540_v1, %v464_v8  ;;  %v6574_v16 = vsub.s32 0, %v6571_v15  ;;  %v6577_v18 = vsub.s32 1, %v6571_v15  ;;  %v522_v20 = vsub.s32 2, %v6571_v15 }
 0x329   :  { %v476_v9 = vpack.c.bf16 %v6559_v6, %v6557_v5  ;;  %v465_v10 = vmul.f32 %v4539_v60, %v455_v7 }
 0x32a   :  { %v515_v19 = vrot.slane %v510_v17, %v6574_v16  ;;  %v519_v22 = vrot.slane %v510_v17, %v6577_v18  ;;  %v523_v28 = vrot.slane %v510_v17, %v522_v20 }
 0x32b   :  { %688 = vmatmul.mubr.bf16.vlgmr.msra.gmra.mrb[0].mxu0 %v476_v9  ;;  %4937 = vmatprep.mubr.bf16.mxu1 %v476_v9  ;;  %v6566_v12 = vadd.f32 %v4540_v1, %v465_v10 }
 0x32c   :  { %697 = vmatprep.mubr.bf16.mxu0 %v6232_v40 }
 0x32d   :  { %v477_v13 = vpack.c.bf16 %v6566_v12, %v6564_v11 }
 0x32f   :  { %4938 = vmatmul.mubr.bf16.vlgmr.msra.gmra.mrb[0].mxu1 %v477_v13 }
 0x333   :  { %698 = vmatmul.mubr.bf16.gmra.mrb[4].mxu0 %v477_v13 }
 0x3fe   :  { %v689_v21 = vpop.f32.mrb[0].mxu0 }
 0x3ff   :  { %v691_v23 = vpop.f32.mrb[1].mxu0  ;;  %v690_v25 = vadd.f32 %v689_v21, %v515_v19 }
 0x400   :  { %v693_v24 = vpop.f32.mrb[2].mxu0  ;;  %v692_v29 = vadd.f32 %v691_v23, %v519_v22 }
 0x401   :  { %v694_v26 = vadd.f32 %v693_v24, %v515_v19  ;;  %v695_v27 = vpop.f32.mrb[3].mxu0 }
 0x402   :  { %v696_v30 = vadd.f32 %v695_v27, %v519_v22  ;;  %v4939_v31 = vpop.f32.mrb[0].mxu1 }
 0x403   :  { %v6584_v32 = vpack.c.bf16 %v694_v26, %v690_v25  ;;  %v742_v33 = vpop.f32.mrb[1].mxu1  ;;  %v751_v36 = vadd.f32 %v4939_v31, %v523_v28 }
 0x404   :  { %v6586_v34 = vpack.c.bf16 %v696_v30, %v692_v29  ;;  %v4940_v35 = vpop.f32.mrb[2].mxu1  ;;  %v743_v39 = vadd.f32 %v742_v33, %v523_v28 }
 0x405   :  { %v754_v37 = vadd.f32 %v4940_v35, %v523_v28  ;;  %v745_v38 = vpop.f32.mrb[3].mxu1  ;;  %4945 = vmatprep.mubr.msk.bf16.mxu0 %vm761_vm0, %v6584_v32 }
 0x406   :  { %v746_v41 = vadd.f32 %v745_v38, %v523_v28  ;;  %v699_v42 = vpop.f32.mrb[4].mxu0  ;;  %5197 = vmatprep.subr.msk.bf16.mxu0 %vm761_vm0, %v6586_v34  ;;  %v769_v43 = vsel %vm761_vm0, %v6586_v34, 0 }
 0x407   :  { %v6594_v44 = vpack.c.bf16 %v754_v37, %v751_v36  ;;  %v701_v45 = vpop.f32.mrb[5].mxu0  ;;  %4942 = vmatpush3.bf16.xpose.msra.mxu0 %v769_v43  ;;  %v700_v48 = vadd.f32 %v699_v42, %v515_v19 }
 0x408   :  { %v6596_v46 = vpack.c.bf16 %v746_v41, %v743_v39  ;;  %v703_v47 = vpop.f32.mrb[6].mxu0  ;;  %v702_v51 = vadd.f32 %v701_v45, %v519_v22 }
 0x409   :  { %v704_v49 = vadd.f32 %v703_v47, %v515_v19  ;;  %v705_v50 = vpop.f32.mrb[7].mxu0 }
 0x40a   :  { %v706_v52 = vadd.f32 %v705_v50, %v519_v22  ;;  %4949 = vmatprep.subr.bf16.mxu1 %v6596_v46 }
 0x40b   :  { %v6599_v53 = vpack.c.bf16 %v704_v49, %v700_v48  ;;  %4950 = vmatpush3.bf16.msra.mxu1 %v6596_v46 }
 0x40c   :  { %v6602_v54 = vpack.c.bf16 %v706_v52, %v702_v51  ;;  %4951 = vmatprep.subr.bf16.mxu1 %v6594_v44 }
 0x40e   :  { %5198 = vmatprep.subr.msk.bf16.mxu0 %vm761_vm0, %v6602_v54  ;;  %v772_v55 = vsel %vm761_vm0, %v6602_v54, 0 }
 0x40f   :  { %4944 = vmatpush3.bf16.xpose.msra.mxu0 %v772_v55  ;;  %4952 = vmatpush3.bf16.msra.mxu1 %v6594_v44 }
 0x416   :  { %4946 = vmatmul.mubr.msk.bf16.vlgmr.msra.gmra.mrb[8].mxu0 %vm761_vm0, %v6599_v53 }
 0x4e9   :  { %v4947_v56 = vpop.f32.mrb[8].mxu0 }
 0x4ea   :  { %v808_v57 = vpop.f32.mrb[9].mxu0  ;;  %v825_v59 = vmul.f32 0.17677669, %v4947_v56 }
 0x4eb   :  { %v823_v60 = vmul.f32 0.17677669, %v808_v57  ;;  %v4948_v61 = vpop.f32.mrb[10].mxu0 }
 0x4ec   :  { %v811_v62 = vpop.f32.mrb[11].mxu0  ;;  %v826_v1 = vmul.f32 0.17677669, %v4948_v61  ;;  %v829_v9 = vadd.f32 %v825_v59, %v6619_v0 }
 0x4ed   :  { %v824_v2 = vmul.f32 0.17677669, %v811_v62  ;;  %v827_v3 = vadd.f32 %v823_v60, %v6613_v58 }
 0x4ee   :  { %v830_v13 = vadd.f32 %v826_v1, %v6623_v4  ;;  %v837_v14 = vsel %vm761_vm0, %v829_v9, -inf }
 0x4ef   :  { %v831_v7 = vsel %vm761_vm0, %v827_v3, -inf  ;;  %v828_v8 = vadd.f32 %v824_v2, %v6616_v63 }
 0x4f0   :  { %832 = vmax.xlane.f32.xlu0 %v831_v7  ;;  %v840_v17 = vsel %vm761_vm0, %v830_v13, -inf }
 0x4f1   :  { %v834_v10 = vsel %vm761_vm0, %v828_v8, -inf }
 0x4f2   :  { %835 = vmax.xlane.f32.xlu1 %v834_v10 }
 0x4f4   :  { %838 = vmax.xlane.f32.xlu0 %v837_v14 }
 0x4f6   :  { %841 = vmax.xlane.f32.xlu1 %v840_v17 }
 0x57d   :  { %v833_v19 = vpop.xlane.xlu0 %832 }
 0x57e   :  { %v843_v21 = vsub.f32 %v827_v3, %v833_v19 }
 0x57f   :  { %v836_v22 = vpop.xlane.xlu1 %835 }
 0x580   :  { %v844_v23 = vsub.f32 %v828_v8, %v836_v22  ;;  %v847_v27 = vmul.f32 1.442695, %v843_v21 }
 0x581   :  { %v839_v24 = vpop.xlane.xlu0 %838 }
 0x582   :  { %v849_v25 = vmul.f32 1.442695, %v844_v23  ;;  %v845_v26 = vsub.f32 %v829_v9, %v839_v24 }
 0x583   :  { %v842_v28 = vpop.xlane.xlu1 %841 }
 0x584   :  { %5451 = vpow2.f32 %v849_v25  ;;  %v851_v29 = vmul.f32 1.442695, %v845_v26  ;;  %v846_v30 = vsub.f32 %v830_v13, %v842_v28 }
 0x586   :  { %5453 = vpow2.f32 %v851_v29  ;;  %v853_v31 = vmul.f32 1.442695, %v846_v30 }
 0x587   :  { %5455 = vpow2.f32 %v847_v27 }
 0x588   :  { %5457 = vpow2.f32 %v853_v31 }
 0x58e   :  { %v5452_v33 = vpop.eup %5451 }
 0x58f   :  { %v858_v35 = vsel %vm761_vm0, %v5452_v33, 0.0 }
 0x590   :  { %v5454_v36 = vpop.eup %5453  ;;  %859 = vadd.xlane.f32.xlu1 %v858_v35 }
 0x591   :  { %v5456_v37 = vpop.eup %5455  ;;  %v861_v38 = vsel %vm761_vm0, %v5454_v36, 0.0 }
 0x592   :  { %v5458_v39 = vpop.eup %5457  ;;  %862 = vadd.xlane.f32.xlu0 %v861_v38  ;;  %v855_v42 = vsel %vm761_vm0, %v5456_v37, 0.0 }
 0x593   :  { %v864_v41 = vsel %vm761_vm0, %v5458_v39, 0.0 }
 0x594   :  { %865 = vadd.xlane.f32.xlu1 %v864_v41 }
 0x596   :  { %856 = vadd.xlane.f32.xlu0 %v855_v42 }
 0x5a5   :  { %950 = vrot.lane.b32.xlu1 %v6602_v54, %s6233_s11 }
 0x5a9   :  { %942 = vrot.lane.b32.xlu1 %v6584_v32, %s6233_s11 }
 0x5ac   :  { %948 = vrot.lane.b32.xlu0 %v6586_v34, %s6233_s11 }
 0x5ad   :  { %944 = vrot.lane.b32.xlu1 %v6599_v53, %s6233_s11 }
 0x5b0   :  { %1274 = vrot.lane.b32.xlu0 %v6586_v34, %s6213_s18 }
 0x5b1   :  { %1276 = vrot.lane.b32.xlu1 %v6602_v54, %s6213_s18 }
 0x5b4   :  { %1270 = vrot.lane.b32.xlu0 %v6584_v32, %s6213_s18 }
 0x5b5   :  { %1272 = vrot.lane.b32.xlu1 %v6599_v53, %s6213_s18 }
 0x61d   :  { %v860_v43 = vpop.xlane.xlu1 %859 }
 0x61e   :  { %5459 = vrcp.f32 %v860_v43 }
 0x61f   :  { %v863_v45 = vpop.xlane.xlu0 %862 }
 0x621   :  { %v866_v47 = vpop.xlane.xlu1 %865 }
 0x622   :  { %5461 = vrcp.f32 %v866_v47 }
 0x623   :  { %5463 = vrcp.f32 %v863_v45  ;;  %v857_v48 = vpop.xlane.xlu0 %856 }
 0x624   :  { %5465 = vrcp.f32 %v857_v48 }
 0x625   :  { %v951_v57 = vpop.permute.xlu1 %950 }
 0x626   :  { %v962_v7 = vsel %vm761_vm0, %v951_v57, 0 }
 0x627   :  { %v949_v49 = vpop.permute.xlu0 %948 }
 0x628   :  { %5199 = vmatprep.subr.msk.bf16.mxu1 %vm761_vm0, %v949_v49  ;;  %v5460_v50 = vpop.eup %5459  ;;  %v959_v3 = vsel %vm761_vm0, %v949_v49, 0 }
 0x629   :  { %v872_v60 = vmul.f32 %v5460_v50, %v5452_v33  ;;  %v943_v2 = vpop.permute.xlu1 %942 }
 0x62b   :  { %v1275_v8 = vpop.permute.xlu0 %1274 }
 0x62c   :  { %v5462_v51 = vpop.eup %5461  ;;  %v1285_v13 = vsel %vm761_vm0, %v1275_v8, 0 }
 0x62d   :  { %v5464_v52 = vpop.eup %5463  ;;  %v874_v56 = vmul.f32 %v5462_v51, %v5458_v39  ;;  %v945_v9 = vpop.permute.xlu1 %944 }
 0x62e   :  { %v5466_v55 = vpop.eup %5465  ;;  %v873_v61 = vmul.f32 %v5464_v52, %v5454_v36 }
 0x62f   :  { %v871_v59 = vmul.f32 %v5466_v55, %v5456_v37  ;;  %v1271_v10 = vpop.permute.xlu0 %1270 }
 0x630   :  { %v876_v1 = vpack.c.bf16 %v874_v56, %v873_v61 }
 0x631   :  { %v875_v62 = vpack.c.bf16 %v872_v60, %v871_v59  ;;  %v1277_v14 = vpop.permute.xlu1 %1276 }
 0x632   :  { %v1288_v17 = vsel %vm761_vm0, %v1277_v14, 0 }
 0x633   :  { %4953 = vmatprep.mubr.msk.bf16.mxu1 %vm761_vm0, %v875_v62 }
 0x634   :  { %4954 = vmatmul.mubr.msk.bf16.vlgmr.msra.gmra.mrb[4].mxu1 %vm761_vm0, %v876_v1 }
 0x635   :  { %4958 = vmatpush3.bf16.xpose.msra.mxu1 %v959_v3  ;;  %4961 = vmatprep.mubr.msk.bf16.mxu1 %vm761_vm0, %v943_v2  ;;  %v1273_v19 = vpop.permute.xlu1 %1272 }
 0x636   :  { %5200 = vmatprep.subr.msk.bf16.mxu1 %vm761_vm0, %v951_v57 }
 0x63d   :  { %4960 = vmatpush3.bf16.xpose.msra.mxu1 %v962_v7 }
 0x63e   :  { %5201 = vmatprep.subr.msk.bf16.mxu1 %vm761_vm0, %v1275_v8 }
 0x644   :  { %4962 = vmatmul.mubr.msk.bf16.vlgmr.msra.gmra.mrb[8].mxu1 %vm761_vm0, %v945_v9 }
 0x645   :  { %4990 = vmatpush3.bf16.xpose.msra.mxu1 %v1285_v13  ;;  %4993 = vmatprep.mubr.msk.bf16.mxu1 %vm761_vm0, %v1271_v10 }
 0x646   :  { %5202 = vmatprep.subr.msk.bf16.mxu1 %vm761_vm0, %v1277_v14 }
 0x64d   :  { %4992 = vmatpush3.bf16.xpose.msra.mxu1 %v1288_v17 }
 0x654   :  { %4994 = vmatmul.mubr.msk.bf16.vlgmr.msra.gmra.mrb[12].mxu1 %vm761_vm0, %v1273_v19 }
 0x707   :  { %v6666_v21 = vpop.f32.mrb[4].mxu1 }
 0x708   :  { %v6668_v22 = vpop.f32.mrb[5].mxu1 }
 0x709   :  { %v6670_v23 = vpop.f32.mrb[6].mxu1 }
 0x70a   :  { %v935_v24 = vpack.c.bf16 %v6670_v23, %v6666_v21  ;;  %v6674_v25 = vpop.f32.mrb[7].mxu1  ;;  %v5311_v21 = vld [vmem:[%s7282_s8 + $0x20] sm:$0xff]   ;;  %v5312_v23 = vld [vmem:[%s7282_s8 + $0x28] sm:$0xff]  }
 0x70b   :  { %v934_v26 = vpack.c.bf16 %v6674_v25, %v6668_v22 }
 0x717   :  { %v4963_v27 = vpop.f32.mrb[8].mxu1 }
 0x718   :  { %v998_v28 = vpop.f32.mrb[9].mxu1  ;;  %v1015_v29 = vmul.f32 0.17677669, %v4963_v27 }
 0x719   :  { %v1013_v30 = vmul.f32 0.17677669, %v998_v28  ;;  %v4964_v31 = vpop.f32.mrb[10].mxu1 }
 0x71a   :  { %v1001_v33 = vpop.f32.mrb[11].mxu1  ;;  %v1016_v37 = vmul.f32 0.17677669, %v4964_v31  ;;  %v1019_v41 = vadd.f32 %v1015_v29, %v6619_v0 }
 0x71b   :  { %v1014_v35 = vmul.f32 0.17677669, %v1001_v33  ;;  %v1017_v36 = vadd.f32 %v1013_v30, %v6613_v58 }
 0x71c   :  { %v1027_v43 = vsel %vm761_vm0, %v1019_v41, -inf  ;;  %v1020_v45 = vadd.f32 %v1016_v37, %v6623_v4 }
 0x71d   :  { %v1021_v38 = vsel %vm761_vm0, %v1017_v36, -inf  ;;  %v1018_v39 = vadd.f32 %v1014_v35, %v6616_v63 }
 0x71e   :  { %1022 = vmax.xlane.f32.xlu0 %v1021_v38  ;;  %v1030_v47 = vsel %vm761_vm0, %v1020_v45, -inf }
 0x71f   :  { %v1024_v42 = vsel %vm761_vm0, %v1018_v39, -inf }
 0x720   :  { %1025 = vmax.xlane.f32.xlu1 %v1024_v42 }
 0x722   :  { %1028 = vmax.xlane.f32.xlu0 %v1027_v43 }
 0x726   :  { %1031 = vmax.xlane.f32.xlu0 %v1030_v47 }
 0x727   :  { %v4995_v48 = vpop.f32.mrb[12].mxu1 }
 0x728   :  { %v1324_v49 = vpop.f32.mrb[13].mxu1  ;;  %v1341_v29 = vmul.f32 0.17677669, %v4995_v48 }
 0x729   :  { %v4996_v50 = vpop.f32.mrb[14].mxu1  ;;  %v1339_v28 = vmul.f32 0.17677669, %v1324_v49 }
 0x72a   :  { %v1327_v51 = vpop.f32.mrb[15].mxu1  ;;  %v1342_v31 = vmul.f32 0.17677669, %v4996_v50  ;;  %v1345_v35 = vadd.f32 %v1341_v29, %v6619_v0 }
 0x72b   :  { %v1343_v30 = vadd.f32 %v1339_v28, %v6613_v58 }
 0x72d   :  { %v1347_v33 = vsel %vm761_vm0, %v1343_v30, -inf }
 0x7ab   :  { %v1023_v52 = vpop.xlane.xlu0 %1022 }
 0x7ac   :  { %v1033_v55 = vsub.f32 %v1017_v36, %v1023_v52  ;;  %v1353_v36 = vsel %vm761_vm0, %v1345_v35, -inf }
 0x7ad   :  { %v1026_v56 = vpop.xlane.xlu1 %1025 }
 0x7ae   :  { %v1037_v60 = vmul.f32 1.442695, %v1033_v55  ;;  %v1034_v61 = vsub.f32 %v1018_v39, %v1026_v56 }
 0x7af   :  { %v1029_v57 = vpop.xlane.xlu0 %1028 }
 0x7b0   :  { %v1035_v59 = vsub.f32 %v1019_v41, %v1029_v57  ;;  %v1039_v3 = vmul.f32 1.442695, %v1034_v61 }
 0x7b2   :  { %v1041_v62 = vmul.f32 1.442695, %v1035_v59 }
 0x7b3   :  { %v1032_v1 = vpop.xlane.xlu0 %1031 }
 0x7b4   :  { %5467 = vpow2.f32 %v1041_v62  ;;  %v1036_v2 = vsub.f32 %v1020_v45, %v1032_v1 }
 0x7b5   :  { %5469 = vpow2.f32 %v1037_v60 }
 0x7b6   :  { %v1043_v7 = vmul.f32 1.442695, %v1036_v2 }
 0x7b8   :  { %5471 = vpow2.f32 %v1043_v7 }
 0x7b9   :  { %5473 = vpow2.f32 %v1039_v3 }
 0x7be   :  { %v6686_v8 = vpop.eup %5467 }
 0x7bf   :  { %v1051_v9 = vsel %vm761_vm0, %v6686_v8, 0.0  ;;  %v5470_v10 = vpop.eup %5469 }
 0x7c0   :  { %1052 = vadd.xlane.f32.xlu0 %v1051_v9  ;;  %v1045_v14 = vsel %vm761_vm0, %v5470_v10, 0.0 }
 0x7c2   :  { %v5472_v13 = vpop.eup %5471 }
 0x7c3   :  { %v1054_v17 = vsel %vm761_vm0, %v5472_v13, 0.0  ;;  %v5474_v19 = vpop.eup %5473 }
 0x7c4   :  { %1046 = vadd.xlane.f32.xlu0 %v1045_v14  ;;  %1055 = vadd.xlane.f32.xlu1 %v1054_v17  ;;  %v1048_v27 = vsel %vm761_vm0, %v5474_v19, 0.0 }
 0x7c8   :  { %1049 = vadd.xlane.f32.xlu1 %v1048_v27 }
 0x7d9   :  { %1071 = vrot.lane.b32.xlu1 %v6594_v44, %s6233_s11 }
 0x7da   :  { %1069 = vrot.lane.b32.xlu0 %v6596_v46, %s6233_s11 }
 0x7dd   :  { %1535 = vrot.lane.b32.xlu1 %v6586_v34, %s6234_s6  ;;  %v1340_v34 = vmul.f32 0.17677669, %v1327_v51 }
 0x7de   :  { %1531 = vrot.lane.b32.xlu0 %v6584_v32, %s6234_s6  ;;  %v1346_v32 = vadd.f32 %v1342_v31, %v6623_v4 }
 0x7e1   :  { %1537 = vrot.lane.b32.xlu1 %v6602_v54, %s6234_s6  ;;  %v1356_v54 = vsel %vm761_vm0, %v1346_v32, -inf }
 0x7e5   :  { %1533 = vrot.lane.b32.xlu1 %v6599_v53, %s6234_s6  ;;  %v1344_v53 = vadd.f32 %v1340_v34, %v6616_v63 }
 0x7e7   :  { %v1350_v37 = vsel %vm761_vm0, %v1344_v53, -inf }
 0x7fd   :  { %1348 = vmax.xlane.f32.xlu0 %v1347_v33 }
 0x801   :  { %1354 = vmax.xlane.f32.xlu0 %v1353_v36 }
 0x805   :  { %1357 = vmax.xlane.f32.xlu0 %v1356_v54 }
 0x809   :  { %1351 = vmax.xlane.f32.xlu1 %v1350_v37  ;;  %v5307_v37 = vld [vmem:[%s7282_s8 + $0x10] sm:$0xff]  }
 0x84d   :  { %v1053_v38 = vpop.xlane.xlu0 %1052 }
 0x851   :  { %v1056_v39 = vpop.xlane.xlu1 %1055  ;;  %v1047_v41 = vpop.xlane.xlu0 %1046 }
 0x852   :  { %5475 = vrcp.f32 %v1056_v39  ;;  %v5309_v39 = vld [vmem:[%s7282_s8] sm:$0xff]  }
 0x853   :  { %5477 = vrcp.f32 %v1047_v41 }
 0x854   :  { %5479 = vrcp.f32 %v1053_v38  ;;  %v5308_v38 = vld [vmem:[%s7282_s8 + $0x18] sm:$0xff]  }
 0x855   :  { %v1050_v42 = vpop.xlane.xlu1 %1049  ;;  %v1070_v43 = vpop.permute.xlu0 %1069 }
 0x856   :  { %5481 = vrcp.f32 %v1050_v42  ;;  %4965 = vmatprep.subr.bf16.mxu0 %v1070_v43 }
 0x857   :  { %4966 = vmatpush3.bf16.msra.mxu0 %v1070_v43 }
 0x859   :  { %v1072_v45 = vpop.permute.xlu1 %1071  ;;  %v1532_v47 = vpop.permute.xlu0 %1531 }
 0x85a   :  { %4967 = vmatprep.subr.bf16.mxu0 %v1072_v45  ;;  %5017 = vmatprep.mubr.msk.bf16.mxu1 %vm761_vm0, %v1532_v47 }
 0x85b   :  { %4968 = vmatpush3.bf16.msra.mxu0 %v1072_v45 }
 0x85c   :  { %v5476_v48 = vpop.eup %5475  ;;  %4973 = vmatprep.subr.bf16.mxu0 %v5307_v37 }
 0x85d   :  { %v1536_v49 = vpop.permute.xlu1 %1535  ;;  %v5478_v50 = vpop.eup %5477  ;;  %v1064_v56 = vmul.f32 %v5476_v48, %v5472_v13 }
 0x85e   :  { %5203 = vmatprep.subr.msk.bf16.mxu1 %vm761_vm0, %v1536_v49  ;;  %v1546_v51 = vsel %vm761_vm0, %v1536_v49, 0  ;;  %v5480_v52 = vpop.eup %5479  ;;  %v1061_v59 = vmul.f32 %v5478_v50, %v5470_v10 }
 0x85f   :  { %5014 = vmatpush3.bf16.xpose.msra.mxu1 %v1546_v51  ;;  %v1063_v61 = vmul.f32 %v5480_v52, %v6686_v8 }
 0x860   :  { %v5482_v55 = vpop.eup %5481 }
 0x861   :  { %v1538_v57 = vpop.permute.xlu1 %1537  ;;  %v1062_v60 = vmul.f32 %v5482_v55, %v5474_v19  ;;  %v1066_v1 = vpack.c.bf16 %v1064_v56, %v1063_v61  ;;  %v5310_v55 = vld [vmem:[%s7282_s8 + $0x8] sm:$0xff]  }
 0x862   :  { %5204 = vmatprep.subr.msk.bf16.mxu1 %vm761_vm0, %v1538_v57  ;;  %v1549_v2 = vsel %vm761_vm0, %v1538_v57, 0 }
 0x863   :  { %v1065_v62 = vpack.c.bf16 %v1062_v60, %v1061_v59 }
 0x865   :  { %4969 = vmatprep.mubr.msk.bf16.mxu0 %vm761_vm0, %v1065_v62  ;;  %v1534_v3 = vpop.permute.xlu1 %1533 }
 0x866   :  { %4970 = vmatmul.mubr.msk.bf16.vlgmr.msra.gmra.mrb[12].mxu0 %vm761_vm0, %v1066_v1 }
 0x867   :  { %5016 = vmatpush3.bf16.xpose.msra.mxu1 %v1549_v2  ;;  %4974 = vmatpush3.bf16.msra.mxu0 %v5307_v37 }
 0x868   :  { %4975 = vmatprep.subr.bf16.mxu0 %v5308_v38 }
 0x86b   :  { %4976 = vmatpush3.bf16.msra.mxu0 %v5308_v38 }
 0x86c   :  { %4981 = vmatprep.subr.bf16.mxu0 %v5309_v39 }
 0x86e   :  { %5018 = vmatmul.mubr.msk.bf16.vlgmr.msra.gmra.mrb[16].mxu1 %vm761_vm0, %v1534_v3 }
 0x86f   :  { %2015 = vmatprep.mubr.bf16.mxu1 %v6232_v40 }
 0x88a   :  { %v1349_v7 = vpop.xlane.xlu0 %1348 }
 0x88b   :  { %v1359_v9 = vsub.f32 %v1343_v30, %v1349_v7 }
 0x88d   :  { %v1363_v13 = vmul.f32 1.442695, %v1359_v9 }
 0x88e   :  { %v1355_v10 = vpop.xlane.xlu0 %1354 }
 0x88f   :  { %v1361_v8 = vsub.f32 %v1345_v35, %v1355_v10 }
 0x891   :  { %v1367_v14 = vmul.f32 1.442695, %v1361_v8 }
 0x892   :  { %v1358_v17 = vpop.xlane.xlu0 %1357 }
 0x893   :  { %5483 = vpow2.f32 %v1367_v14  ;;  %v1362_v19 = vsub.f32 %v1346_v32, %v1358_v17 }
 0x894   :  { %5485 = vpow2.f32 %v1363_v13 }
 0x895   :  { %v1369_v27 = vmul.f32 1.442695, %v1362_v19 }
 0x896   :  { %v1352_v28 = vpop.xlane.xlu1 %1351 }
 0x897   :  { %5487 = vpow2.f32 %v1369_v27  ;;  %v1360_v29 = vsub.f32 %v1344_v53, %v1352_v28 }
 0x899   :  { %v1365_v31 = vmul.f32 1.442695, %v1360_v29 }
 0x89b   :  { %5489 = vpow2.f32 %v1365_v31 }
 0x89d   :  { %v6723_v33 = vpop.eup %5483 }
 0x89e   :  { %v1377_v30 = vsel %vm761_vm0, %v6723_v33, 0.0  ;;  %v5486_v35 = vpop.eup %5485 }
 0x89f   :  { %1378 = vadd.xlane.f32.xlu0 %v1377_v30  ;;  %v1371_v36 = vsel %vm761_vm0, %v5486_v35, 0.0 }
 0x8a1   :  { %v6727_v34 = vpop.eup %5487 }
 0x8a2   :  { %v1380_v32 = vsel %vm761_vm0, %v6727_v34, 0.0 }
 0x8a3   :  { %1372 = vadd.xlane.f32.xlu0 %v1371_v36  ;;  %1381 = vadd.xlane.f32.xlu1 %v1380_v32 }
 0x8a5   :  { %v5490_v54 = vpop.eup %5489 }
 0x8a6   :  { %v1374_v53 = vsel %vm761_vm0, %v5490_v54, 0.0 }
 0x8a7   :  { %1375 = vadd.xlane.f32.xlu1 %v1374_v53 }
 0x8b8   :  { %1395 = vrot.lane.b32.xlu1 %v6594_v44, %s6213_s18 }
 0x8b9   :  { %1393 = vrot.lane.b32.xlu0 %v6596_v46, %s6213_s18 }
 0x92c   :  { %v1379_v42 = vpop.xlane.xlu0 %1378 }
 0x930   :  { %v1382_v41 = vpop.xlane.xlu1 %1381  ;;  %v1373_v45 = vpop.xlane.xlu0 %1372 }
 0x934   :  { %v1376_v43 = vpop.xlane.xlu1 %1375  ;;  %v1394_v2 = vpop.permute.xlu0 %1393 }
 0x935   :  { %5491 = vrcp.f32 %v1376_v43 }
 0x936   :  { %5493 = vrcp.f32 %v1373_v45 }
 0x937   :  { %5495 = vrcp.f32 %v1382_v41 }
 0x938   :  { %5497 = vrcp.f32 %v1379_v42 }
 0x939   :  { %v4971_v47 = vpop.f32.mrb[12].mxu0 }
 0x93a   :  { %v1115_v48 = vpop.f32.mrb[13].mxu0 }
 0x93b   :  { %v4972_v49 = vpop.f32.mrb[14].mxu0 }
 0x93c   :  { %v1131_v50 = vpack.c.bf16 %v4972_v49, %v4971_v47  ;;  %v1118_v51 = vpop.f32.mrb[15].mxu0 }
 0x93d   :  { %v1130_v52 = vpack.c.bf16 %v1118_v51, %v1115_v48 }
 0x93f   :  { %4977 = vmatprep.mubr.msk.bf16.mxu0 %vm761_vm0, %v1130_v52  ;;  %v5492_v61 = vpop.eup %5491 }
 0x940   :  { %4978 = vmatmul.mubr.msk.bf16.vlgmr.msra.gmra.mrb[16].mxu0 %vm761_vm0, %v1131_v50  ;;  %v5494_v10 = vpop.eup %5493  ;;  %v1388_v8 = vmul.f32 %v5492_v61, %v5490_v54 }
 0x941   :  { %4982 = vmatpush3.bf16.msra.mxu0 %v5309_v39  ;;  %4985 = vmatprep.mubr.msk.bf16.mxu0 %vm761_vm0, %v934_v26  ;;  %v5019_v56 = vpop.f32.mrb[16].mxu1  ;;  %v1387_v14 = vmul.f32 %v5494_v10, %v5486_v35  ;;  %v5496_v19 = vpop.eup %5495 }
 0x942   :  { %v1585_v57 = vpop.f32.mrb[17].mxu1  ;;  %4983 = vmatprep.subr.bf16.mxu0 %v5310_v55  ;;  %v1602_v3 = vmul.f32 0.17677669, %v5019_v56  ;;  %v1390_v28 = vmul.f32 %v5496_v19, %v6727_v34 }
 0x943   :  { %v1600_v59 = vmul.f32 0.17677669, %v1585_v57  ;;  %v5020_v60 = vpop.f32.mrb[18].mxu1 }
 0x944   :  { %v1603_v62 = vmul.f32 0.17677669, %v5020_v60  ;;  %v1588_v1 = vpop.f32.mrb[19].mxu1  ;;  %v1606_v17 = vadd.f32 %v1602_v3, %v6619_v0 }
 0x945   :  { %4984 = vmatpush3.bf16.msra.mxu0 %v5310_v55  ;;  %v1601_v7 = vmul.f32 0.17677669, %v1588_v1  ;;  %v1604_v9 = vadd.f32 %v1600_v59, %v6613_v58  ;;  %v1391_v58 = vpack.c.bf16 %v1388_v8, %v1387_v14 }
 0x946   :  { %4997 = vmatprep.subr.bf16.mxu0 %v1394_v2  ;;  %v1607_v26 = vadd.f32 %v1603_v62, %v6623_v4  ;;  %v1396_v4 = vpop.permute.xlu1 %1395  ;;  %v1614_v0 = vsel %vm761_vm0, %v1606_v17, -inf }
 0x947   :  { %v1608_v22 = vsel %vm761_vm0, %v1604_v9, -inf  ;;  %v1605_v25 = vadd.f32 %v1601_v7, %v6616_v63  ;;  %v5498_v63 = vpop.eup %5497 }
 0x948   :  { %1609 = vmax.xlane.f32.xlu1 %v1608_v22  ;;  %v1617_v27 = vsel %vm761_vm0, %v1607_v26, -inf  ;;  %v1389_v29 = vmul.f32 %v5498_v63, %v6723_v33 }
 0x949   :  { %v1611_v13 = vsel %vm761_vm0, %v1605_v25, -inf }
 0x94a   :  { %1612 = vmax.xlane.f32.xlu0 %v1611_v13  ;;  %v1392_v31 = vpack.c.bf16 %v1390_v28, %v1389_v29  ;;  %v4597_v28 = vld [vmem:[#allocation5] ss:$0 sm:$0xff] }
 0x94c   :  { %4986 = vmatmul.mubr.msk.bf16.vlgmr.msra.gmra.mrb[16].mxu0 %vm761_vm0, %v935_v24  ;;  %1618 = vmax.xlane.f32.xlu1 %v1617_v27 }
 0x94d   :  { %4998 = vmatpush3.bf16.msra.mxu0 %v1394_v2  ;;  %5001 = vmatprep.mubr.msk.bf16.mxu0 %vm761_vm0, %v1391_v58  ;;  %v5313_v2 = vld [vmem:[%s7282_s8 + $0x30] sm:$0xff]  }
 0x94e   :  { %4999 = vmatprep.subr.bf16.mxu0 %v1396_v4  ;;  %1615 = vmax.xlane.f32.xlu0 %v1614_v0 }
 0x951   :  { %5000 = vmatpush3.bf16.msra.mxu0 %v1396_v4 }
 0x952   :  { %5005 = vmatprep.subr.bf16.mxu0 %v5311_v21 }
 0x954   :  { %5002 = vmatmul.mubr.msk.bf16.vlgmr.msra.gmra.mrb[20].mxu0 %vm761_vm0, %v1392_v31 }
 0x955   :  { %5006 = vmatpush3.bf16.msra.mxu0 %v5311_v21 }
 0x956   :  { %5007 = vmatprep.subr.bf16.mxu0 %v5312_v23 }
 0x959   :  { %5008 = vmatpush3.bf16.msra.mxu0 %v5312_v23 }
 0x9d5   :  { %v1610_v24 = vpop.xlane.xlu1 %1609 }
 0x9d6   :  { %v1620_v32 = vsub.f32 %v1604_v9, %v1610_v24 }
 0x9d7   :  { %v1613_v30 = vpop.xlane.xlu0 %1612 }
 0x9d8   :  { %v1621_v35 = vsub.f32 %v1605_v25, %v1613_v30  ;;  %v1624_v38 = vmul.f32 1.442695, %v1620_v32 }
 0x9d9   :  { %v1619_v36 = vpop.xlane.xlu1 %1618 }
 0x9da   :  { %v1623_v34 = vsub.f32 %v1607_v26, %v1619_v36  ;;  %v1626_v54 = vmul.f32 1.442695, %v1621_v35 }
 0x9db   :  { %v1616_v53 = vpop.xlane.xlu0 %1615 }
 0x9dc   :  { %v1630_v37 = vmul.f32 1.442695, %v1623_v34  ;;  %v1622_v33 = vsub.f32 %v1606_v17, %v1616_v53  ;;  %v5314_v17 = vld [vmem:[%s7282_s8 + $0x38] sm:$0xff]  }
 0x9de   :  { %5499 = vpow2.f32 %v1630_v37  ;;  %v1628_v39 = vmul.f32 1.442695, %v1622_v33  ;;  %v5315_v37 = vld [vmem:[%s7283_s17] ss:$8 sps:$4 sm:$0xff]   ;;  %v5317_v33 = vld [vmem:[%s7283_s17 + $0x4] ss:$8 sps:$4 sm:$0xff]  }
 0x9df   :  { %5501 = vpow2.f32 %v1626_v54  ;;  %1983 = vmatprep.subr.bf16.mxu1 %v5317_v33 }
 0x9e0   :  { %5503 = vpow2.f32 %v1628_v39  ;;  %1984 = vmatpush1.bf16.msra.mxu1 %v5315_v37  ;;  %v5318_v39 = vld [vmem:[%s7283_s17 + $0x10] ss:$8 sps:$4 sm:$0xff]  }
 0x9e1   :  { %5505 = vpow2.f32 %v1624_v38  ;;  %v5320_v38 = vld [vmem:[%s7283_s17 + $0x14] ss:$8 sps:$4 sm:$0xff]  }
 0x9e2   :  { %1985 = vmatprep.subr.bf16.mxu1 %v5320_v38 }
 0x9e4   :  { %1986 = vmatpush1.bf16.msra.mxu1 %v5318_v39 }
 0x9e8   :  { %v5500_v41 = vpop.eup %5499 }
 0x9e9   :  { %v5502_v42 = vpop.eup %5501  ;;  %v1641_v43 = vsel %vm761_vm0, %v5500_v41, 0.0 }
 0x9ea   :  { %v5504_v45 = vpop.eup %5503  ;;  %1642 = vadd.xlane.f32.xlu1 %v1641_v43  ;;  %v1635_v49 = vsel %vm761_vm0, %v5502_v42, 0.0 }
 0x9eb   :  { %v1638_v47 = vsel %vm761_vm0, %v5504_v45, 0.0  ;;  %v5506_v48 = vpop.eup %5505 }
 0x9ec   :  { %1639 = vadd.xlane.f32.xlu0 %v1638_v47  ;;  %v1632_v50 = vsel %vm761_vm0, %v5506_v48, 0.0 }
 0x9ee   :  { %1636 = vadd.xlane.f32.xlu1 %v1635_v49 }
 0x9f0   :  { %1633 = vadd.xlane.f32.xlu0 %v1632_v50 }
 0x9ff   :  { %1656 = vrot.lane.b32.xlu1 %v6594_v44, %s6234_s6 }
 0xa06   :  { %1654 = vrot.lane.b32.xlu0 %v6596_v46, %s6234_s6 }
 0xa27   :  { %v5003_v51 = vpop.f32.mrb[20].mxu0 }
 0xa28   :  { %v1439_v52 = vpop.f32.mrb[21].mxu0 }
 0xa29   :  { %v5004_v55 = vpop.f32.mrb[22].mxu0 }
 0xa2a   :  { %v1455_v56 = vpack.c.bf16 %v5004_v55, %v5003_v51  ;;  %v1442_v57 = vpop.f32.mrb[23].mxu0 }
 0xa2b   :  { %v1454_v59 = vpack.c.bf16 %v1442_v57, %v1439_v52  ;;  %v5323_v57 = vld [vmem:[%s7283_s17 + $0x24] ss:$8 sps:$4 sm:$0xff]  }
 0xa2c   :  { %1987 = vmatprep.subr.bf16.mxu1 %v5323_v57  ;;  %v5354_v57 = vld [vmem:[%s7284_s15 + $0x38] sm:$0xff]  }
 0xa2d   :  { %5009 = vmatprep.mubr.msk.bf16.mxu0 %vm761_vm0, %v1454_v59  ;;  %v5321_v59 = vld [vmem:[%s7283_s17 + $0x20] ss:$8 sps:$4 sm:$0xff]  }
 0xa2e   :  { %5010 = vmatmul.mubr.msk.bf16.vlgmr.msra.gmra.mrb[16].mxu0 %vm761_vm0, %v1455_v56  ;;  %1988 = vmatpush1.bf16.msra.mxu1 %v5321_v59  ;;  %v1891_v59 = vld [vmem:[#allocation10] sm:$0x3] }
 0xa77   :  { %v1643_v60 = vpop.xlane.xlu1 %1642 }
 0xa79   :  { %v1640_v61 = vpop.xlane.xlu0 %1639 }
 0xa7a   :  { %5507 = vrcp.f32 %v1640_v61  ;;  %v5324_v61 = vld [vmem:[%s7283_s17 + $0x30] ss:$8 sps:$4 sm:$0xff]  }
 0xa7b   :  { %v1637_v62 = vpop.xlane.xlu1 %1636 }
 0xa7c   :  { %5509 = vrcp.f32 %v1637_v62  ;;  %v5329_v62 = vld [vmem:[%s7283_s17 + $0x44] ss:$8 sps:$4 sm:$0xff]  }
 0xa7d   :  { %5511 = vrcp.f32 %v1643_v60  ;;  %v1634_v44 = vpop.xlane.xlu0 %1633  ;;  %v5326_v60 = vld [vmem:[%s7283_s17 + $0x34] ss:$8 sps:$4 sm:$0xff]  }
 0xa7e   :  { %5513 = vrcp.f32 %v1634_v44  ;;  %1989 = vmatprep.subr.bf16.mxu1 %v5326_v60  ;;  %v5327_v44 = vld [vmem:[%s7283_s17 + $0x40] ss:$8 sps:$4 sm:$0xff]   ;;  %v1896_v60 = vrot.slane %v1891_v59, %v6574_v16 }
 0xa7f   :  { %v1657_v1 = vpop.permute.xlu1 %1656  ;;  %1990 = vmatpush1.bf16.msra.mxu1 %v5324_v61  ;;  %v1900_v61 = vrot.slane %v1891_v59, %v6577_v18 }
 0xa80   :  { %1991 = vmatprep.subr.bf16.mxu1 %v5329_v62 }
 0xa81   :  { %v1655_v46 = vpop.permute.xlu0 %1654 }
 0xa82   :  { %5021 = vmatprep.subr.bf16.mxu0 %v1655_v46 }
 0xa83   :  { %5022 = vmatpush3.bf16.msra.mxu0 %v1655_v46  ;;  %1992 = vmatpush1.bf16.msra.mxu1 %v5327_v44  ;;  %v5332_v46 = vld [vmem:[%s7283_s17 + $0x54] ss:$8 sps:$4 sm:$0xff]  }
 0xa84   :  { %5023 = vmatprep.subr.bf16.mxu0 %v1657_v1  ;;  %v5508_v3 = vpop.eup %5507  ;;  %1993 = vmatprep.subr.bf16.mxu1 %v5332_v46 }
 0xa85   :  { %v1650_v22 = vmul.f32 %v5508_v3, %v5504_v45  ;;  %v5333_v3 = vld [vmem:[%s7283_s17 + $0x60] ss:$8 sps:$4 sm:$0xff]  }
 0xa86   :  { %v5510_v7 = vpop.eup %5509 }
 0xa87   :  { %v5512_v9 = vpop.eup %5511  ;;  %5024 = vmatpush3.bf16.msra.mxu0 %v1657_v1  ;;  %v1649_v26 = vmul.f32 %v5510_v7, %v5502_v42  ;;  %v5330_v1 = vld [vmem:[%s7283_s17 + $0x50] ss:$8 sps:$4 sm:$0xff]   ;;  %v5338_v7 = vld [vmem:[%s7283_s17 + $0x74] ss:$8 sps:$4 sm:$0xff]  }
 0xa88   :  { %v5514_v10 = vpop.eup %5513  ;;  %5029 = vmatprep.subr.bf16.mxu0 %v5313_v2  ;;  %v1651_v8 = vmul.f32 %v5512_v9, %v5500_v41  ;;  %1994 = vmatpush1.bf16.msra.mxu1 %v5330_v1  ;;  %v5336_v9 = vld [vmem:[%s7283_s17 + $0x70] ss:$8 sps:$4 sm:$0xff]  }
 0xa89   :  { %v1648_v25 = vmul.f32 %v5514_v10, %v5506_v48 }
 0xa8a   :  { %v1653_v14 = vpack.c.bf16 %v1651_v8, %v1650_v22 }
 0xa8b   :  { %v1652_v13 = vpack.c.bf16 %v1649_v26, %v1648_v25 }
 0xa8d   :  { %5025 = vmatprep.mubr.msk.bf16.mxu0 %vm761_vm0, %v1652_v13 }
 0xa8e   :  { %5026 = vmatmul.mubr.msk.bf16.vlgmr.msra.gmra.mrb[24].mxu0 %vm761_vm0, %v1653_v14 }
 0xa8f   :  { %5030 = vmatpush3.bf16.msra.mxu0 %v5313_v2  ;;  %v5335_v2 = vld [vmem:[%s7283_s17 + $0x64] ss:$8 sps:$4 sm:$0xff]  }
 0xa90   :  { %5031 = vmatprep.subr.bf16.mxu0 %v5314_v17  ;;  %1995 = vmatprep.subr.bf16.mxu1 %v5335_v2 }
 0xa91   :  { %1996 = vmatpush1.bf16.msra.mxu1 %v5333_v3 }
 0xa92   :  { %1997 = vmatprep.subr.bf16.mxu1 %v5338_v7 }
 0xa93   :  { %5032 = vmatpush3.bf16.msra.mxu0 %v5314_v17 }
 0xa95   :  { %1998 = vmatpush1.bf16.msra.mxu1 %v5336_v9 }
 0xb61   :  { %v5027_v19 = vpop.f32.mrb[24].mxu0 }
 0xb62   :  { %v1700_v27 = vpop.f32.mrb[25].mxu0 }
 0xb63   :  { %v5028_v58 = vpop.f32.mrb[26].mxu0 }
 0xb64   :  { %v1716_v63 = vpack.c.bf16 %v5028_v58, %v5027_v19  ;;  %v1703_v4 = vpop.f32.mrb[27].mxu0 }
 0xb65   :  { %v1715_v0 = vpack.c.bf16 %v1703_v4, %v1700_v27 }
 0xb67   :  { %5033 = vmatprep.mubr.msk.bf16.mxu0 %vm761_vm0, %v1715_v0  ;;  %v4598_v0 = vld [vmem:[#allocation7] ss:$0 sm:$0xff] }
 0xb68   :  { %5034 = vmatmul.mubr.msk.bf16.vlgmr.msra.gmra.mrb[16].mxu0 %vm761_vm0, %v1716_v63 }
 0xc3b   :  { %v5035_v29 = vpop.f32.mrb[16].mxu0 }
 0xc3c   :  { %v1773_v31 = vpop.f32.mrb[17].mxu0  ;;  %v1801_v32 = vadd.f32 %v5035_v29, %v4597_v28 }
 0xc3d   :  { %v1799_v21 = vadd.f32 %v4597_v28, %v1773_v31  ;;  %v5036_v23 = vpop.f32.mrb[18].mxu0 }
 0xc3e   :  { %v1776_v24 = vpop.f32.mrb[19].mxu0  ;;  %v1802_v30 = vadd.f32 %v5036_v23, %v4597_v28  ;;  %v1805_v53 = vadd.f32 %v1801_v32, %v6564_v11  ;;  %v4599_v23 = vld [vmem:[#allocation8] ss:$0 sm:$0xff] }
 0xc3f   :  { %v1800_v35 = vadd.f32 %v4597_v28, %v1776_v24  ;;  %v1803_v36 = vadd.f32 %v1799_v21, %v6557_v5 }
 0xc40   :  { %v1806_v54 = vadd.f32 %v1802_v30, %v6566_v12 }
 0xc41   :  { %1809 = vadd.xlane.f32.xlu1 %v1803_v36  ;;  %v1804_v34 = vadd.f32 %v1800_v35, %v6559_v6 }
 0xc43   :  { %1811 = vadd.xlane.f32.xlu0 %v1804_v34 }
 0xc45   :  { %1815 = vadd.xlane.f32.xlu1 %v1806_v54 }
 0xc47   :  { %1813 = vadd.xlane.f32.xlu0 %v1805_v53 }
 0xcce   :  { %v1810_v5 = vpop.xlane.xlu1 %1809 }
 0xccf   :  { %v1817_v41 = vmul.f32 0.0078125, %v1810_v5 }
 0xcd0   :  { %v1812_v42 = vpop.xlane.xlu0 %1811 }
 0xcd1   :  { %v1821_v43 = vsub.f32 %v1803_v36, %v1817_v41  ;;  %v1818_v6 = vmul.f32 0.0078125, %v1812_v42  ;;  %v5339_v41 = vld [vmem:[%s7284_s15 + $0x40] sm:$0xff]  }
 0xcd2   :  { %v1816_v45 = vpop.xlane.xlu1 %1815  ;;  %v5340_v42 = vld [vmem:[%s7284_s15] sm:$0xff]   ;;  %4797 = vmatprep.subr.bf16.mxu0 %v5339_v41 }
 0xcd3   :  { %v1822_v12 = vsub.f32 %v1804_v34, %v1818_v6  ;;  %v1820_v47 = vmul.f32 0.0078125, %v1816_v45  ;;  %v1825_v11 = vmul.f32 %v1821_v43, %v1821_v43  ;;  %4798 = vmatpush3.bf16.msra.mxu0 %v5340_v42  ;;  %v5342_v6 = vld [vmem:[%s7284_s15 + $0x8] sm:$0xff]   ;;  %v5343_v45 = vld [vmem:[%s7284_s15 + $0x50] sm:$0xff]  }
 0xcd4   :  { %v1814_v48 = vpop.xlane.xlu0 %1813 }
 0xcd5   :  { %v1824_v49 = vsub.f32 %v1806_v54, %v1820_v47  ;;  %v1819_v50 = vmul.f32 0.0078125, %v1814_v48  ;;  %1829 = vadd.xlane.f32.xlu0 %v1825_v11  ;;  %v1826_v51 = vmul.f32 %v1822_v12, %v1822_v12  ;;  %v5345_v47 = vld [vmem:[%s7284_s15 + $0x58] sm:$0xff]   ;;  %v5347_v48 = vld [vmem:[%s7284_s15 + $0x60] sm:$0xff]  }
 0xcd6   :  { %v5346_v11 = vld [vmem:[%s7284_s15 + $0x18] sm:$0xff]  }
 0xcd7   :  { %v1823_v52 = vsub.f32 %v1805_v53, %v1819_v50  ;;  %1831 = vadd.xlane.f32.xlu1 %v1826_v51  ;;  %v1828_v55 = vmul.f32 %v1824_v49, %v1824_v49  ;;  %v5349_v50 = vld [vmem:[%s7284_s15 + $0x68] sm:$0xff]  }
 0xcd8   :  { %v5350_v51 = vld [vmem:[%s7284_s15 + $0x28] sm:$0xff]  }
 0xcd9   :  { %v1827_v56 = vmul.f32 %v1823_v52, %v1823_v52 }
 0xcdb   :  { %1835 = vadd.xlane.f32.xlu1 %v1828_v55  ;;  %1833 = vadd.xlane.f32.xlu0 %v1827_v56  ;;  %v5352_v55 = vld [vmem:[%s7284_s15 + $0x30] sm:$0xff]   ;;  %v5353_v56 = vld [vmem:[%s7284_s15 + $0x78] sm:$0xff]  }
 0xd62   :  { %v1830_v10 = vpop.xlane.xlu0 %1829 }
 0xd63   :  { %v1837_v22 = vmul.f32 0.0078125, %v1830_v10 }
 0xd64   :  { %v1832_v25 = vpop.xlane.xlu1 %1831 }
 0xd65   :  { %v1841_v26 = vadd.f32 1e-07, %v1837_v22  ;;  %v1838_v8 = vmul.f32 0.0078125, %v1832_v25 }
 0xd67   :  { %5515 = vrsqrt.f32 %v1841_v26  ;;  %v1842_v13 = vadd.f32 1e-07, %v1838_v8 }
 0xd68   :  { %v1836_v14 = vpop.xlane.xlu1 %1835  ;;  %v1834_v17 = vpop.xlane.xlu0 %1833 }
 0xd69   :  { %5517 = vrsqrt.f32 %v1842_v13  ;;  %v1840_v19 = vmul.f32 0.0078125, %v1836_v14  ;;  %v1839_v27 = vmul.f32 0.0078125, %v1834_v17 }
 0xd6b   :  { %v1844_v58 = vadd.f32 1e-07, %v1840_v19  ;;  %v1843_v63 = vadd.f32 1e-07, %v1839_v27 }
 0xd6d   :  { %5519 = vrsqrt.f32 %v1844_v58 }
 0xd6e   :  { %5521 = vrsqrt.f32 %v1843_v63 }
 0xd71   :  { %v5516_v4 = vpop.eup %5515 }
 0xd72   :  { %v1849_v28 = vmul.f32 %v5516_v4, %v1821_v43  ;;  %v5341_v43 = vld [vmem:[%s7284_s15 + $0x48] sm:$0xff]  }
 0xd73   :  { %v5518_v29 = vpop.eup %5517  ;;  %4799 = vmatprep.subr.bf16.mxu0 %v5341_v43 }
 0xd74   :  { %v1850_v31 = vmul.f32 %v5518_v29, %v1822_v12  ;;  %v1859_v21 = vmul.f32 %v4598_v0, %v1849_v28  ;;  %4800 = vmatpush3.bf16.msra.mxu0 %v5342_v6  ;;  %v5344_v12 = vld [vmem:[%s7284_s15 + $0x10] sm:$0xff]  }
 0xd75   :  { %4801 = vmatprep.subr.bf16.mxu0 %v5343_v45 }
 0xd76   :  { %v1860_v24 = vmul.f32 %v4598_v0, %v1850_v31  ;;  %v6801_v36 = vadd.f32 %v4599_v23, %v1859_v21 }
 0xd77   :  { %v5520_v30 = vpop.eup %5519 }
 0xd78   :  { %v5522_v35 = vpop.eup %5521  ;;  %v6803_v32 = vadd.f32 %v4599_v23, %v1860_v24  ;;  %v1852_v34 = vmul.f32 %v5520_v30, %v1824_v49  ;;  %4802 = vmatpush3.bf16.msra.mxu0 %v5344_v12  ;;  %v5348_v49 = vld [vmem:[%s7284_s15 + $0x20] sm:$0xff]  }
 0xd79   :  { %v1851_v54 = vmul.f32 %v5522_v35, %v1823_v52  ;;  %4803 = vmatprep.subr.bf16.mxu0 %v5345_v47  ;;  %v5351_v52 = vld [vmem:[%s7284_s15 + $0x70] sm:$0xff]  }
 0xd7a   :  { %v1873_v53 = vpack.c.bf16 %v6803_v32, %v6801_v36  ;;  %v1862_v37 = vmul.f32 %v4598_v0, %v1852_v34 }
 0xd7b   :  { %v1861_v33 = vmul.f32 %v4598_v0, %v1851_v54 }
 0xd7c   :  { %2016 = vmatmul.mubr.bf16.vlgmr.msra.gmra.mrb[20].mxu1 %v1873_v53  ;;  %v6810_v39 = vadd.f32 %v4599_v23, %v1862_v37  ;;  %4804 = vmatpush3.bf16.msra.mxu0 %v5346_v11 }
 0xd7d   :  { %2025 = vmatprep.mubr.bf16.mxu1 %v6232_v40  ;;  %v6808_v38 = vadd.f32 %v4599_v23, %v1861_v33  ;;  %4805 = vmatprep.subr.bf16.mxu0 %v5347_v48 }
 0xd7f   :  { %v1874_v5 = vpack.c.bf16 %v6810_v39, %v6808_v38 }
 0xd80   :  { %4806 = vmatpush3.bf16.msra.mxu0 %v5348_v49 }
 0xd81   :  { %4807 = vmatprep.subr.bf16.mxu0 %v5349_v50 }
 0xd84   :  { %2026 = vmatmul.mubr.bf16.gmra.mrb[24].mxu1 %v1874_v5  ;;  %4808 = vmatpush3.bf16.msra.mxu0 %v5350_v51 }
 0xd85   :  { %2577 = vmatprep.mubr.bf16.mxu1 %v6232_v40  ;;  %4809 = vmatprep.subr.bf16.mxu0 %v5351_v52 }
 0xd88   :  { %4810 = vmatpush3.bf16.msra.mxu0 %v5352_v55 }
 0xd89   :  { %4811 = vmatprep.subr.bf16.mxu0 %v5353_v56 }
 0xd8c   :  { %4812 = vmatpush3.bf16.msra.mxu0 %v5354_v57 }
 0xe4f   :  { %v2017_v62 = vpop.f32.mrb[20].mxu1 }
 0xe50   :  { %v6833_v44 = vadd.f32 %v2017_v62, %v1896_v60  ;;  %v2019_v46 = vpop.f32.mrb[21].mxu1 }
 0xe51   :  { %v6835_v1 = vadd.f32 %v2019_v46, %v1900_v61  ;;  %v2021_v2 = vpop.f32.mrb[22].mxu1 }
 0xe52   :  { %v2044_v3 = vmul.f32 0.044715, %v6833_v44  ;;  %v6838_v7 = vadd.f32 %v2021_v2, %v1896_v60  ;;  %v2023_v9 = vpop.f32.mrb[23].mxu1 }
 0xe53   :  { %v2045_v10 = vmul.f32 0.044715, %v6835_v1  ;;  %v6841_v22 = vadd.f32 %v2023_v9, %v1900_v61 }
 0xe54   :  { %v2052_v25 = vmul.f32 %v2044_v3, %v6833_v44  ;;  %v2046_v26 = vmul.f32 0.044715, %v6838_v7 }
 0xe55   :  { %v2053_v8 = vmul.f32 %v2045_v10, %v6835_v1  ;;  %v2047_v13 = vmul.f32 0.044715, %v6841_v22 }
 0xe56   :  { %v2060_v14 = vmul.f32 %v2052_v25, %v6833_v44  ;;  %v2054_v17 = vmul.f32 %v2046_v26, %v6838_v7  ;;  %v2036_v26 = vmul.f32 0.5, %v6833_v44 }
 0xe57   :  { %v2061_v19 = vmul.f32 %v2053_v8, %v6835_v1  ;;  %v2055_v27 = vmul.f32 %v2047_v13, %v6841_v22  ;;  %v2027_v58 = vpop.f32.mrb[24].mxu1  ;;  %v2038_v8 = vmul.f32 0.5, %v6838_v7 }
 0xe58   :  { %v2068_v63 = vadd.f32 %v2060_v14, %v6833_v44  ;;  %v2062_v4 = vmul.f32 %v2054_v17, %v6838_v7  ;;  %v6853_v0 = vadd.f32 %v2027_v58, %v1896_v60  ;;  %v2029_v28 = vpop.f32.mrb[25].mxu1  ;;  %v2037_v14 = vmul.f32 0.5, %v6835_v1 }
 0xe59   :  { %v2063_v29 = vmul.f32 %v2055_v27, %v6841_v22  ;;  %v6856_v31 = vadd.f32 %v2029_v28, %v1900_v61  ;;  %v2031_v21 = vpop.f32.mrb[26].mxu1  ;;  %v2069_v23 = vadd.f32 %v2061_v19, %v6835_v1  ;;  %v2039_v17 = vmul.f32 0.5, %v6841_v22 }
 0xe5a   :  { %v2076_v24 = vmul.f32 0.7978846, %v2068_v63  ;;  %v2070_v30 = vadd.f32 %v2062_v4, %v6838_v7  ;;  %v2048_v35 = vmul.f32 0.044715, %v6853_v0  ;;  %v2032_v34 = vadd.f32 %v2031_v21, %v1896_v60  ;;  %v2033_v54 = vpop.f32.mrb[27].mxu1 }
 0xe5b   :  { %v2049_v53 = vmul.f32 0.044715, %v6856_v31  ;;  %v2034_v37 = vadd.f32 %v2033_v54, %v1900_v61  ;;  %v2071_v33 = vadd.f32 %v2063_v29, %v6841_v22  ;;  %v2077_v5 = vmul.f32 0.7978846, %v2069_v23 }
 0xe5c   :  { %5523 = vtanh.f32 %v2076_v24  ;;  %v2078_v41 = vmul.f32 0.7978846, %v2070_v30  ;;  %v2056_v42 = vmul.f32 %v2048_v35, %v6853_v0  ;;  %v2050_v43 = vmul.f32 0.044715, %v2032_v34 }
 0xe5d   :  { %v2057_v6 = vmul.f32 %v2049_v53, %v6856_v31  ;;  %v2051_v45 = vmul.f32 0.044715, %v2034_v37  ;;  %v2079_v12 = vmul.f32 0.7978846, %v2071_v33  ;;  %5525 = vtanh.f32 %v2077_v5 }
 0xe5e   :  { %5527 = vtanh.f32 %v2078_v41  ;;  %v2064_v47 = vmul.f32 %v2056_v42, %v6853_v0  ;;  %v2058_v11 = vmul.f32 %v2050_v43, %v2032_v34  ;;  %v2040_v7 = vmul.f32 0.5, %v6853_v0 }
 0xe5f   :  { %v2065_v48 = vmul.f32 %v2057_v6, %v6856_v31  ;;  %v2059_v49 = vmul.f32 %v2051_v45, %v2034_v37  ;;  %5529 = vtanh.f32 %v2079_v12  ;;  %v2042_v1 = vmul.f32 0.5, %v2032_v34 }
 0xe60   :  { %v2066_v50 = vmul.f32 %v2058_v11, %v2032_v34  ;;  %v2072_v51 = vadd.f32 %v2064_v47, %v6853_v0  ;;  %v2041_v22 = vmul.f32 0.5, %v6856_v31  ;;  %v2043_v53 = vmul.f32 0.5, %v2034_v37  ;;  %v4616_v47 = vld [vmem:[#allocation11] ss:$0 sm:$0xff] }
 0xe61   :  { %v2067_v52 = vmul.f32 %v2059_v49, %v2034_v37  ;;  %v2073_v55 = vadd.f32 %v2065_v48, %v6856_v31 }
 0xe62   :  { %v2074_v56 = vadd.f32 %v2066_v50, %v2032_v34  ;;  %v2080_v57 = vmul.f32 0.7978846, %v2072_v51 }
 0xe63   :  { %v2075_v59 = vadd.f32 %v2067_v52, %v2034_v37  ;;  %v2081_v60 = vmul.f32 0.7978846, %v2073_v55 }
 0xe64   :  { %v2082_v61 = vmul.f32 0.7978846, %v2074_v56  ;;  %5531 = vtanh.f32 %v2080_v57 }
 0xe65   :  { %v2083_v62 = vmul.f32 0.7978846, %v2075_v59  ;;  %5533 = vtanh.f32 %v2081_v60 }
 0xe66   :  { %v5524_v46 = vpop.eup %5523  ;;  %5535 = vtanh.f32 %v2082_v61 }
 0xe67   :  { %v5526_v2 = vpop.eup %5525  ;;  %v2092_v3 = vadd.f32 1.0, %v5524_v46  ;;  %5537 = vtanh.f32 %v2083_v62 }
 0xe68   :  { %v5528_v9 = vpop.eup %5527  ;;  %v2093_v10 = vadd.f32 1.0, %v5526_v2  ;;  %v5355_v2 = vld [vmem:[%s7285_s16] ss:$12 sps:$4 sm:$0xff]  }
 0xe69   :  { %v5530_v25 = vpop.eup %5529  ;;  %v2094_v13 = vadd.f32 1.0, %v5528_v9  ;;  %v2100_v27 = vmul.f32 %v2092_v3, %v2036_v26  ;;  %v5357_v3 = vld [vmem:[%s7285_s16 + $0x4] ss:$12 sps:$4 sm:$0xff]   ;;  %v5360_v9 = vld [vmem:[%s7285_s16 + $0x1c] ss:$12 sps:$4 sm:$0xff]  }
 0xe6a   :  { %v2095_v19 = vadd.f32 1.0, %v5530_v25  ;;  %v2101_v63 = vmul.f32 %v2093_v10, %v2037_v14  ;;  %2545 = vmatprep.subr.bf16.mxu1 %v5357_v3 }
 0xe6b   :  { %v2102_v58 = vmul.f32 %v2094_v13, %v2038_v8  ;;  %2546 = vmatpush1.bf16.msra.mxu1 %v5355_v2 }
 0xe6c   :  { %v2103_v4 = vmul.f32 %v2095_v19, %v2039_v17  ;;  %2547 = vmatprep.subr.bf16.mxu1 %v5360_v9 }
 0xe6d   :  { %v2108_v28 = vpack.c.bf16 %v2102_v58, %v2100_v27 }
 0xe6e   :  { %v5532_v29 = vpop.eup %5531  ;;  %v2109_v21 = vpack.c.bf16 %v2103_v4, %v2101_v63 }
 0xe6f   :  { %v5534_v23 = vpop.eup %5533  ;;  %v2096_v24 = vadd.f32 1.0, %v5532_v29 }
 0xe70   :  { %v5536_v30 = vpop.eup %5535  ;;  %2279 = vmatprep.mubr.bf16.mxu0 %v2109_v21  ;;  %v2097_v44 = vadd.f32 1.0, %v5534_v23  ;;  %v5363_v21 = vld [vmem:[%s7285_s16 + $0x34] ss:$12 sps:$4 sm:$0xff]  }
 0xe71   :  { %v5538_v35 = vpop.eup %5537  ;;  %2280 = vmatmul.mubr.bf16.vlgmr.msra.gmra.mrb[28].mxu0 %v2108_v28  ;;  %v2098_v54 = vadd.f32 1.0, %v5536_v30  ;;  %v2104_v5 = vmul.f32 %v2096_v24, %v2040_v7  ;;  %v5364_v23 = vld [vmem:[%s7285_s16 + $0x8] ss:$12 sps:$4 sm:$0xff]   ;;  %v5361_v24 = vld [vmem:[%s7285_s16 + $0x30] ss:$12 sps:$4 sm:$0xff]  }
 0xe72   :  { %v2099_v33 = vadd.f32 1.0, %v5538_v35  ;;  %v2105_v42 = vmul.f32 %v2097_v44, %v2041_v22  ;;  %5037 = vmatprep.subr.bf16.mxu0 %v5364_v23  ;;  %v5367_v30 = vld [vmem:[%s7285_s16 + $0x4c] ss:$12 sps:$4 sm:$0xff]   ;;  %v5365_v35 = vld [vmem:[%s7285_s16 + $0x48] ss:$12 sps:$4 sm:$0xff]  }
 0xe73   :  { %v2106_v41 = vmul.f32 %v2098_v54, %v2042_v1  ;;  %5038 = vmatpush3.bf16.msra.mxu0 %v5364_v23  ;;  %v5368_v44 = vld [vmem:[%s7285_s16 + $0x20] ss:$12 sps:$4 sm:$0xff]   ;;  %v5371_v7 = vld [vmem:[%s7285_s16 + $0x64] ss:$12 sps:$4 sm:$0xff]   ;;  %v5375_v22 = vld [vmem:[%s7285_s16 + $0x7c] ss:$12 sps:$4 sm:$0xff]  }
 0xe74   :  { %v2107_v43 = vmul.f32 %v2099_v33, %v2043_v53  ;;  %5039 = vmatprep.subr.bf16.mxu0 %v5368_v44  ;;  %v5372_v1 = vld [vmem:[%s7285_s16 + $0x38] ss:$12 sps:$4 sm:$0xff]   ;;  %v5369_v54 = vld [vmem:[%s7285_s16 + $0x60] ss:$12 sps:$4 sm:$0xff]   ;;  %v5376_v53 = vld [vmem:[%s7285_s16 + $0x50] ss:$12 sps:$4 sm:$0xff]  }
 0xe75   :  { %v2110_v6 = vpack.c.bf16 %v2106_v41, %v2104_v5  ;;  %v5373_v33 = vld [vmem:[%s7285_s16 + $0x78] ss:$12 sps:$4 sm:$0xff]   ;;  %v5379_v5 = vld [vmem:[%s7285_s16 + $0x94] ss:$12 sps:$4 sm:$0xff]  }
 0xe76   :  { %v2111_v45 = vpack.c.bf16 %v2107_v43, %v2105_v42  ;;  %v5380_v41 = vld [vmem:[%s7285_s16 + $0x68] ss:$12 sps:$4 sm:$0xff]   ;;  %v5377_v42 = vld [vmem:[%s7285_s16 + $0x90] ss:$12 sps:$4 sm:$0xff]   ;;  %v5383_v43 = vld [vmem:[%s7285_s16 + $0xac] ss:$12 sps:$4 sm:$0xff]  }
 0xe77   :  { %5040 = vmatpush3.bf16.msra.mxu0 %v5368_v44 }
 0xe78   :  { %2287 = vmatprep.mubr.bf16.mxu0 %v2111_v45  ;;  %5041 = vmatprep.subr.bf16.mxu0 %v5372_v1  ;;  %v5381_v45 = vld [vmem:[%s7285_s16 + $0xa8] ss:$12 sps:$4 sm:$0xff]  }
 0xe79   :  { %2288 = vmatmul.mubr.bf16.gmra.mrb[32].mxu0 %v2110_v6  ;;  %v5384_v6 = vld [vmem:[%s7285_s16 + $0x80] ss:$12 sps:$4 sm:$0xff]  }
 0xe7b   :  { %5042 = vmatpush3.bf16.msra.mxu0 %v5372_v1 }
 0xe7c   :  { %5043 = vmatprep.subr.bf16.mxu0 %v5376_v53 }
 0xe7f   :  { %5044 = vmatpush3.bf16.msra.mxu0 %v5376_v53 }
 0xe80   :  { %5045 = vmatprep.subr.bf16.mxu0 %v5380_v41 }
 0xe83   :  { %5046 = vmatpush3.bf16.msra.mxu0 %v5380_v41 }
 0xe84   :  { %5047 = vmatprep.subr.bf16.mxu0 %v5384_v6 }
 0xe87   :  { %5048 = vmatpush3.bf16.msra.mxu0 %v5384_v6 }
 0xf44   :  { %v4813_v12 = vpop.f32.mrb[28].mxu0 }
 0xf45   :  { %v4814_v11 = vpop.f32.mrb[29].mxu0 }
 0xf46   :  { %v4815_v48 = vadd.f32 %v4814_v11, %v4813_v12  ;;  %v4816_v49 = vpop.f32.mrb[30].mxu0  ;;  %v5385_v12 = vld [vmem:[%s7285_s16 + $0x98] ss:$12 sps:$4 sm:$0xff]  }
 0xf47   :  { %v4817_v0 = vpop.f32.mrb[31].mxu0  ;;  %5049 = vmatprep.subr.bf16.mxu0 %v5385_v12 }
 0xf48   :  { %v2282_v34 = vadd.f32 %v4815_v48, %v4616_v47  ;;  %v4818_v50 = vadd.f32 %v4817_v0, %v4816_v49  ;;  %5050 = vmatpush3.bf16.msra.mxu0 %v5385_v12 }
 0xf4a   :  { %v2285_v51 = vadd.f32 %v4818_v50, %v4616_v47  ;;  %v2296_v31 = vadd.f32 %v2282_v34, %v6801_v36 }
 0xf4c   :  { %2302 = vadd.xlane.f32.xlu0 %v2296_v31  ;;  %v4819_v37 = vpop.f32.mrb[32].mxu0  ;;  %v2297_v52 = vadd.f32 %v2285_v51, %v6803_v32  ;;  %v5358_v32 = vld [vmem:[%s7285_s16 + $0x18] ss:$12 sps:$4 sm:$0xff]  }
 0xf4d   :  { %v4820_v55 = vpop.f32.mrb[33].mxu0  ;;  %2548 = vmatpush1.bf16.msra.mxu1 %v5358_v32 }
 0xf4e   :  { %v4821_v56 = vadd.f32 %v4820_v55, %v4819_v37  ;;  %2304 = vadd.xlane.f32.xlu1 %v2297_v52  ;;  %v4822_v57 = vpop.f32.mrb[34].mxu0  ;;  %2549 = vmatprep.subr.bf16.mxu1 %v5363_v21 }
 0xf4f   :  { %v4823_v59 = vpop.f32.mrb[35].mxu0 }
 0xf50   :  { %v2290_v60 = vadd.f32 %v4821_v56, %v4616_v47  ;;  %v4824_v61 = vadd.f32 %v4823_v59, %v4822_v57  ;;  %v4633_v59 = vld [vmem:[#allocation13] ss:$0 sm:$0xff] }
 0xf51   :  { %2550 = vmatpush1.bf16.msra.mxu1 %v5361_v24 }
 0xf52   :  { %v2293_v62 = vadd.f32 %v4824_v61, %v4616_v47  ;;  %v2298_v46 = vadd.f32 %v2290_v60, %v6808_v38  ;;  %2551 = vmatprep.subr.bf16.mxu1 %v5367_v30  ;;  %v5386_v47 = vld [vmem:[%s7285_s16 + $0xb0] ss:$12 sps:$4 sm:$0xff]  }
 0xf53   :  { %5051 = vmatprep.subr.bf16.mxu0 %v5386_v47 }
 0xf54   :  { %2306 = vadd.xlane.f32.xlu0 %v2298_v46  ;;  %v2299_v36 = vadd.f32 %v2293_v62, %v6810_v39  ;;  %5052 = vmatpush3.bf16.msra.mxu0 %v5386_v47 }
 0xf55   :  { %2552 = vmatpush1.bf16.msra.mxu1 %v5365_v35 }
 0xf56   :  { %2308 = vadd.xlane.f32.xlu1 %v2299_v36  ;;  %2553 = vmatprep.subr.bf16.mxu1 %v5371_v7 }
 0xf59   :  { %2554 = vmatpush1.bf16.msra.mxu1 %v5369_v54 }
 0xf5a   :  { %2555 = vmatprep.subr.bf16.mxu1 %v5375_v22 }
 0xf5d   :  { %2556 = vmatpush1.bf16.msra.mxu1 %v5373_v33 }
 0xf5e   :  { %2557 = vmatprep.subr.bf16.mxu1 %v5379_v5 }
 0xf61   :  { %2558 = vmatpush1.bf16.msra.mxu1 %v5377_v42 }
 0xf62   :  { %2559 = vmatprep.subr.bf16.mxu1 %v5383_v43 }
 0xf65   :  { %2560 = vmatpush1.bf16.msra.mxu1 %v5381_v45 }
 0xfd9   :  { %v2303_v10 = vpop.xlane.xlu0 %2302 }
 0xfda   :  { %v2310_v25 = vmul.f32 0.0078125, %v2303_v10 }
 0xfdb   :  { %v2305_v26 = vpop.xlane.xlu1 %2304 }
 0xfdc   :  { %v6883_v8 = vsub.f32 %v2296_v31, %v2310_v25  ;;  %v2311_v13 = vmul.f32 0.0078125, %v2305_v26 }
 0xfde   :  { %v6885_v38 = vsub.f32 %v2297_v52, %v2311_v13  ;;  %v2318_v39 = vmul.f32 %v6883_v8, %v6883_v8 }
 0xfe0   :  { %2322 = vadd.xlane.f32.xlu0 %v2318_v39  ;;  %v2319_v14 = vmul.f32 %v6885_v38, %v6885_v38 }
 0xfe1   :  { %v2307_v17 = vpop.xlane.xlu0 %2306 }
 0xfe2   :  { %v2312_v19 = vmul.f32 0.0078125, %v2307_v17  ;;  %2324 = vadd.xlane.f32.xlu1 %v2319_v14 }
 0xfe3   :  { %v2309_v27 = vpop.xlane.xlu1 %2308 }
 0xfe4   :  { %v6891_v58 = vsub.f32 %v2298_v46, %v2312_v19  ;;  %v2313_v63 = vmul.f32 0.0078125, %v2309_v27  ;;  %v2400_v19 = vld [vmem:[#allocation16] sm:$0x7] }
 0xfe5   :  { %v2405_v27 = vrot.slane %v2400_v19, %v6574_v16  ;;  %v2413_v7 = vrot.slane %v2400_v19, %v522_v20 }
 0xfe6   :  { %v6893_v4 = vsub.f32 %v2299_v36, %v2313_v63  ;;  %v2320_v28 = vmul.f32 %v6891_v58, %v6891_v58  ;;  %v4634_v36 = vld [vmem:[#allocation14] ss:$0 sm:$0xff]  ;;  %v2409_v63 = vrot.slane %v2400_v19, %v6577_v18 }
 0xfe8   :  { %2326 = vadd.xlane.f32.xlu0 %v2320_v28  ;;  %v2321_v29 = vmul.f32 %v6893_v4, %v6893_v4 }
 0xfea   :  { %2328 = vadd.xlane.f32.xlu1 %v2321_v29 }
0x106d   :  { %v2323_v11 = vpop.xlane.xlu0 %2322 }
0x106e   :  { %v2330_v48 = vmul.f32 0.0078125, %v2323_v11 }
0x106f   :  { %v2325_v49 = vpop.xlane.xlu1 %2324 }
0x1070   :  { %v2334_v0 = vadd.f32 1e-07, %v2330_v48  ;;  %v2331_v34 = vmul.f32 0.0078125, %v2325_v49 }
0x1072   :  { %5539 = vrsqrt.f32 %v2334_v0  ;;  %v2335_v50 = vadd.f32 1e-07, %v2331_v34 }
0x1074   :  { %5541 = vrsqrt.f32 %v2335_v50 }
0x1075   :  { %v2327_v51 = vpop.xlane.xlu0 %2326 }
0x1076   :  { %v2332_v31 = vmul.f32 0.0078125, %v2327_v51 }
0x1077   :  { %v2329_v37 = vpop.xlane.xlu1 %2328 }
0x1078   :  { %v2336_v52 = vadd.f32 1e-07, %v2332_v31  ;;  %v2333_v55 = vmul.f32 0.0078125, %v2329_v37 }
0x107a   :  { %5543 = vrsqrt.f32 %v2336_v52  ;;  %v2337_v56 = vadd.f32 1e-07, %v2333_v55 }
0x107c   :  { %v5540_v57 = vpop.eup %5539  ;;  %5545 = vrsqrt.f32 %v2337_v56 }
0x107d   :  { %v2342_v60 = vmul.f32 %v5540_v57, %v6883_v8 }
0x107e   :  { %v5542_v61 = vpop.eup %5541 }
0x107f   :  { %v2352_v62 = vmul.f32 %v4633_v59, %v2342_v60  ;;  %v2343_v46 = vmul.f32 %v5542_v61, %v6885_v38 }
0x1081   :  { %v2353_v2 = vmul.f32 %v4633_v59, %v2343_v46  ;;  %v6921_v3 = vadd.f32 %v4634_v36, %v2352_v62 }
0x1083   :  { %v6923_v9 = vadd.f32 %v4634_v36, %v2353_v2 }
0x1084   :  { %v5544_v32 = vpop.eup %5543 }
0x1085   :  { %v2366_v10 = vpack.c.bf16 %v6923_v9, %v6921_v3  ;;  %v2344_v25 = vmul.f32 %v5544_v32, %v6891_v58 }
0x1086   :  { %v5546_v26 = vpop.eup %5545 }
0x1087   :  { %2578 = vmatmul.mubr.bf16.vlgmr.msra.gmra.mrb[28].mxu1 %v2366_v10  ;;  %5053 = vmatprep.mubr.bf16.mxu0 %v2366_v10  ;;  %v2345_v8 = vmul.f32 %v5546_v26, %v6893_v4  ;;  %v2354_v13 = vmul.f32 %v4633_v59, %v2344_v25 }
0x1088   :  { %2587 = vmatprep.mubr.bf16.mxu1 %v6232_v40 }
0x1089   :  { %v2355_v38 = vmul.f32 %v4633_v59, %v2345_v8  ;;  %v6930_v39 = vadd.f32 %v4634_v36, %v2354_v13 }
0x108b   :  { %v6932_v14 = vadd.f32 %v4634_v36, %v2355_v38  ;;  %v6997_v38 = vld [vmem:[%s7281_s25] sm:$0xff] }
0x108d   :  { %v2367_v17 = vpack.c.bf16 %v6932_v14, %v6930_v39 }
0x108f   :  { %2588 = vmatmul.mubr.bf16.gmra.mrb[32].mxu1 %v2367_v17  ;;  %5054 = vmatmul.mubr.bf16.vlgmr.msra.gmra.mrb[36].mxu0 %v2367_v17 }
0x115a   :  { %v2579_v58 = vpop.f32.mrb[28].mxu1 }
0x115b   :  { %v2581_v4 = vpop.f32.mrb[29].mxu1  ;;  %v2580_v29 = vadd.f32 %v2579_v58, %v2405_v27  ;;  %v7002_v58 = vld [vmem:[%s7281_s25 + $0x8] sm:$0xff] }
0x115c   :  { %v2583_v28 = vpop.f32.mrb[30].mxu1  ;;  %v2582_v24 = vadd.f32 %v2581_v4, %v2409_v63  ;;  %v7006_v4 = vld [vmem:[%s7281_s25 + $0x10] sm:$0xff] }
0x115d   :  { %v2584_v21 = vadd.f32 %v2583_v28, %v2405_v27  ;;  %v2585_v23 = vpop.f32.mrb[31].mxu1 }
0x115e   :  { %v2586_v30 = vadd.f32 %v2585_v23, %v2409_v63  ;;  %v7012_v23 = vld [vmem:[%s7281_s25 + $0x18] sm:$0xff] }
0x115f   :  { %v6938_v44 = vpack.c.bf16 %v2584_v21, %v2580_v29 }
0x1160   :  { %v6940_v35 = vpack.c.bf16 %v2586_v30, %v2582_v24 }
0x1161   :  { %5061 = vmatprep.mubr.msk.bf16.mxu1 %vm761_vm0, %v6938_v44 }
0x1162   :  { %2837 = vrot.lane.b32.xlu0 %v6940_v35, %s6233_s11  ;;  %v2589_v1 = vpop.f32.mrb[32].mxu1  ;;  %v5055_v54 = vpop.f32.mrb[36].mxu0  ;;  %5205 = vmatprep.subr.msk.bf16.mxu1 %vm761_vm0, %v6940_v35  ;;  %v2658_v22 = vsel %vm761_vm0, %v6940_v35, 0 }
0x1163   :  { %v2591_v53 = vpop.f32.mrb[33].mxu1  ;;  %v2632_v33 = vpop.f32.mrb[37].mxu0  ;;  %5058 = vmatpush3.bf16.xpose.msra.mxu1 %v2658_v22  ;;  %v2590_v42 = vadd.f32 %v2589_v1, %v2405_v27  ;;  %v2641_v43 = vadd.f32 %v5055_v54, %v2413_v7 }
0x1164   :  { %v2593_v5 = vpop.f32.mrb[34].mxu1  ;;  %v5056_v41 = vpop.f32.mrb[38].mxu0  ;;  %v2592_v12 = vadd.f32 %v2591_v53, %v2409_v63  ;;  %v2633_v47 = vadd.f32 %v2632_v33, %v2413_v7 }
0x1165   :  { %v2594_v15 = vadd.f32 %v2593_v5, %v2405_v27  ;;  %v2644_v20 = vadd.f32 %v5056_v41, %v2413_v7  ;;  %v2595_v6 = vpop.f32.mrb[35].mxu1  ;;  %v2635_v45 = vpop.f32.mrb[39].mxu0 }
0x1166   :  { %v2596_v11 = vadd.f32 %v2595_v6, %v2409_v63  ;;  %v2636_v48 = vadd.f32 %v2635_v45, %v2413_v7  ;;  %3163 = vrot.lane.b32.xlu0 %v6940_v35, %s6213_s18 }
0x1167   :  { %v6954_v49 = vpack.c.bf16 %v2594_v15, %v2590_v42  ;;  %v6956_v0 = vpack.c.bf16 %v2644_v20, %v2641_v43 }
0x1168   :  { %v6958_v34 = vpack.c.bf16 %v2596_v11, %v2592_v12  ;;  %v6960_v50 = vpack.c.bf16 %v2636_v48, %v2633_v47 }
0x116a   :  { %3159 = vrot.lane.b32.xlu0 %v6938_v44, %s6213_s18  ;;  %5065 = vmatprep.subr.bf16.mxu0 %v6960_v50  ;;  %v2661_v51 = vsel %vm761_vm0, %v6958_v34, 0 }
0x116b   :  { %2839 = vrot.lane.b32.xlu1 %v6958_v34, %s6233_s11  ;;  %5206 = vmatprep.subr.msk.bf16.mxu1 %vm761_vm0, %v6958_v34 }
0x116c   :  { %5060 = vmatpush3.bf16.xpose.msra.mxu1 %v2661_v51  ;;  %5066 = vmatpush3.bf16.msra.mxu0 %v6960_v50 }
0x116d   :  { %5067 = vmatprep.subr.bf16.mxu0 %v6956_v0 }
0x116f   :  { %2831 = vrot.lane.b32.xlu1 %v6938_v44, %s6233_s11 }
0x1170   :  { %5068 = vmatpush3.bf16.msra.mxu0 %v6956_v0 }
0x1173   :  { %2833 = vrot.lane.b32.xlu1 %v6954_v49, %s6233_s11  ;;  %5062 = vmatmul.mubr.msk.bf16.vlgmr.msra.gmra.mrb[36].mxu1 %vm761_vm0, %v6954_v49 }
0x1177   :  { %3165 = vrot.lane.b32.xlu1 %v6958_v34, %s6213_s18 }
0x117b   :  { %3161 = vrot.lane.b32.xlu1 %v6954_v49, %s6213_s18 }
0x11d4   :  { %v2838_v31 = vpop.permute.xlu0 %2837 }
0x11d5   :  { %v2848_v37 = vsel %vm761_vm0, %v2838_v31, 0  ;;  %5207 = vmatprep.subr.msk.bf16.mxu1 %vm761_vm0, %v2838_v31 }
0x11d6   :  { %5074 = vmatpush3.bf16.xpose.msra.mxu1 %v2848_v37 }
0x11d8   :  { %v3164_v56 = vpop.permute.xlu0 %3163 }
0x11d9   :  { %v3174_v60 = vsel %vm761_vm0, %v3164_v56, 0 }
0x11dc   :  { %v3160_v61 = vpop.permute.xlu0 %3159 }
0x11dd   :  { %v2840_v52 = vpop.permute.xlu1 %2839 }
0x11de   :  { %v2851_v55 = vsel %vm761_vm0, %v2840_v52, 0  ;;  %5208 = vmatprep.subr.msk.bf16.mxu1 %vm761_vm0, %v2840_v52 }
0x11df   :  { %5076 = vmatpush3.bf16.xpose.msra.mxu1 %v2851_v55 }
0x11e0   :  { %5209 = vmatprep.subr.msk.bf16.mxu1 %vm761_vm0, %v3164_v56 }
0x11e1   :  { %v2832_v57 = vpop.permute.xlu1 %2831 }
0x11e2   :  { %5077 = vmatprep.mubr.msk.bf16.mxu1 %vm761_vm0, %v2832_v57 }
0x11e5   :  { %v2834_v59 = vpop.permute.xlu1 %2833 }
0x11e6   :  { %5078 = vmatmul.mubr.msk.bf16.vlgmr.msra.gmra.mrb[40].mxu1 %vm761_vm0, %v2834_v59 }
0x11e7   :  { %5106 = vmatpush3.bf16.xpose.msra.mxu1 %v3174_v60  ;;  %5109 = vmatprep.mubr.msk.bf16.mxu1 %vm761_vm0, %v3160_v61 }
0x11e9   :  { %v3166_v62 = vpop.permute.xlu1 %3165 }
0x11ea   :  { %5210 = vmatprep.subr.msk.bf16.mxu1 %vm761_vm0, %v3166_v62  ;;  %v3177_v46 = vsel %vm761_vm0, %v3166_v62, 0 }
0x11ed   :  { %v3162_v36 = vpop.permute.xlu1 %3161 }
0x11ef   :  { %5108 = vmatpush3.bf16.xpose.msra.mxu1 %v3177_v46 }
0x11f6   :  { %5110 = vmatmul.mubr.msk.bf16.vlgmr.msra.gmra.mrb[44].mxu1 %vm761_vm0, %v3162_v36 }
0x1246   :  { %v5063_v2 = vpop.f32.mrb[36].mxu1 }
0x1247   :  { %v2697_v32 = vpop.f32.mrb[37].mxu1  ;;  %v2714_v10 = vmul.f32 0.17677669, %v5063_v2 }
0x1248   :  { %v2712_v25 = vmul.f32 0.17677669, %v2697_v32  ;;  %v5064_v26 = vpop.f32.mrb[38].mxu1 }
0x1249   :  { %v2700_v8 = vpop.f32.mrb[39].mxu1  ;;  %v2715_v19 = vmul.f32 0.17677669, %v5064_v26  ;;  %v2718_v28 = vadd.f32 %v7006_v4, %v2714_v10 }
0x124a   :  { %v2713_v13 = vmul.f32 0.17677669, %v2700_v8  ;;  %v2716_v17 = vadd.f32 %v6997_v38, %v2712_v25 }
0x124b   :  { %v2726_v21 = vsel %vm761_vm0, %v2718_v28, -inf  ;;  %v2719_v24 = vadd.f32 %v7012_v23, %v2715_v19 }
0x124c   :  { %v2720_v27 = vsel %vm761_vm0, %v2716_v17, -inf  ;;  %v2717_v63 = vadd.f32 %v7002_v58, %v2713_v13 }
0x124d   :  { %2721 = vmax.xlane.f32.xlu0 %v2720_v27  ;;  %v2729_v30 = vsel %vm761_vm0, %v2719_v24, -inf }
0x124e   :  { %v2723_v29 = vsel %vm761_vm0, %v2717_v63, -inf }
0x124f   :  { %2724 = vmax.xlane.f32.xlu1 %v2723_v29 }
0x1251   :  { %2727 = vmax.xlane.f32.xlu0 %v2726_v21 }
0x1255   :  { %2730 = vmax.xlane.f32.xlu0 %v2729_v30 }
0x12b9   :  { %v5079_v7 = vpop.f32.mrb[40].mxu1 }
0x12ba   :  { %v2887_v1 = vpop.f32.mrb[41].mxu1  ;;  %v2904_v54 = vmul.f32 0.17677669, %v5079_v7 }
0x12bb   :  { %v2902_v22 = vmul.f32 0.17677669, %v2887_v1  ;;  %v5080_v53 = vpop.f32.mrb[42].mxu1 }
0x12bc   :  { %v2890_v33 = vpop.f32.mrb[43].mxu1  ;;  %v2905_v5 = vmul.f32 0.17677669, %v5080_v53  ;;  %v2908_v20 = vadd.f32 %v7006_v4, %v2904_v54 }
0x12bd   :  { %v2903_v41 = vmul.f32 0.17677669, %v2890_v33  ;;  %v2906_v42 = vadd.f32 %v6997_v38, %v2902_v22 }
0x12be   :  { %v2909_v45 = vadd.f32 %v7012_v23, %v2905_v5  ;;  %v2916_v12 = vsel %vm761_vm0, %v2908_v20, -inf }
0x12bf   :  { %v2910_v43 = vsel %vm761_vm0, %v2906_v42, -inf  ;;  %v2907_v15 = vadd.f32 %v7002_v58, %v2903_v41 }
0x12c0   :  { %2911 = vmax.xlane.f32.xlu0 %v2910_v43  ;;  %v2919_v47 = vsel %vm761_vm0, %v2909_v45, -inf }
0x12c1   :  { %v2913_v6 = vsel %vm761_vm0, %v2907_v15, -inf }
0x12c2   :  { %2914 = vmax.xlane.f32.xlu1 %v2913_v6 }
0x12c4   :  { %2917 = vmax.xlane.f32.xlu0 %v2916_v12 }
0x12c6   :  { %2920 = vmax.xlane.f32.xlu1 %v2919_v47 }
0x12c9   :  { %v7024_v11 = vpop.f32.mrb[44].mxu1 }
0x12ca   :  { %v7026_v48 = vpop.f32.mrb[45].mxu1 }
0x12cb   :  { %v7028_v51 = vpop.f32.mrb[46].mxu1 }
0x12cc   :  { %v7030_v31 = vpop.f32.mrb[47].mxu1 }
0x12da   :  { %v2722_v37 = vpop.xlane.xlu0 %2721 }
0x12db   :  { %v2732_v52 = vsub.f32 %v2716_v17, %v2722_v37 }
0x12dc   :  { %v2725_v55 = vpop.xlane.xlu1 %2724 }
0x12dd   :  { %v2736_v59 = vmul.f32 1.442695, %v2732_v52  ;;  %v2733_v60 = vsub.f32 %v2717_v63, %v2725_v55 }
0x12de   :  { %v2728_v56 = vpop.xlane.xlu0 %2727 }
0x12df   :  { %v2734_v57 = vsub.f32 %v2718_v28, %v2728_v56  ;;  %v2738_v36 = vmul.f32 1.442695, %v2733_v60 }
0x12e1   :  { %v2740_v61 = vmul.f32 1.442695, %v2734_v57 }
0x12e2   :  { %v2731_v62 = vpop.xlane.xlu0 %2730 }
0x12e3   :  { %5547 = vpow2.f32 %v2740_v61  ;;  %v2735_v46 = vsub.f32 %v2719_v24, %v2731_v62 }
0x12e4   :  { %5549 = vpow2.f32 %v2736_v59 }
0x12e5   :  { %v2742_v2 = vmul.f32 1.442695, %v2735_v46  ;;  %v3230_v46 = vmul.f32 0.17677669, %v7024_v11 }
0x12e7   :  { %5551 = vpow2.f32 %v2742_v2  ;;  %v3231_v2 = vmul.f32 0.17677669, %v7028_v51 }
0x12e8   :  { %5553 = vpow2.f32 %v2738_v36  ;;  %v3234_v36 = vadd.f32 %v7006_v4, %v3230_v46 }
0x12ed   :  { %v5548_v32 = vpop.eup %5547 }
0x12ee   :  { %v2750_v10 = vsel %vm761_vm0, %v5548_v32, 0.0  ;;  %v5550_v25 = vpop.eup %5549 }
0x12ef   :  { %2751 = vadd.xlane.f32.xlu0 %v2750_v10  ;;  %v2744_v8 = vsel %vm761_vm0, %v5550_v25, 0.0 }
0x12f1   :  { %v5552_v26 = vpop.eup %5551 }
0x12f2   :  { %v2753_v13 = vsel %vm761_vm0, %v5552_v26, 0.0  ;;  %v5554_v17 = vpop.eup %5553 }
0x12f3   :  { %2745 = vadd.xlane.f32.xlu0 %v2744_v8  ;;  %2754 = vadd.xlane.f32.xlu1 %v2753_v13  ;;  %v2747_v19 = vsel %vm761_vm0, %v5554_v17, 0.0 }
0x12f7   :  { %2748 = vadd.xlane.f32.xlu1 %v2747_v19 }
0x134d   :  { %v2912_v27 = vpop.xlane.xlu0 %2911 }
0x134e   :  { %v2922_v63 = vsub.f32 %v2906_v42, %v2912_v27 }
0x134f   :  { %v2915_v28 = vpop.xlane.xlu1 %2914 }
0x1350   :  { %v2923_v21 = vsub.f32 %v2907_v15, %v2915_v28  ;;  %v2926_v30 = vmul.f32 1.442695, %v2922_v63 }
0x1351   :  { %v2918_v29 = vpop.xlane.xlu0 %2917 }
0x1352   :  { %v2924_v24 = vsub.f32 %v2908_v20, %v2918_v29  ;;  %v2928_v22 = vmul.f32 1.442695, %v2923_v21 }
0x1353   :  { %v2921_v7 = vpop.xlane.xlu1 %2920 }
0x1354   :  { %v2930_v1 = vmul.f32 1.442695, %v2924_v24  ;;  %v2925_v54 = vsub.f32 %v2909_v45, %v2921_v7 }
0x1356   :  { %5555 = vpow2.f32 %v2930_v1  ;;  %v2932_v53 = vmul.f32 1.442695, %v2925_v54 }
0x1357   :  { %5557 = vpow2.f32 %v2926_v30 }
0x1358   :  { %5559 = vpow2.f32 %v2932_v53 }
0x1359   :  { %5561 = vpow2.f32 %v2928_v22 }
0x1360   :  { %v7036_v33 = vpop.eup %5555 }
0x1361   :  { %v7038_v5 = vpop.eup %5557  ;;  %v2940_v41 = vsel %vm761_vm0, %v7036_v33, 0.0 }
0x1362   :  { %v7042_v42 = vpop.eup %5559  ;;  %2941 = vadd.xlane.f32.xlu0 %v2940_v41  ;;  %v2934_v20 = vsel %vm761_vm0, %v7038_v5, 0.0 }
0x1363   :  { %v2943_v43 = vsel %vm761_vm0, %v7042_v42, 0.0  ;;  %v7046_v15 = vpop.eup %5561 }
0x1364   :  { %2944 = vadd.xlane.f32.xlu1 %v2943_v43  ;;  %v2937_v6 = vsel %vm761_vm0, %v7046_v15, 0.0 }
0x1366   :  { %2935 = vadd.xlane.f32.xlu0 %v2934_v20 }
0x1368   :  { %2938 = vadd.xlane.f32.xlu1 %v2937_v6 }
0x1379   :  { %2960 = vrot.lane.b32.xlu1 %v6956_v0, %s6233_s11 }
0x137c   :  { %2958 = vrot.lane.b32.xlu0 %v6960_v50, %s6233_s11  ;;  %v2752_v45 = vpop.xlane.xlu0 %2751 }
0x137d   :  { %3424 = vrot.lane.b32.xlu1 %v6940_v35, %s6234_s6 }
0x1380   :  { %v2755_v12 = vpop.xlane.xlu1 %2754  ;;  %3420 = vrot.lane.b32.xlu0 %v6938_v44, %s6234_s6  ;;  %v2746_v47 = vpop.xlane.xlu0 %2745 }
0x1381   :  { %3426 = vrot.lane.b32.xlu1 %v6958_v34, %s6234_s6  ;;  %5563 = vrcp.f32 %v2755_v12  ;;  %v3228_v34 = vmul.f32 0.17677669, %v7026_v48 }
0x1382   :  { %5565 = vrcp.f32 %v2746_v47 }
0x1383   :  { %5567 = vrcp.f32 %v2752_v45 }
0x1384   :  { %v2749_v37 = vpop.xlane.xlu1 %2748 }
0x1385   :  { %5569 = vrcp.f32 %v2749_v37  ;;  %3422 = vrot.lane.b32.xlu1 %v6954_v49, %s6234_s6  ;;  %v3232_v49 = vadd.f32 %v6997_v38, %v3228_v34 }
0x1387   :  { %v3236_v10 = vsel %vm761_vm0, %v3232_v49, -inf }
0x138b   :  { %v5564_v52 = vpop.eup %5563 }
0x138c   :  { %v5566_v55 = vpop.eup %5565  ;;  %v2763_v57 = vmul.f32 %v5564_v52, %v5552_v26  ;;  %v3242_v26 = vsel %vm761_vm0, %v3234_v36, -inf }
0x138d   :  { %v5568_v56 = vpop.eup %5567  ;;  %v2760_v59 = vmul.f32 %v5566_v55, %v5550_v25  ;;  %v3235_v25 = vadd.f32 %v7012_v23, %v3231_v2  ;;  %v5388_v2 = vld [vmem:[#allocation17 + $0x18] sm:$0xff]  }
0x138e   :  { %v2762_v44 = vmul.f32 %v5568_v56, %v5548_v32  ;;  %v3229_v32 = vmul.f32 0.17677669, %v7030_v31 }
0x138f   :  { %v5570_v35 = vpop.eup %5569  ;;  %v3245_v11 = vsel %vm761_vm0, %v3235_v25, -inf }
0x1390   :  { %v2761_v60 = vmul.f32 %v5570_v35, %v5554_v17  ;;  %v2765_v62 = vpack.c.bf16 %v2763_v57, %v2762_v44  ;;  %v3233_v48 = vadd.f32 %v7002_v58, %v3229_v32 }
0x1392   :  { %v2764_v61 = vpack.c.bf16 %v2761_v60, %v2760_v59  ;;  %v3239_v8 = vsel %vm761_vm0, %v3233_v48, -inf }
0x1394   :  { %5069 = vmatprep.mubr.msk.bf16.mxu0 %vm761_vm0, %v2764_v61 }
0x1395   :  { %5070 = vmatmul.mubr.msk.bf16.vlgmr.msra.gmra.mrb[40].mxu0 %vm761_vm0, %v2765_v62 }
0x139f   :  { %3237 = vmax.xlane.f32.xlu0 %v3236_v10  ;;  %v5389_v10 = vld [vmem:[#allocation17] sm:$0xff]  }
0x13a3   :  { %3243 = vmax.xlane.f32.xlu0 %v3242_v26 }
0x13a7   :  { %3246 = vmax.xlane.f32.xlu0 %v3245_v11 }
0x13a9   :  { %3240 = vmax.xlane.f32.xlu1 %v3239_v8 }
0x13ef   :  { %v2942_v13 = vpop.xlane.xlu0 %2941 }
0x13f1   :  { %v2945_v51 = vpop.xlane.xlu1 %2944 }
0x13f2   :  { %5571 = vrcp.f32 %v2945_v51 }
0x13f3   :  { %v2936_v17 = vpop.xlane.xlu0 %2935 }
0x13f4   :  { %5573 = vrcp.f32 %v2936_v17 }
0x13f5   :  { %5575 = vrcp.f32 %v2942_v13  ;;  %v2939_v31 = vpop.xlane.xlu1 %2938 }
0x13f6   :  { %5577 = vrcp.f32 %v2939_v31 }
0x13f7   :  { %v2959_v19 = vpop.permute.xlu0 %2958 }
0x13f8   :  { %5081 = vmatprep.subr.bf16.mxu0 %v2959_v19 }
0x13f9   :  { %v2961_v27 = vpop.permute.xlu1 %2960  ;;  %5082 = vmatpush3.bf16.msra.mxu0 %v2959_v19 }
0x13fa   :  { %5083 = vmatprep.subr.bf16.mxu0 %v2961_v27 }
0x13fb   :  { %v3421_v63 = vpop.permute.xlu0 %3420 }
0x13fc   :  { %5133 = vmatprep.mubr.msk.bf16.mxu1 %vm761_vm0, %v3421_v63  ;;  %v5572_v28 = vpop.eup %5571 }
0x13fd   :  { %v3425_v29 = vpop.permute.xlu1 %3424  ;;  %5084 = vmatpush3.bf16.msra.mxu0 %v2961_v27  ;;  %v2953_v1 = vmul.f32 %v5572_v28, %v7042_v42 }
0x13fe   :  { %v5574_v21 = vpop.eup %5573  ;;  %v3435_v24 = vsel %vm761_vm0, %v3425_v29, 0  ;;  %5211 = vmatprep.subr.msk.bf16.mxu1 %vm761_vm0, %v3425_v29 }
0x13ff   :  { %v5576_v30 = vpop.eup %5575  ;;  %5130 = vmatpush3.bf16.xpose.msra.mxu1 %v3435_v24  ;;  %v2950_v22 = vmul.f32 %v5574_v21, %v7038_v5  ;;  %v5390_v24 = vld [vmem:[#allocation17 + $0x8] sm:$0xff]  }
0x1400   :  { %v5578_v7 = vpop.eup %5577  ;;  %v2952_v41 = vmul.f32 %v5576_v30, %v7036_v33 }
0x1401   :  { %v3427_v54 = vpop.permute.xlu1 %3426  ;;  %v2951_v53 = vmul.f32 %v5578_v7, %v7046_v15 }
0x1402   :  { %5212 = vmatprep.subr.msk.bf16.mxu1 %vm761_vm0, %v3427_v54  ;;  %v2955_v20 = vpack.c.bf16 %v2953_v1, %v2952_v41  ;;  %v3438_v6 = vsel %vm761_vm0, %v3427_v54, 0 }
0x1403   :  { %v2954_v43 = vpack.c.bf16 %v2951_v53, %v2950_v22 }
0x1405   :  { %5085 = vmatprep.mubr.msk.bf16.mxu0 %vm761_vm0, %v2954_v43  ;;  %v3423_v45 = vpop.permute.xlu1 %3422 }
0x1406   :  { %5086 = vmatmul.mubr.msk.bf16.vlgmr.msra.gmra.mrb[44].mxu0 %vm761_vm0, %v2955_v20 }
0x1407   :  { %5132 = vmatpush3.bf16.xpose.msra.mxu1 %v3438_v6 }
0x140e   :  { %5134 = vmatmul.mubr.msk.bf16.vlgmr.msra.gmra.mrb[48].mxu1 %vm761_vm0, %v3423_v45 }
0x140f   :  { %3904 = vmatprep.mubr.bf16.mxu1 %v6232_v40 }
0x142c   :  { %v3238_v5 = vpop.xlane.xlu0 %3237 }
0x142d   :  { %v3248_v42 = vsub.f32 %v3232_v49, %v3238_v5 }
0x142f   :  { %v3252_v12 = vmul.f32 1.442695, %v3248_v42 }
0x1430   :  { %v3244_v15 = vpop.xlane.xlu0 %3243 }
0x1431   :  { %v3250_v33 = vsub.f32 %v3234_v36, %v3244_v15  ;;  %v5387_v36 = vld [vmem:[#allocation17 + $0x10] sm:$0xff]  }
0x1432   :  { %5089 = vmatprep.subr.bf16.mxu0 %v5387_v36 }
0x1433   :  { %v3256_v47 = vmul.f32 1.442695, %v3250_v33  ;;  %5090 = vmatpush3.bf16.msra.mxu0 %v5387_v36 }
0x1434   :  { %v3247_v37 = vpop.xlane.xlu0 %3246  ;;  %5091 = vmatprep.subr.bf16.mxu0 %v5388_v2 }
0x1435   :  { %5579 = vpow2.f32 %v3256_v47  ;;  %v3251_v52 = vsub.f32 %v3235_v25, %v3247_v37 }
0x1436   :  { %v3241_v55 = vpop.xlane.xlu1 %3240  ;;  %5581 = vpow2.f32 %v3252_v12 }
0x1437   :  { %v3258_v56 = vmul.f32 1.442695, %v3251_v52  ;;  %v3249_v35 = vsub.f32 %v3233_v48, %v3241_v55  ;;  %5092 = vmatpush3.bf16.msra.mxu0 %v5388_v2 }
0x1438   :  { %5097 = vmatprep.subr.bf16.mxu0 %v5389_v10 }
0x1439   :  { %5583 = vpow2.f32 %v3258_v56  ;;  %v3254_v57 = vmul.f32 1.442695, %v3249_v35 }
0x143b   :  { %5585 = vpow2.f32 %v3254_v57 }
0x143f   :  { %v7091_v59 = vpop.eup %5579 }
0x1440   :  { %v3266_v60 = vsel %vm761_vm0, %v7091_v59, 0.0  ;;  %v7095_v44 = vpop.eup %5581 }
0x1441   :  { %3267 = vadd.xlane.f32.xlu0 %v3266_v60  ;;  %v3260_v62 = vsel %vm761_vm0, %v7095_v44, 0.0 }
0x1443   :  { %v7097_v61 = vpop.eup %5583 }
0x1444   :  { %v3269_v34 = vsel %vm761_vm0, %v7097_v61, 0.0 }
0x1445   :  { %v5586_v46 = vpop.eup %5585  ;;  %3261 = vadd.xlane.f32.xlu0 %v3260_v62  ;;  %3270 = vadd.xlane.f32.xlu1 %v3269_v34  ;;  %v5392_v62 = vld [vmem:[#allocation17 + $0x28] sm:$0xff]  }
0x1446   :  { %v3263_v49 = vsel %vm761_vm0, %v5586_v46, 0.0 }
0x1449   :  { %3264 = vadd.xlane.f32.xlu1 %v3263_v49 }
0x145a   :  { %3284 = vrot.lane.b32.xlu1 %v6956_v0, %s6213_s18 }
0x145b   :  { %3282 = vrot.lane.b32.xlu0 %v6960_v50, %s6213_s18  ;;  %s7286_s18 = sld [smem:[#allocation61_spill]] }
0x1468   :  { %v5071_v32 = vpop.f32.mrb[40].mxu0 }
0x1469   :  { %v2808_v25 = vpop.f32.mrb[41].mxu0 }
0x146a   :  { %v5072_v26 = vpop.f32.mrb[42].mxu0 }
0x146b   :  { %v2824_v48 = vpack.c.bf16 %v5072_v26, %v5071_v32  ;;  %v2811_v11 = vpop.f32.mrb[43].mxu0 }
0x146c   :  { %v2823_v8 = vpack.c.bf16 %v2811_v11, %v2808_v25 }
0x14ce   :  { %v3268_v51 = vpop.xlane.xlu0 %3267 }
0x14d2   :  { %v3271_v13 = vpop.xlane.xlu1 %3270  ;;  %v3262_v31 = vpop.xlane.xlu0 %3261 }
0x14d6   :  { %v3265_v17 = vpop.xlane.xlu1 %3264  ;;  %v3283_v43 = vpop.permute.xlu0 %3282 }
0x14d7   :  { %5587 = vrcp.f32 %v3265_v17 }
0x14d8   :  { %5589 = vrcp.f32 %v3262_v31 }
0x14d9   :  { %v5087_v19 = vpop.f32.mrb[44].mxu0  ;;  %5591 = vrcp.f32 %v3271_v13 }
0x14da   :  { %v3004_v27 = vpop.f32.mrb[45].mxu0  ;;  %5593 = vrcp.f32 %v3268_v51 }
0x14db   :  { %v5088_v63 = vpop.f32.mrb[46].mxu0 }
0x14dc   :  { %v3020_v28 = vpack.c.bf16 %v5088_v63, %v5087_v19  ;;  %v3007_v29 = vpop.f32.mrb[47].mxu0 }
0x14dd   :  { %v3019_v21 = vpack.c.bf16 %v3007_v29, %v3004_v27 }
0x14df   :  { %5093 = vmatprep.mubr.msk.bf16.mxu0 %vm761_vm0, %v3019_v21 }
0x14e0   :  { %5094 = vmatmul.mubr.msk.bf16.vlgmr.msra.gmra.mrb[48].mxu0 %vm761_vm0, %v3020_v28 }
0x14e1   :  { %5098 = vmatpush3.bf16.msra.mxu0 %v5389_v10  ;;  %5101 = vmatprep.mubr.msk.bf16.mxu0 %vm761_vm0, %v2823_v8  ;;  %v5135_v30 = vpop.f32.mrb[48].mxu1  ;;  %v5588_v22 = vpop.eup %5587 }
0x14e2   :  { %v3474_v7 = vpop.f32.mrb[49].mxu1  ;;  %5099 = vmatprep.subr.bf16.mxu0 %v5390_v24  ;;  %v3491_v20 = vmul.f32 0.17677669, %v5135_v30  ;;  %v5590_v5 = vpop.eup %5589  ;;  %v3277_v12 = vmul.f32 %v5588_v22, %v5586_v46 }
0x14e3   :  { %v3489_v1 = vmul.f32 0.17677669, %v3474_v7  ;;  %v5136_v54 = vpop.f32.mrb[50].mxu1  ;;  %v3276_v52 = vmul.f32 %v5590_v5, %v7095_v44  ;;  %v5391_v44 = vld [vmem:[#allocation17 + $0x20] sm:$0xff]  }
0x14e4   :  { %v3492_v53 = vmul.f32 0.17677669, %v5136_v54  ;;  %v3477_v41 = vpop.f32.mrb[51].mxu1  ;;  %v3495_v47 = vadd.f32 %v7006_v4, %v3491_v20 }
0x14e5   :  { %v3493_v6 = vadd.f32 %v6997_v38, %v3489_v1  ;;  %5100 = vmatpush3.bf16.msra.mxu0 %v5390_v24  ;;  %v3490_v45 = vmul.f32 0.17677669, %v3477_v41  ;;  %v5592_v38 = vpop.eup %5591  ;;  %v3280_v56 = vpack.c.bf16 %v3277_v12, %v3276_v52 }
0x14e6   :  { %5113 = vmatprep.subr.bf16.mxu0 %v3283_v43  ;;  %v3496_v42 = vadd.f32 %v7012_v23, %v3492_v53  ;;  %v5594_v23 = vpop.eup %5593  ;;  %v3503_v35 = vsel %vm761_vm0, %v3495_v47, -inf  ;;  %v3279_v4 = vmul.f32 %v5592_v38, %v7097_v61  ;;  %v5393_v53 = vld [vmem:[#allocation17 + $0x30] sm:$0xff]  }
0x14e7   :  { %v3494_v15 = vadd.f32 %v7002_v58, %v3490_v45  ;;  %v3497_v33 = vsel %vm761_vm0, %v3493_v6, -inf  ;;  %v3285_v58 = vpop.permute.xlu1 %3284  ;;  %v3278_v57 = vmul.f32 %v5594_v23, %v7091_v59 }
0x14e8   :  { %3498 = vmax.xlane.f32.xlu1 %v3497_v33  ;;  %v3506_v55 = vsel %vm761_vm0, %v3496_v42, -inf }
0x14e9   :  { %v3500_v37 = vsel %vm761_vm0, %v3494_v15, -inf  ;;  %v3281_v60 = vpack.c.bf16 %v3279_v4, %v3278_v57 }
0x14ea   :  { %3501 = vmax.xlane.f32.xlu0 %v3500_v37 }
0x14ec   :  { %5102 = vmatmul.mubr.msk.bf16.vlgmr.msra.gmra.mrb[48].mxu0 %vm761_vm0, %v2824_v48  ;;  %3507 = vmax.xlane.f32.xlu1 %v3506_v55 }
0x14ed   :  { %5114 = vmatpush3.bf16.msra.mxu0 %v3283_v43  ;;  %5117 = vmatprep.mubr.msk.bf16.mxu0 %vm761_vm0, %v3280_v56 }
0x14ee   :  { %5115 = vmatprep.subr.bf16.mxu0 %v3285_v58  ;;  %3504 = vmax.xlane.f32.xlu0 %v3503_v35 }
0x14f1   :  { %5116 = vmatpush3.bf16.msra.mxu0 %v3285_v58  ;;  %v4691_v58 = vld [vmem:[#allocation19] ss:$0 sm:$0xff] }
0x14f2   :  { %5121 = vmatprep.subr.bf16.mxu0 %v5391_v44 }
0x14f4   :  { %5118 = vmatmul.mubr.msk.bf16.vlgmr.msra.gmra.mrb[52].mxu0 %vm761_vm0, %v3281_v60 }
0x14f5   :  { %5122 = vmatpush3.bf16.msra.mxu0 %v5391_v44 }
0x14f6   :  { %5123 = vmatprep.subr.bf16.mxu0 %v5392_v62 }
0x14f9   :  { %5124 = vmatpush3.bf16.msra.mxu0 %v5392_v62 }
0x1575   :  { %v3499_v34 = vpop.xlane.xlu1 %3498 }
0x1576   :  { %v3509_v2 = vsub.f32 %v3493_v6, %v3499_v34 }
0x1577   :  { %v3502_v46 = vpop.xlane.xlu0 %3501 }
0x1578   :  { %v3510_v49 = vsub.f32 %v3494_v15, %v3502_v46  ;;  %v3513_v26 = vmul.f32 1.442695, %v3509_v2 }
0x1579   :  { %v3508_v36 = vpop.xlane.xlu1 %3507 }
0x157a   :  { %v3512_v61 = vsub.f32 %v3496_v42, %v3508_v36  ;;  %v3515_v10 = vmul.f32 1.442695, %v3510_v49 }
0x157b   :  { %v3505_v32 = vpop.xlane.xlu0 %3504 }
0x157c   :  { %v3519_v25 = vmul.f32 1.442695, %v3512_v61  ;;  %v3511_v59 = vsub.f32 %v3495_v47, %v3505_v32  ;;  %v5394_v47 = vld [vmem:[#allocation17 + $0x38] sm:$0xff]  }
0x157d   :  { %v5397_v32 = vld [vmem:[%s7286_s18 + $0x4] ss:$8 sps:$4 sm:$0xff]  }
0x157e   :  { %5595 = vpow2.f32 %v3519_v25  ;;  %v3517_v48 = vmul.f32 1.442695, %v3511_v59  ;;  %v5400_v25 = vld [vmem:[%s7286_s18 + $0x14] ss:$8 sps:$4 sm:$0xff]   ;;  %3872 = vmatprep.subr.bf16.mxu1 %v5397_v32 }
0x157f   :  { %5597 = vpow2.f32 %v3515_v10  ;;  %v5395_v10 = vld [vmem:[%s7286_s18] ss:$8 sps:$4 sm:$0xff]  }
0x1580   :  { %5599 = vpow2.f32 %v3517_v48  ;;  %3873 = vmatpush1.bf16.msra.mxu1 %v5395_v10 }
0x1581   :  { %5601 = vpow2.f32 %v3513_v26  ;;  %3874 = vmatprep.subr.bf16.mxu1 %v5400_v25 }
0x1588   :  { %v5596_v11 = vpop.eup %5595 }
0x1589   :  { %v5598_v8 = vpop.eup %5597  ;;  %v3530_v13 = vsel %vm761_vm0, %v5596_v11, 0.0 }
0x158a   :  { %v5600_v51 = vpop.eup %5599  ;;  %3531 = vadd.xlane.f32.xlu1 %v3530_v13  ;;  %v3524_v19 = vsel %vm761_vm0, %v5598_v8, 0.0 }
0x158b   :  { %v3527_v17 = vsel %vm761_vm0, %v5600_v51, 0.0  ;;  %v5602_v31 = vpop.eup %5601 }
0x158c   :  { %3528 = vadd.xlane.f32.xlu0 %v3527_v17  ;;  %v3521_v27 = vsel %vm761_vm0, %v5602_v31, 0.0 }
0x158e   :  { %3525 = vadd.xlane.f32.xlu1 %v3524_v19 }
0x1590   :  { %3522 = vadd.xlane.f32.xlu0 %v3521_v27 }
0x159f   :  { %3545 = vrot.lane.b32.xlu1 %v6956_v0, %s6234_s6 }
0x15a6   :  { %3543 = vrot.lane.b32.xlu0 %v6960_v50, %s6234_s6 }
0x15c7   :  { %v5119_v63 = vpop.f32.mrb[52].mxu0 }
0x15c8   :  { %v3328_v28 = vpop.f32.mrb[53].mxu0 }
0x15c9   :  { %v5120_v29 = vpop.f32.mrb[54].mxu0 }
0x15ca   :  { %v3344_v21 = vpack.c.bf16 %v5120_v29, %v5119_v63  ;;  %v3331_v24 = vpop.f32.mrb[55].mxu0  ;;  %v5403_v29 = vld [vmem:[%s7286_s18 + $0x24] ss:$8 sps:$4 sm:$0xff]  }
0x15cb   :  { %v3343_v30 = vpack.c.bf16 %v3331_v24, %v3328_v28  ;;  %v5406_v24 = vld [vmem:[%s7286_s18 + $0x34] ss:$8 sps:$4 sm:$0xff]  }
0x15cd   :  { %5125 = vmatprep.mubr.msk.bf16.mxu0 %vm761_vm0, %v3343_v30  ;;  %v5404_v30 = vld [vmem:[%s7286_s18 + $0x30] ss:$8 sps:$4 sm:$0xff]  }
0x15ce   :  { %5126 = vmatmul.mubr.msk.bf16.vlgmr.msra.gmra.mrb[48].mxu0 %vm761_vm0, %v3344_v21  ;;  %v5401_v21 = vld [vmem:[%s7286_s18 + $0x20] ss:$8 sps:$4 sm:$0xff]  }
0x1617   :  { %v3532_v7 = vpop.xlane.xlu1 %3531 }
0x1619   :  { %v3529_v1 = vpop.xlane.xlu0 %3528 }
0x161a   :  { %5603 = vrcp.f32 %v3529_v1  ;;  %v5407_v1 = vld [vmem:[%s7286_s18 + $0x40] ss:$8 sps:$4 sm:$0xff]  }
0x161b   :  { %v3526_v54 = vpop.xlane.xlu1 %3525 }
0x161c   :  { %5605 = vrcp.f32 %v3526_v54  ;;  %v5412_v54 = vld [vmem:[%s7286_s18 + $0x54] ss:$8 sps:$4 sm:$0xff]  }
0x161d   :  { %5607 = vrcp.f32 %v3532_v7  ;;  %v3523_v0 = vpop.xlane.xlu0 %3522  ;;  %v5409_v7 = vld [vmem:[%s7286_s18 + $0x44] ss:$8 sps:$4 sm:$0xff]  }
0x161e   :  { %5609 = vrcp.f32 %v3523_v0  ;;  %v5410_v0 = vld [vmem:[%s7286_s18 + $0x50] ss:$8 sps:$4 sm:$0xff]  }
0x161f   :  { %v3546_v50 = vpop.permute.xlu1 %3545 }
0x1621   :  { %v3544_v22 = vpop.permute.xlu0 %3543 }
0x1622   :  { %5137 = vmatprep.subr.bf16.mxu0 %v3544_v22 }
0x1623   :  { %5138 = vmatpush3.bf16.msra.mxu0 %v3544_v22  ;;  %v5415_v22 = vld [vmem:[%s7286_s18 + $0x64] ss:$8 sps:$4 sm:$0xff]  }
0x1624   :  { %5139 = vmatprep.subr.bf16.mxu0 %v3546_v50  ;;  %v5604_v41 = vpop.eup %5603 }
0x1625   :  { %v3539_v45 = vmul.f32 %v5604_v41, %v5600_v51  ;;  %v5416_v41 = vld [vmem:[%s7286_s18 + $0x70] ss:$8 sps:$4 sm:$0xff]  }
0x1626   :  { %v5606_v43 = vpop.eup %5605 }
0x1627   :  { %v5608_v20 = vpop.eup %5607  ;;  %5140 = vmatpush3.bf16.msra.mxu0 %v3546_v50  ;;  %v3538_v42 = vmul.f32 %v5606_v43, %v5598_v8  ;;  %v5413_v50 = vld [vmem:[%s7286_s18 + $0x60] ss:$8 sps:$4 sm:$0xff]  }
0x1628   :  { %v5610_v6 = vpop.eup %5609  ;;  %5145 = vmatprep.subr.bf16.mxu0 %v5393_v53  ;;  %v3540_v15 = vmul.f32 %v5608_v20, %v5596_v11 }
0x1629   :  { %v3537_v5 = vmul.f32 %v5610_v6, %v5602_v31 }
0x162a   :  { %v3542_v12 = vpack.c.bf16 %v3540_v15, %v3539_v45 }
0x162b   :  { %v3541_v33 = vpack.c.bf16 %v3538_v42, %v3537_v5 }
0x162d   :  { %5141 = vmatprep.mubr.msk.bf16.mxu0 %vm761_vm0, %v3541_v33 }
0x162e   :  { %5142 = vmatmul.mubr.msk.bf16.vlgmr.msra.gmra.mrb[56].mxu0 %vm761_vm0, %v3542_v12 }
0x162f   :  { %5146 = vmatpush3.bf16.msra.mxu0 %v5393_v53  ;;  %v5418_v53 = vld [vmem:[%s7286_s18 + $0x74] ss:$8 sps:$4 sm:$0xff]  }
0x1630   :  { %5147 = vmatprep.subr.bf16.mxu0 %v5394_v47 }
0x1633   :  { %5148 = vmatpush3.bf16.msra.mxu0 %v5394_v47 }
0x1701   :  { %v5143_v37 = vpop.f32.mrb[56].mxu0 }
0x1702   :  { %v3589_v52 = vpop.f32.mrb[57].mxu0 }
0x1703   :  { %v5144_v38 = vpop.f32.mrb[58].mxu0 }
0x1704   :  { %v3605_v55 = vpack.c.bf16 %v5144_v38, %v5143_v37  ;;  %v3592_v56 = vpop.f32.mrb[59].mxu0 }
0x1705   :  { %v3604_v23 = vpack.c.bf16 %v3592_v56, %v3589_v52 }
0x1707   :  { %5149 = vmatprep.mubr.msk.bf16.mxu0 %vm761_vm0, %v3604_v23 }
0x1708   :  { %5150 = vmatmul.mubr.msk.bf16.vlgmr.msra.gmra.mrb[48].mxu0 %vm761_vm0, %v3605_v55  ;;  %v4692_v55 = vld [vmem:[#allocation20] ss:$0 sm:$0xff] }
0x17db   :  { %v5151_v35 = vpop.f32.mrb[48].mxu0 }
0x17dc   :  { %v3662_v4 = vpop.f32.mrb[49].mxu0  ;;  %v3690_v49 = vadd.f32 %v5151_v35, %v4691_v58 }
0x17dd   :  { %v3688_v57 = vadd.f32 %v4691_v58, %v3662_v4  ;;  %v5152_v60 = vpop.f32.mrb[50].mxu0  ;;  %v4693_v4 = vld [vmem:[#allocation22] ss:$0 sm:$0xff] }
0x17de   :  { %v3665_v44 = vpop.f32.mrb[51].mxu0  ;;  %v3691_v34 = vadd.f32 %v5152_v60, %v4691_v58  ;;  %v3694_v61 = vadd.f32 %v3690_v49, %v6930_v39 }
0x17df   :  { %v3692_v62 = vadd.f32 %v3688_v57, %v6921_v3  ;;  %v3689_v46 = vadd.f32 %v4691_v58, %v3665_v44  ;;  %v5398_v3 = vld [vmem:[%s7286_s18 + $0x10] ss:$8 sps:$4 sm:$0xff]  }
0x17e0   :  { %v3695_v2 = vadd.f32 %v3691_v34, %v6932_v14  ;;  %3875 = vmatpush1.bf16.msra.mxu1 %v5398_v3  ;;  %v5419_v3 = vld [vmem:[#allocation25 + $0x40] sm:$0xff]  }
0x17e1   :  { %v3693_v36 = vadd.f32 %v3689_v46, %v6923_v9  ;;  %3698 = vadd.xlane.f32.xlu1 %v3692_v62  ;;  %3876 = vmatprep.subr.bf16.mxu1 %v5403_v29 }
0x17e2   :  { %4883 = vmatprep.subr.bf16.mxu0 %v5419_v3 }
0x17e3   :  { %3700 = vadd.xlane.f32.xlu0 %v3693_v36 }
0x17e4   :  { %3877 = vmatpush1.bf16.msra.mxu1 %v5401_v21 }
0x17e5   :  { %3704 = vadd.xlane.f32.xlu1 %v3695_v2  ;;  %3878 = vmatprep.subr.bf16.mxu1 %v5406_v24 }
0x17e7   :  { %3702 = vadd.xlane.f32.xlu0 %v3694_v61 }
0x17e8   :  { %3879 = vmatpush1.bf16.msra.mxu1 %v5404_v30 }
0x17e9   :  { %3880 = vmatprep.subr.bf16.mxu1 %v5409_v7 }
0x17ec   :  { %3881 = vmatpush1.bf16.msra.mxu1 %v5407_v1 }
0x17ed   :  { %3882 = vmatprep.subr.bf16.mxu1 %v5412_v54 }
0x17f0   :  { %3883 = vmatpush1.bf16.msra.mxu1 %v5410_v0 }
0x17f1   :  { %3884 = vmatprep.subr.bf16.mxu1 %v5415_v22 }
0x17f4   :  { %3885 = vmatpush1.bf16.msra.mxu1 %v5413_v50 }
0x17f5   :  { %3886 = vmatprep.subr.bf16.mxu1 %v5418_v53 }
0x17f8   :  { %3887 = vmatpush1.bf16.msra.mxu1 %v5416_v41 }
0x186e   :  { %v3699_v59 = vpop.xlane.xlu1 %3698 }
0x186f   :  { %v3706_v26 = vmul.f32 0.0078125, %v3699_v59  ;;  %v5420_v59 = vld [vmem:[#allocation25] sm:$0xff]  }
0x1870   :  { %v3701_v48 = vpop.xlane.xlu0 %3700  ;;  %4884 = vmatpush3.bf16.msra.mxu0 %v5420_v59 }
0x1871   :  { %v3710_v9 = vsub.f32 %v3692_v62, %v3706_v26  ;;  %v3707_v11 = vmul.f32 0.0078125, %v3701_v48  ;;  %v5421_v26 = vld [vmem:[#allocation25 + $0x48] sm:$0xff]  }
0x1872   :  { %v3705_v14 = vpop.xlane.xlu1 %3704  ;;  %v5422_v48 = vld [vmem:[#allocation25 + $0x8] sm:$0xff]   ;;  %4885 = vmatprep.subr.bf16.mxu0 %v5421_v26 }
0x1873   :  { %v3711_v8 = vsub.f32 %v3693_v36, %v3707_v11  ;;  %v3709_v39 = vmul.f32 0.0078125, %v3705_v14  ;;  %v3714_v13 = vmul.f32 %v3710_v9, %v3710_v9  ;;  %v5424_v11 = vld [vmem:[#allocation25 + $0x10] sm:$0xff]   ;;  %v5426_v14 = vld [vmem:[#allocation25 + $0x18] sm:$0xff]  }
0x1874   :  { %v3703_v51 = vpop.xlane.xlu0 %3702  ;;  %4886 = vmatpush3.bf16.msra.mxu0 %v5422_v48 }
0x1875   :  { %v3713_v17 = vsub.f32 %v3695_v2, %v3709_v39  ;;  %v3708_v31 = vmul.f32 0.0078125, %v3703_v51  ;;  %3718 = vadd.xlane.f32.xlu0 %v3714_v13  ;;  %v3715_v19 = vmul.f32 %v3711_v8, %v3711_v8  ;;  %v5428_v39 = vld [vmem:[#allocation25 + $0x20] sm:$0xff]   ;;  %v5429_v13 = vld [vmem:[#allocation25 + $0x68] sm:$0xff]  }
0x1876   :  { %v5430_v51 = vld [vmem:[#allocation25 + $0x28] sm:$0xff]  }
0x1877   :  { %v3712_v27 = vsub.f32 %v3694_v61, %v3708_v31  ;;  %3720 = vadd.xlane.f32.xlu1 %v3715_v19  ;;  %v3717_v63 = vmul.f32 %v3713_v17, %v3713_v17  ;;  %v5432_v31 = vld [vmem:[#allocation25 + $0x30] sm:$0xff]   ;;  %v5433_v19 = vld [vmem:[#allocation25 + $0x78] sm:$0xff]  }
0x1879   :  { %v3716_v28 = vmul.f32 %v3712_v27, %v3712_v27 }
0x187b   :  { %3724 = vadd.xlane.f32.xlu1 %v3717_v63  ;;  %3722 = vadd.xlane.f32.xlu0 %v3716_v28  ;;  %v3780_v63 = vld [vmem:[#allocation23] sm:$0x3] }
0x187c   :  { %v3785_v28 = vrot.slane %v3780_v63, %v6574_v16  ;;  %v3789_v29 = vrot.slane %v3780_v63, %v6577_v18 }
0x1902   :  { %v3719_v43 = vpop.xlane.xlu0 %3718 }
0x1903   :  { %v3726_v20 = vmul.f32 0.0078125, %v3719_v43 }
0x1904   :  { %v3721_v6 = vpop.xlane.xlu1 %3720 }
0x1905   :  { %v3730_v45 = vadd.f32 1e-07, %v3726_v20  ;;  %v3727_v5 = vmul.f32 0.0078125, %v3721_v6 }
0x1907   :  { %5611 = vrsqrt.f32 %v3730_v45  ;;  %v3731_v42 = vadd.f32 1e-07, %v3727_v5 }
0x1908   :  { %v3725_v15 = vpop.xlane.xlu1 %3724  ;;  %v3723_v33 = vpop.xlane.xlu0 %3722 }
0x1909   :  { %5613 = vrsqrt.f32 %v3731_v42  ;;  %v3729_v12 = vmul.f32 0.0078125, %v3725_v15  ;;  %v3728_v47 = vmul.f32 0.0078125, %v3723_v33 }
0x190b   :  { %v3733_v37 = vadd.f32 1e-07, %v3729_v12  ;;  %v3732_v52 = vadd.f32 1e-07, %v3728_v47 }
0x190d   :  { %5615 = vrsqrt.f32 %v3733_v37 }
0x190e   :  { %5617 = vrsqrt.f32 %v3732_v52 }
0x1911   :  { %v5612_v38 = vpop.eup %5611 }
0x1912   :  { %v3738_v56 = vmul.f32 %v5612_v38, %v3710_v9  ;;  %v5423_v9 = vld [vmem:[#allocation25 + $0x50] sm:$0xff]  }
0x1913   :  { %v5614_v23 = vpop.eup %5613  ;;  %4887 = vmatprep.subr.bf16.mxu0 %v5423_v9 }
0x1914   :  { %v3739_v58 = vmul.f32 %v5614_v23, %v3711_v8  ;;  %v3748_v35 = vmul.f32 %v4692_v55, %v3738_v56  ;;  %4888 = vmatpush3.bf16.msra.mxu0 %v5424_v11  ;;  %v5427_v8 = vld [vmem:[#allocation25 + $0x60] sm:$0xff]  }
0x1916   :  { %v3749_v57 = vmul.f32 %v4692_v55, %v3739_v58  ;;  %v7159_v62 = vadd.f32 %v4693_v4, %v3748_v35 }
0x1917   :  { %v5616_v60 = vpop.eup %5615 }
0x1918   :  { %v5618_v44 = vpop.eup %5617  ;;  %v7161_v34 = vadd.f32 %v4693_v4, %v3749_v57  ;;  %v3741_v46 = vmul.f32 %v5616_v60, %v3713_v17  ;;  %v5431_v17 = vld [vmem:[#allocation25 + $0x70] sm:$0xff]  }
0x1919   :  { %v3740_v49 = vmul.f32 %v5618_v44, %v3712_v27  ;;  %v5434_v27 = vld [vmem:[#allocation25 + $0x38] sm:$0xff]  }
0x191a   :  { %v3762_v36 = vpack.c.bf16 %v7161_v34, %v7159_v62  ;;  %v3751_v2 = vmul.f32 %v4692_v55, %v3741_v46 }
0x191b   :  { %v3750_v61 = vmul.f32 %v4692_v55, %v3740_v49 }
0x191c   :  { %3905 = vmatmul.mubr.bf16.vlgmr.msra.gmra.mrb[52].mxu1 %v3762_v36  ;;  %v7168_v32 = vadd.f32 %v4693_v4, %v3751_v2 }
0x191d   :  { %3914 = vmatprep.mubr.bf16.mxu1 %v6232_v40  ;;  %v7166_v10 = vadd.f32 %v4693_v4, %v3750_v61  ;;  %v5425_v40 = vld [vmem:[#allocation25 + $0x58] sm:$0xff]  }
0x191e   :  { %4889 = vmatprep.subr.bf16.mxu0 %v5425_v40 }
0x191f   :  { %v3763_v25 = vpack.c.bf16 %v7168_v32, %v7166_v10  ;;  %4890 = vmatpush3.bf16.msra.mxu0 %v5426_v14 }
0x1920   :  { %4891 = vmatprep.subr.bf16.mxu0 %v5427_v8 }
0x1923   :  { %4892 = vmatpush3.bf16.msra.mxu0 %v5428_v39 }
0x1924   :  { %3915 = vmatmul.mubr.bf16.gmra.mrb[56].mxu1 %v3763_v25  ;;  %4893 = vmatprep.subr.bf16.mxu0 %v5429_v13 }
0x1927   :  { %4894 = vmatpush3.bf16.msra.mxu0 %v5430_v51 }
0x1928   :  { %4895 = vmatprep.subr.bf16.mxu0 %v5431_v17 }
0x192b   :  { %4896 = vmatpush3.bf16.msra.mxu0 %v5432_v31 }
0x192c   :  { %4897 = vmatprep.subr.bf16.mxu0 %v5433_v19 }
0x192f   :  { %4898 = vmatpush3.bf16.msra.mxu0 %v5434_v27 }
0x19ef   :  { %v3906_v21 = vpop.f32.mrb[52].mxu1 }
0x19f0   :  { %v7174_v24 = vadd.f32 %v3906_v21, %v3785_v28  ;;  %v3908_v30 = vpop.f32.mrb[53].mxu1 }
0x19f1   :  { %v7176_v7 = vadd.f32 %v3908_v30, %v3789_v29  ;;  %v3910_v1 = vpop.f32.mrb[54].mxu1 }
0x19f2   :  { %v3933_v54 = vmul.f32 0.044715, %v7174_v24  ;;  %v7179_v0 = vadd.f32 %v3910_v1, %v3785_v28  ;;  %v3912_v22 = vpop.f32.mrb[55].mxu1  ;;  %v3925_v1 = vmul.f32 0.5, %v7174_v24 }
0x19f3   :  { %v3934_v50 = vmul.f32 0.044715, %v7176_v7  ;;  %v7182_v53 = vadd.f32 %v3912_v22, %v3789_v29 }
0x19f4   :  { %v3941_v16 = vmul.f32 %v3933_v54, %v7174_v24  ;;  %v3935_v18 = vmul.f32 0.044715, %v7179_v0  ;;  %v3927_v54 = vmul.f32 0.5, %v7179_v0 }
0x19f5   :  { %v3942_v41 = vmul.f32 %v3934_v50, %v7176_v7  ;;  %v3936_v43 = vmul.f32 0.044715, %v7182_v53  ;;  %v3926_v50 = vmul.f32 0.5, %v7176_v7 }
0x19f6   :  { %v3949_v20 = vmul.f32 %v3941_v16, %v7174_v24  ;;  %v3943_v6 = vmul.f32 %v3935_v18, %v7179_v0  ;;  %v3928_v16 = vmul.f32 0.5, %v7182_v53 }
0x19f7   :  { %v3950_v45 = vmul.f32 %v3942_v41, %v7176_v7  ;;  %v3944_v5 = vmul.f32 %v3936_v43, %v7182_v53  ;;  %v3916_v42 = vpop.f32.mrb[56].mxu1 }
0x19f8   :  { %v3957_v15 = vadd.f32 %v3949_v20, %v7174_v24  ;;  %v3951_v33 = vmul.f32 %v3943_v6, %v7179_v0  ;;  %v7194_v12 = vadd.f32 %v3916_v42, %v3785_v28  ;;  %v3918_v47 = vpop.f32.mrb[57].mxu1 }
0x19f9   :  { %v3952_v37 = vmul.f32 %v3944_v5, %v7182_v53  ;;  %v7197_v52 = vadd.f32 %v3918_v47, %v3789_v29  ;;  %v3920_v38 = vpop.f32.mrb[58].mxu1  ;;  %v3958_v55 = vadd.f32 %v3950_v45, %v7176_v7 }
0x19fa   :  { %v3965_v56 = vmul.f32 0.7978846, %v3957_v15  ;;  %v3959_v23 = vadd.f32 %v3951_v33, %v7179_v0  ;;  %v3937_v58 = vmul.f32 0.044715, %v7194_v12  ;;  %v3921_v35 = vadd.f32 %v3920_v38, %v3785_v28  ;;  %v3922_v4 = vpop.f32.mrb[59].mxu1 }
0x19fb   :  { %v3938_v57 = vmul.f32 0.044715, %v7197_v52  ;;  %v3923_v60 = vadd.f32 %v3922_v4, %v3789_v29  ;;  %v3960_v44 = vadd.f32 %v3952_v37, %v7182_v53  ;;  %v3966_v46 = vmul.f32 0.7978846, %v3958_v55 }
0x19fc   :  { %5619 = vtanh.f32 %v3965_v56  ;;  %v3967_v49 = vmul.f32 0.7978846, %v3959_v23  ;;  %v3945_v36 = vmul.f32 %v3937_v58, %v7194_v12  ;;  %v3939_v2 = vmul.f32 0.044715, %v3921_v35 }
0x19fd   :  { %v3946_v61 = vmul.f32 %v3938_v57, %v7197_v52  ;;  %v3940_v25 = vmul.f32 0.044715, %v3923_v60  ;;  %v3968_v3 = vmul.f32 0.7978846, %v3960_v44  ;;  %5621 = vtanh.f32 %v3966_v46 }
0x19fe   :  { %5623 = vtanh.f32 %v3967_v49  ;;  %v3953_v59 = vmul.f32 %v3945_v36, %v7194_v12  ;;  %v3947_v26 = vmul.f32 %v3939_v2, %v3921_v35  ;;  %v3929_v0 = vmul.f32 0.5, %v7194_v12  ;;  %v4710_v36 = vld [vmem:[#allocation26] ss:$0 sm:$0xff] }
0x19ff   :  { %v3954_v48 = vmul.f32 %v3946_v61, %v7197_v52  ;;  %v3948_v9 = vmul.f32 %v3940_v25, %v3923_v60  ;;  %5625 = vtanh.f32 %v3968_v3  ;;  %v3931_v7 = vmul.f32 0.5, %v3921_v35 }
0x1a00   :  { %v3955_v11 = vmul.f32 %v3947_v26, %v3921_v35  ;;  %v3961_v40 = vadd.f32 %v3953_v59, %v7194_v12  ;;  %v3930_v53 = vmul.f32 0.5, %v7197_v52  ;;  %v3932_v55 = vmul.f32 0.5, %v3923_v60 }
0x1a01   :  { %v3956_v14 = vmul.f32 %v3948_v9, %v3923_v60  ;;  %v3962_v8 = vadd.f32 %v3954_v48, %v7197_v52 }
0x1a02   :  { %v3963_v39 = vadd.f32 %v3955_v11, %v3921_v35  ;;  %v3969_v13 = vmul.f32 0.7978846, %v3961_v40 }
0x1a03   :  { %v3964_v51 = vadd.f32 %v3956_v14, %v3923_v60  ;;  %v3970_v17 = vmul.f32 0.7978846, %v3962_v8 }
0x1a04   :  { %v3971_v31 = vmul.f32 0.7978846, %v3963_v39  ;;  %5627 = vtanh.f32 %v3969_v13 }
0x1a05   :  { %v3972_v19 = vmul.f32 0.7978846, %v3964_v51  ;;  %5629 = vtanh.f32 %v3970_v17 }
0x1a06   :  { %v5620_v27 = vpop.eup %5619  ;;  %5631 = vtanh.f32 %v3971_v31 }
0x1a07   :  { %v5622_v63 = vpop.eup %5621  ;;  %v3981_v28 = vadd.f32 1.0, %v5620_v27  ;;  %5633 = vtanh.f32 %v3972_v19 }
0x1a08   :  { %v5624_v29 = vpop.eup %5623  ;;  %v3982_v21 = vadd.f32 1.0, %v5622_v63 }
0x1a09   :  { %v5626_v30 = vpop.eup %5625  ;;  %v3983_v22 = vadd.f32 1.0, %v5624_v29  ;;  %v3989_v41 = vmul.f32 %v3981_v28, %v3925_v1 }
0x1a0a   :  { %v3984_v18 = vadd.f32 1.0, %v5626_v30  ;;  %v3990_v20 = vmul.f32 %v3982_v21, %v3926_v50  ;;  %v5435_v50 = vld [vmem:[#allocation31] sm:$0xff]  }
0x1a0b   :  { %v3991_v43 = vmul.f32 %v3983_v22, %v3927_v54  ;;  %5153 = vmatprep.subr.bf16.mxu1 %v5435_v50 }
0x1a0c   :  { %v3992_v6 = vmul.f32 %v3984_v18, %v3928_v16  ;;  %v5436_v16 = vld [vmem:[#allocation31 + $0x8] sm:$0xff]   ;;  %5154 = vmatpush3.bf16.msra.mxu1 %v5435_v50  ;;  %v5437_v18 = vld [vmem:[#allocation31 + $0x10] sm:$0xff]  }
0x1a0d   :  { %v3997_v45 = vpack.c.bf16 %v3991_v43, %v3989_v41  ;;  %5155 = vmatprep.subr.bf16.mxu1 %v5436_v16  ;;  %v5438_v41 = vld [vmem:[#allocation31 + $0x18] sm:$0xff]   ;;  %v5439_v43 = vld [vmem:[#allocation31 + $0x20] sm:$0xff]  }
0x1a0e   :  { %v5628_v5 = vpop.eup %5627  ;;  %v3998_v42 = vpack.c.bf16 %v3992_v6, %v3990_v20  ;;  %v5440_v20 = vld [vmem:[#allocation31 + $0x28] sm:$0xff]   ;;  %v5441_v6 = vld [vmem:[#allocation31 + $0x30] sm:$0xff]  }
0x1a0f   :  { %v5630_v15 = vpop.eup %5629  ;;  %v3985_v33 = vadd.f32 1.0, %v5628_v5 }
0x1a10   :  { %v5632_v47 = vpop.eup %5631  ;;  %4168 = vmatprep.mubr.bf16.mxu0 %v3998_v42  ;;  %v3986_v24 = vadd.f32 1.0, %v5630_v15  ;;  %5156 = vmatpush3.bf16.msra.mxu1 %v5436_v16 }
0x1a11   :  { %v5634_v37 = vpop.eup %5633  ;;  %4169 = vmatmul.mubr.bf16.vlgmr.msra.gmra.mrb[60].mxu0 %v3997_v45  ;;  %v3987_v38 = vadd.f32 1.0, %v5632_v47  ;;  %v3993_v23 = vmul.f32 %v3985_v33, %v3929_v0  ;;  %5157 = vmatprep.subr.bf16.mxu1 %v5437_v18  ;;  %v5442_v45 = vld [vmem:[#allocation31 + $0x38] sm:$0xff]  }
0x1a12   :  { %v3988_v56 = vadd.f32 1.0, %v5634_v37  ;;  %v3994_v4 = vmul.f32 %v3986_v24, %v3930_v53 }
0x1a13   :  { %v3995_v58 = vmul.f32 %v3987_v38, %v3931_v7 }
0x1a14   :  { %v3996_v57 = vmul.f32 %v3988_v56, %v3932_v55  ;;  %5158 = vmatpush3.bf16.msra.mxu1 %v5437_v18 }
0x1a15   :  { %v3999_v44 = vpack.c.bf16 %v3995_v58, %v3993_v23  ;;  %5159 = vmatprep.subr.bf16.mxu1 %v5438_v41  ;;  %v4727_v23 = vld [vmem:[#allocation28] ss:$0 sm:$0xff] }
0x1a16   :  { %v4000_v46 = vpack.c.bf16 %v3996_v57, %v3994_v4 }
0x1a18   :  { %4176 = vmatprep.mubr.bf16.mxu0 %v4000_v46  ;;  %5160 = vmatpush3.bf16.msra.mxu1 %v5438_v41  ;;  %v4728_v46 = vld [vmem:[#allocation29] ss:$0 sm:$0xff] }
0x1a19   :  { %4177 = vmatmul.mubr.bf16.gmra.mrb[64].mxu0 %v3999_v44  ;;  %5161 = vmatprep.subr.bf16.mxu1 %v5439_v43 }
0x1a1c   :  { %5162 = vmatpush3.bf16.msra.mxu1 %v5439_v43 }
0x1a1d   :  { %5163 = vmatprep.subr.bf16.mxu1 %v5440_v20 }
0x1a20   :  { %5164 = vmatpush3.bf16.msra.mxu1 %v5440_v20 }
0x1a21   :  { %5165 = vmatprep.subr.bf16.mxu1 %v5441_v6 }
0x1a24   :  { %5166 = vmatpush3.bf16.msra.mxu1 %v5441_v6 }
0x1a25   :  { %5167 = vmatprep.subr.bf16.mxu1 %v5442_v45 }
0x1a28   :  { %5168 = vmatpush3.bf16.msra.mxu1 %v5442_v45 }
0x1ae4   :  { %v4899_v49 = vpop.f32.mrb[60].mxu0 }
0x1ae5   :  { %v4900_v2 = vpop.f32.mrb[61].mxu0 }
0x1ae6   :  { %v4901_v61 = vadd.f32 %v4900_v2, %v4899_v49  ;;  %v4902_v25 = vpop.f32.mrb[62].mxu0 }
0x1ae7   :  { %v4903_v12 = vpop.f32.mrb[63].mxu0 }
0x1ae8   :  { %v4171_v35 = vadd.f32 %v4901_v61, %v4710_v36  ;;  %v4904_v3 = vadd.f32 %v4903_v12, %v4902_v25 }
0x1aea   :  { %v4174_v59 = vadd.f32 %v4904_v3, %v4710_v36  ;;  %v4185_v52 = vadd.f32 %v4171_v35, %v7159_v62 }
0x1aec   :  { %4191 = vadd.xlane.f32.xlu0 %v4185_v52  ;;  %v4905_v60 = vpop.f32.mrb[64].mxu0  ;;  %v4186_v26 = vadd.f32 %v4174_v59, %v7161_v34 }
0x1aed   :  { %v4906_v48 = vpop.f32.mrb[65].mxu0 }
0x1aee   :  { %v4907_v9 = vadd.f32 %v4906_v48, %v4905_v60  ;;  %4193 = vadd.xlane.f32.xlu1 %v4186_v26  ;;  %v4908_v11 = vpop.f32.mrb[66].mxu0 }
0x1aef   :  { %v4909_v40 = vpop.f32.mrb[67].mxu0 }
0x1af0   :  { %v4179_v14 = vadd.f32 %v4907_v9, %v4710_v36  ;;  %v4910_v8 = vadd.f32 %v4909_v40, %v4908_v11  ;;  %v4729_v9 = vld [vmem:[#allocation32] ss:$0 sm:$0xff] }
0x1af2   :  { %v4182_v39 = vadd.f32 %v4910_v8, %v4710_v36  ;;  %v4187_v13 = vadd.f32 %v4179_v14, %v7166_v10 }
0x1af4   :  { %4195 = vadd.xlane.f32.xlu0 %v4187_v13  ;;  %v4188_v51 = vadd.f32 %v4182_v39, %v7168_v32 }
0x1af6   :  { %4197 = vadd.xlane.f32.xlu1 %v4188_v51 }
0x1b79   :  { %v4192_v17 = vpop.xlane.xlu0 %4191 }
0x1b7a   :  { %v4199_v62 = vmul.f32 0.0078125, %v4192_v17 }
0x1b7b   :  { %v4194_v31 = vpop.xlane.xlu1 %4193 }
0x1b7c   :  { %v4203_v19 = vsub.f32 %v4185_v52, %v4199_v62  ;;  %v4200_v27 = vmul.f32 0.0078125, %v4194_v31  ;;  %v4738_v62 = vld [vmem:[#allocation34] ss:$0 sm:$0xff] }
0x1b7e   :  { %v4204_v34 = vsub.f32 %v4186_v26, %v4200_v27  ;;  %v4207_v63 = vmul.f32 %v4203_v19, %v4203_v19 }
0x1b80   :  { %4211 = vadd.xlane.f32.xlu0 %v4207_v63  ;;  %v4208_v28 = vmul.f32 %v4204_v34, %v4204_v34 }
0x1b81   :  { %v4196_v29 = vpop.xlane.xlu0 %4195 }
0x1b82   :  { %v4201_v21 = vmul.f32 0.0078125, %v4196_v29  ;;  %4213 = vadd.xlane.f32.xlu1 %v4208_v28 }
0x1b83   :  { %v4198_v30 = vpop.xlane.xlu1 %4197 }
0x1b84   :  { %v4205_v1 = vsub.f32 %v4187_v13, %v4201_v21  ;;  %v4202_v54 = vmul.f32 0.0078125, %v4198_v30 }
0x1b86   :  { %v4206_v10 = vsub.f32 %v4188_v51, %v4202_v54  ;;  %v4209_v22 = vmul.f32 %v4205_v1, %v4205_v1 }
0x1b88   :  { %4215 = vadd.xlane.f32.xlu0 %v4209_v22  ;;  %v4210_v32 = vmul.f32 %v4206_v10, %v4206_v10 }
0x1b8a   :  { %4217 = vadd.xlane.f32.xlu1 %v4210_v32 }
0x1c0d   :  { %v4212_v5 = vpop.xlane.xlu0 %4211 }
0x1c0e   :  { %v4219_v42 = vmul.f32 0.0078125, %v4212_v5 }
0x1c0f   :  { %v4214_v15 = vpop.xlane.xlu1 %4213 }
0x1c10   :  { %v4223_v33 = vadd.f32 1e-07, %v4219_v42  ;;  %v4220_v47 = vmul.f32 0.0078125, %v4214_v15 }
0x1c12   :  { %5635 = vrsqrt.f32 %v4223_v33  ;;  %v4224_v24 = vadd.f32 1e-07, %v4220_v47 }
0x1c14   :  { %5637 = vrsqrt.f32 %v4224_v24 }
0x1c15   :  { %v4216_v37 = vpop.xlane.xlu0 %4215 }
0x1c16   :  { %v4221_v0 = vmul.f32 0.0078125, %v4216_v37 }
0x1c17   :  { %v4218_v7 = vpop.xlane.xlu1 %4217 }
0x1c18   :  { %v4225_v38 = vadd.f32 1e-07, %v4221_v0  ;;  %v4222_v53 = vmul.f32 0.0078125, %v4218_v7 }
0x1c1a   :  { %5639 = vrsqrt.f32 %v4225_v38  ;;  %v4226_v55 = vadd.f32 1e-07, %v4222_v53 }
0x1c1c   :  { %v5636_v56 = vpop.eup %5635  ;;  %5641 = vrsqrt.f32 %v4226_v55 }
0x1c1d   :  { %v4231_v58 = vmul.f32 %v5636_v56, %v4203_v19 }
0x1c1e   :  { %v5638_v4 = vpop.eup %5637 }
0x1c1f   :  { %v4232_v57 = vmul.f32 %v5638_v4, %v4204_v34  ;;  %v4241_v44 = vmul.f32 %v4727_v23, %v4231_v58 }
0x1c21   :  { %v4242_v49 = vmul.f32 %v4727_v23, %v4232_v57  ;;  %v7220_v36 = vadd.f32 %v4728_v46, %v4241_v44 }
0x1c23   :  { %v7222_v2 = vadd.f32 %v4728_v46, %v4242_v49 }
0x1c24   :  { %v5640_v61 = vpop.eup %5639 }
0x1c25   :  { %v4233_v25 = vmul.f32 %v5640_v61, %v4205_v1  ;;  %v4255_v12 = vpack.c.bf16 %v7222_v2, %v7220_v36 }
0x1c26   :  { %v5642_v35 = vpop.eup %5641 }
0x1c27   :  { %v4234_v3 = vmul.f32 %v5642_v35, %v4206_v10  ;;  %5169 = vmatprep.mubr.bf16.mxu1 %v4255_v12  ;;  %v4243_v59 = vmul.f32 %v4727_v23, %v4233_v25 }
0x1c29   :  { %v4244_v52 = vmul.f32 %v4727_v23, %v4234_v3  ;;  %v7226_v60 = vadd.f32 %v4728_v46, %v4243_v59 }
0x1c2b   :  { %v7228_v26 = vadd.f32 %v4728_v46, %v4244_v52 }
0x1c2d   :  { %v4256_v48 = vpack.c.bf16 %v7228_v26, %v7226_v60 }
0x1c2f   :  { %5170 = vmatmul.mubr.bf16.vlgmr.msra.gmra.mrb[60].mxu1 %v4256_v48 }
0x1d02   :  { %v5171_v11 = vpop.f32.mrb[60].mxu1 }
0x1d03   :  { %v4371_v40 = vadd.f32 %v5171_v11, %v4729_v9  ;;  %v4362_v14 = vpop.f32.mrb[61].mxu1 }
0x1d04   :  { %v4363_v8 = vadd.f32 %v4729_v9, %v4362_v14  ;;  %v5172_v39 = vpop.f32.mrb[62].mxu1 }
0x1d05   :  { %5643 = vtanh.f32 %v4371_v40  ;;  %v4374_v13 = vadd.f32 %v5172_v39, %v4729_v9  ;;  %v4365_v51 = vpop.f32.mrb[63].mxu1 }
0x1d06   :  { %5645 = vtanh.f32 %v4363_v8  ;;  %v4366_v17 = vadd.f32 %v4729_v9, %v4365_v51 }
0x1d07   :  { %5647 = vtanh.f32 %v4374_v13 }
0x1d08   :  { %5649 = vtanh.f32 %v4366_v17 }
0x1d0f   :  { %v5644_v31 = vpop.eup %5643 }
0x1d10   :  { %v5646_v19 = vpop.eup %5645  ;;  %v4390_v27 = vmul.f32 %v5644_v31, %v4738_v62 }
0x1d11   :  { %v5648_v34 = vpop.eup %5647  ;;  %v4388_v29 = vmul.f32 %v5646_v19, %v4738_v62 }
0x1d12   :  { %4396 = vadd.xlane.f32.xlu0 %v4390_v27  ;;  %v4391_v63 = vmul.f32 %v5648_v34, %v4738_v62  ;;  %v5650_v28 = vpop.eup %5649 }
0x1d13   :  { %v4389_v21 = vmul.f32 %v5650_v28, %v4738_v62 }
0x1d14   :  { %4398 = vadd.xlane.f32.xlu1 %v4391_v63 }
0x1d16   :  { %4392 = vadd.xlane.f32.xlu0 %v4388_v29 }
0x1d18   :  { %4394 = vadd.xlane.f32.xlu1 %v4389_v21 }
0x1d9f   :  { %v4397_v30 = vpop.xlane.xlu0 %4396 }
0x1da1   :  { %v4399_v1 = vpop.xlane.xlu1 %4398 }
0x1da2   :  { %v4445_v54 = vmax.f32 %v4397_v30, %v4399_v1 }
0x1da3   :  { %v4393_v22 = vpop.xlane.xlu0 %4392 }
0x1da4   :  { %v4446_v10 = vrot.slane %v4445_v54, 4 }
0x1da5   :  { %v4395_v32 = vpop.xlane.xlu1 %4394 }
0x1da6   :  { %v4447_v50 = vmax.f32 %v4445_v54, %v4446_v10  ;;  %v4400_v16 = vmax.f32 %v4393_v22, %v4395_v32 }
0x1da8   :  { %v4448_v18 = vrot.slane %v4447_v50, 2  ;;  %v4401_v41 = vrot.slane %v4400_v16, 4 }
0x1daa   :  { %v4449_v43 = vmax.f32 %v4447_v50, %v4448_v18  ;;  %v4402_v20 = vmax.f32 %v4400_v16, %v4401_v41  ;;  %v4438_v41 = vld [vmem:[#allocation2] sm:$0x1] }
0x1dac   :  { %v4450_v6 = vrot.slane %v4449_v43, 1  ;;  %v4403_v45 = vrot.slane %v4402_v20, 2 }
0x1dae   :  { %v4451_v5 = vmax.f32 %v4449_v43, %v4450_v6  ;;  %v4404_v42 = vmax.f32 %v4402_v20, %v4403_v45 }
0x1db0   :  { %v4452_v15 = vsub.f32 %v4397_v30, %v4451_v5  ;;  %v4453_v33 = vsub.f32 %v4399_v1, %v4451_v5  ;;  %v4405_v47 = vrot.slane %v4404_v42, 1 }
0x1db2   :  { %v4454_v24 = vmul.f32 1.442695, %v4452_v15  ;;  %v4456_v37 = vmul.f32 1.442695, %v4453_v33  ;;  %v4406_v0 = vmax.f32 %v4404_v42, %v4405_v47 }
0x1db4   :  { %5651 = vpow2.f32 %v4454_v24  ;;  %v4407_v7 = vsub.f32 %v4393_v22, %v4406_v0  ;;  %v4408_v38 = vsub.f32 %v4395_v32, %v4406_v0 }
0x1db5   :  { %5653 = vpow2.f32 %v4456_v37 }
0x1db6   :  { %v4409_v53 = vmul.f32 1.442695, %v4407_v7  ;;  %v4411_v55 = vmul.f32 1.442695, %v4408_v38 }
0x1db8   :  { %5655 = vpow2.f32 %v4409_v53 }
0x1db9   :  { %5657 = vpow2.f32 %v4411_v55 }
0x1dbe   :  { %v5652_v56 = vpop.eup %5651 }
0x1dbf   :  { %v5654_v23 = vpop.eup %5653 }
0x1dc0   :  { %v4458_v58 = vadd.f32 %v5654_v23, %v5652_v56 }
0x1dc2   :  { %v5656_v4 = vpop.eup %5655  ;;  %v4459_v57 = vrot.slane %v4458_v58, 4 }
0x1dc3   :  { %v5658_v44 = vpop.eup %5657 }
0x1dc4   :  { %v4460_v46 = vadd.f32 %v4459_v57, %v4458_v58  ;;  %v4413_v49 = vadd.f32 %v5658_v44, %v5656_v4 }
0x1dc6   :  { %v4461_v61 = vrot.slane %v4460_v46, 2  ;;  %v4414_v25 = vrot.slane %v4413_v49, 4 }
0x1dc8   :  { %v4462_v12 = vadd.f32 %v4461_v61, %v4460_v46  ;;  %v4415_v35 = vadd.f32 %v4414_v25, %v4413_v49 }
0x1dca   :  { %v4463_v3 = vrot.slane %v4462_v12, 1  ;;  %v4416_v59 = vrot.slane %v4415_v35, 2 }
0x1dcc   :  { %v4464_v52 = vadd.f32 %v4463_v3, %v4462_v12  ;;  %v4417_v48 = vadd.f32 %v4416_v59, %v4415_v35 }
0x1dce   :  { %5659 = vrcp.f32 %v4464_v52  ;;  %v4418_v9 = vrot.slane %v4417_v48, 1 }
0x1dd0   :  { %v4419_v11 = vadd.f32 %v4418_v9, %v4417_v48 }
0x1dd2   :  { %5661 = vrcp.f32 %v4419_v11 }
0x1dd8   :  { %v5660_v40 = vpop.eup %5659 }
0x1dd9   :  { %v4467_v14 = vmul.f32 %v5660_v40, %v5654_v23  ;;  %v4466_v8 = vmul.f32 %v5660_v40, %v5652_v56 }
0x1ddb   :  { %v4468_v39 = vmul.f32 %v4466_v8, %v7226_v60  ;;  %v4469_v13 = vmul.f32 %v4467_v14, %v7228_v26  ;;  %v4432_v60 = vld [vmem:[#allocation35] sm:$0x1] }
0x1ddc   :  { %v5662_v51 = vpop.eup %5661 }
0x1ddd   :  { %v4422_v17 = vmul.f32 %v5662_v51, %v5658_v44  ;;  %v4470_v62 = vadd.f32 %v4469_v13, %v4468_v39  ;;  %v4421_v31 = vmul.f32 %v5662_v51, %v5656_v4 }
0x1ddf   :  { %v4471_v19 = vrot.slane %v4470_v62, 4  ;;  %v4423_v27 = vmul.f32 %v4421_v31, %v7220_v36  ;;  %v4424_v34 = vmul.f32 %v4422_v17, %v7222_v2 }
0x1de1   :  { %v4472_v63 = vadd.f32 %v4471_v19, %v4470_v62  ;;  %v4425_v28 = vadd.f32 %v4424_v34, %v4423_v27 }
0x1de3   :  { %v4473_v29 = vrot.slane %v4472_v63, 2  ;;  %v4426_v21 = vrot.slane %v4425_v28, 4 }
0x1de5   :  { %v4474_v30 = vadd.f32 %v4473_v29, %v4472_v63  ;;  %v4427_v1 = vadd.f32 %v4426_v21, %v4425_v28 }
0x1de7   :  { %v4475_v54 = vrot.slane %v4474_v30, 1  ;;  %v4428_v10 = vrot.slane %v4427_v1, 2 }
0x1de9   :  { %v4476_v22 = vadd.f32 %v4475_v54, %v4474_v30  ;;  %v4429_v26 = vadd.f32 %v4428_v10, %v4427_v1 }
0x1deb   :  { %v4477_v32 = vmul.f32 %v4476_v22, %v4432_v60  ;;  %v4430_v50 = vrot.slane %v4429_v26, 1 }
0x1ded   :  { %v4478_v16 = vsel %vm4434_vm1, %v4477_v32, 0.0  ;;  %v4431_v18 = vadd.f32 %v4430_v50, %v4429_v26 }
0x1dee   :  { %4479 = vadd.xlane.f32.xlu0 %v4478_v16 }
0x1def   :  { %v4433_v36 = vmul.f32 %v4432_v60, %v4431_v18 }
0x1df1   :  { %v4435_v2 = vsel %vm4434_vm1, %v4433_v36, 0.0 }
0x1df2   :  { %4436 = vadd.xlane.f32.xlu1 %v4435_v2 }
0x1e7b   :  { %v4480_v43 = vpop.xlane.xlu0 %4479 }
0x1e7c   :  { %v4481_v20 = vadd.f32 %v4480_v43, %v4438_v41 }
0x1e7e   :  { %4484 = vperm.xlu0 %5273, %v4481_v20  }
0x1e7f   :  { %v4437_v6 = vpop.xlane.xlu1 %4436 }
0x1e80   :  { %v4439_v45 = vadd.f32 %v4438_v41, %v4437_v6 }
0x1e82   :  { %4442 = vperm.xlu1 %5274, %v4439_v45  }
0x1efd   :  { %v4485_v5 = vpop.permute.xlu0 %4484 }
0x1efe   :  { %v4486_v42 = vrot.slane %v4485_v5, 7 }
0x1f01   :  { %v4443_v15 = vpop.permute.xlu1 %4442 }
0x1f02   :  { %v4488_v33 = vsel %vm4434_vm1, %v4443_v15, %v4486_v42 }
0x1f03   :  { %4489 = vst [vmem:[%s6406_s4] sm:$0x3] %v4488_v33 }
0x1f04   :  { %4494 = vsyncpa [#allocation4], 1 }
0x1f05   :  { %4495 = vsyncpa [#allocation6], 1 }
0x1f06   :  { %4496 = vsyncpa [#allocation9], 1 }
0x1f07   :  { %4497 = vsyncpa [#allocation12], 1 }
0x1f08   :  { %4498 = vsyncpa [#allocation15], 1 }
0x1f09   :  { %4499 = vsyncpa [#allocation18], 1 }
0x1f0a   :  { %4500 = vsyncpa [#allocation21], 1 }
0x1f0b   :  { %4501 = vsyncpa [#allocation24], 1 }
0x1f0c   :  { %4502 = vsyncpa [#allocation27], 1 }
0x1f0d   :  { %4503 = vsyncpa [#allocation30], 1 }
0x1f0e   :  { %4504 = vsyncpa [#allocation33], 1 }
0x1f0f   :  { %4505 = vsyncpa [#allocation36], 1 }

</bundles_post_ra>
